<compile_context>
chip_gen: v7x
topology: tpu7x:2x2x1
jax: 0.10.0
libtpu: 0.0.40
codegen_flags: <defaults>
</compile_context>

<pallas_src>
import functools

import jax
import jax.numpy as jnp
from jax.experimental import pallas as pl
from jax.experimental.pallas import tpu as pltpu


# ---------------------------------------------------------------------------
# Fused kernel
# ---------------------------------------------------------------------------
def fused_net_kernel(B, T, Bp,
                     emb_ref, w_ih_ref, b_ref, w_hh_ref,
                     aw1_ref, ab1_ref, aw2_ref,
                     fcw_ref, fcb_ref, ans_ref,
                     loss_ref, ind_ref,
                     xproj_scr):
    """Single-invocation fused forward.

    emb_ref : [T*Bp, D]  time-major embeddings (learned ++ glove)
    w_ih_ref: [D, 4H]    b_ref: [1, 4H] (b_ih + b_hh pre-folded)
    w_hh_ref: [H, 4H]
    aw1_ref : [H, A]     ab1_ref: [1, A]   aw2_ref: [A, 1]
    fcw_ref : [H, V]     fcb_ref: [1, V]
    ans_ref : [Bp, 1] int32 labels (padded rows masked out of the loss)
    loss_ref: [1, 1] f32 out      ind_ref: [Bp, 1] int32 out
    xproj_scr: VMEM scratch [T*Bp, 4H] for the precomputed input projection.
    """
    H = w_hh_ref.shape[0]
    A = aw1_ref.shape[1]
    V = fcw_ref.shape[1]

    # ---- LSTM input projection for all timesteps at once (one MXU matmul),
    #      kept in VMEM scratch so the unrolled loop just slices it.
    xproj_scr[...] = (
        jnp.dot(emb_ref[...], w_ih_ref[...], preferred_element_type=jnp.float32)
        + b_ref[...]
    )

    # Hoisted bias broadcast for the attention MLP (not re-broadcast per step).
    ab1_b = jnp.broadcast_to(ab1_ref[...], (Bp, A))

    h = jnp.zeros((Bp, H), jnp.float32)
    c = jnp.zeros((Bp, H), jnp.float32)
    hs = []       # per-step hidden states        [Bp, H]
    scores = []   # per-step attention energies    [Bp, 1]

    # ---- LSTM recurrence, fully unrolled (T small & static): MXU h@W_hh
    #      overlaps with EUP sigmoid/tanh of neighbouring steps.
    for t in range(T):
        gates = (xproj_scr[t * Bp:(t + 1) * Bp, :]
                 + jnp.dot(h, w_hh_ref[...],
                           preferred_element_type=jnp.float32))      # [Bp, 4H]
        i = jax.nn.sigmoid(gates[:, 0:H])
        f = jax.nn.sigmoid(gates[:, H:2 * H])
        g = jnp.tanh(gates[:, 2 * H:3 * H])
        o = jax.nn.sigmoid(gates[:, 3 * H:4 * H])
        c = f * c + i * g
        h = o * jnp.tanh(c)
        hs.append(h)
        # Additive-attention energy for this step, kept on the MXU
        # (e @ w2 instead of an XLU cross-lane reduction).
        e = jnp.tanh(jnp.dot(h, aw1_ref[...],
                             preferred_element_type=jnp.float32) + ab1_b)
        scores.append(jnp.dot(e, aw2_ref[...],
                              preferred_element_type=jnp.float32))   # [Bp, 1]
    # TODO(synk): variable-length sequences (VariableLengthLSTM) would need a
    # per-row length mask on the attention softmax; no lengths are passed here.

    # ---- Softmax over time, streamed across the T per-step scores
    #      (pure VPU/EUP elementwise; no concat, no lane reduction).
    m = scores[0]
    for t in range(1, T):
        m = jnp.maximum(m, scores[t])
    denom = jnp.zeros((Bp, 1), jnp.float32)
    ctx = jnp.zeros((Bp, H), jnp.float32)
    for t in range(T):
        p_t = jnp.exp(scores[t] - m)            # [Bp, 1]
        denom = denom + p_t
        ctx = ctx + p_t * hs[t]                 # unnormalized weighted sum
    ctx = ctx * pl.reciprocal(denom, approx=True)   # normalize once at the end

    # Dropout(p=0.5) is identity in eval mode.
    # TODO(synk): train-mode dropout would use pltpu.prng_seed/prng_random_bits.

    # ---- final_mlp (lane-dense V) + argmax + cross-entropy, all in-kernel.
    # TODO(synk): for larger H/V, cast MXU operands to bf16 (f32 accum) on v5e/v6e.
    logits = (jnp.dot(ctx, fcw_ref[...], preferred_element_type=jnp.float32)
              + fcb_ref[...])                                        # [Bp, V]

    lmax = jnp.max(logits, axis=1, keepdims=True)                    # [Bp, 1]
    col = jax.lax.broadcasted_iota(jnp.int32, (Bp, V), 1)
    colf = col.astype(jnp.float32)
    # torch.max semantics: first index attaining the maximum.
    ind = jnp.min(jnp.where(logits == lmax, colf, float(V)),
                  axis=1, keepdims=True)                             # [Bp, 1]
    ind_ref[...] = ind.astype(jnp.int32)

    # CrossEntropyLoss (log_softmax + NLL, mean over the B real rows).
    lse = lmax + jnp.log(jnp.sum(jnp.exp(logits - lmax), axis=1, keepdims=True))
    ans = ans_ref[...]                                               # [Bp, 1]
    picked = jnp.sum(jnp.where(col == ans, logits, 0.0),
                     axis=1, keepdims=True)                          # [Bp, 1]
    per_row = lse - picked
    row = jax.lax.broadcasted_iota(jnp.int32, (Bp, 1), 0)
    valid = (row < B).astype(jnp.float32)                            # mask padding
    loss2d = jnp.sum(per_row * valid, axis=0, keepdims=True) / float(B)  # [1, 1]
    loss_ref[...] = loss2d.astype(loss_ref.dtype)


# ---------------------------------------------------------------------------
# Parameters & wrapper (embedding gather + batch padding stay in plain JAX)
# ---------------------------------------------------------------------------
def init_params(key, no_words, lstm_size, emb_size, glove_size):
    ks = jax.random.split(key, 9)
    s = 0.05
    D = emb_size + glove_size
    H = lstm_size
    return {
        "embedding": jax.random.normal(ks[0], (no_words, emb_size), jnp.float32) * s,
        # LSTM weights stored transposed so the kernel does x @ W (i,f,g,o order).
        "w_ih_t": jax.random.normal(ks[1], (D, 4 * H), jnp.float32) * s,
        "b_ih": jax.random.normal(ks[2], (1, 4 * H), jnp.float32) * s,
        "w_hh_t": jax.random.normal(ks[3], (H, 4 * H), jnp.float32) * s,
        "b_hh": jax.random.normal(ks[4], (1, 4 * H), jnp.float32) * s,
        # Additive attention: e = tanh(h @ w1 + b1); score = e @ w2_t.
        "attn_w1": jax.random.normal(ks[5], (H, H), jnp.float32) * s,
        "attn_b1": jax.random.normal(ks[6], (1, H), jnp.float32) * s,
        "attn_w2_t": jax.random.normal(ks[7], (H, 1), jnp.float32) * s,
        # final_mlp
        "fc_w_t": jax.random.normal(ks[8], (H, no_words), jnp.float32) * s,
        "fc_b": jnp.zeros((1, no_words), jnp.float32),
    }


@jax.jit
def net_forward(params, tokens, glove_emb, answer):
    B, T = tokens.shape
    E = params["embedding"].shape[1]
    G = glove_emb.shape[2]
    D = E + G
    H = params["w_hh_t"].shape[0]

    # Pad batch to a multiple of 8 (f32 sublane count) for full vreg rows.
    Bp = max(8, ((B + 7) // 8) * 8)
    pad = Bp - B
    tokens_p = jnp.pad(tokens.astype(jnp.int32), ((0, pad), (0, 0)))
    glove_p = jnp.pad(glove_emb.astype(jnp.float32), ((0, pad), (0, 0), (0, 0)))
    ans_p = jnp.pad(answer.reshape(B, -1)[:, :1].astype(jnp.int32),
                    ((0, pad), (0, 0)))                              # [Bp, 1]

    # Embedding gather directly in time-major layout so the kernel's per-step
    # rows are contiguous ([T*Bp, D]); no transposes between Pallas kernels.
    que_emb = jnp.take(params["embedding"], tokens_p.T, axis=0)      # [T, Bp, E]
    emb = jnp.concatenate([que_emb, glove_p.transpose(1, 0, 2)], axis=2)
    emb2 = emb.reshape(T * Bp, D)

    # Fold both LSTM biases into the precomputed projection.
    b_comb = params["b_ih"] + params["b_hh"]

    kernel = functools.partial(fused_net_kernel, B, T, Bp)
    loss, ind = pl.pallas_call(
        kernel,
        out_shape=(jax.ShapeDtypeStruct((1, 1), jnp.float32),
                   jax.ShapeDtypeStruct((Bp, 1), jnp.int32)),
        scratch_shapes=[pltpu.VMEM((T * Bp, 4 * H), jnp.float32)],
    )(emb2, params["w_ih_t"], b_comb, params["w_hh_t"],
      params["attn_w1"], params["attn_b1"], params["attn_w2_t"],
      params["fc_w_t"], params["fc_b"], ans_p)

    return loss[0, 0], ind[:B, 0]


# ---------------------------------------------------------------------------
if __name__ == "__main__":
    # Small shapes consistent with the module's forward
    NO_WORDS = 256     # vocab
    LSTM_SIZE = 128    # hidden
    EMB_SIZE = 64      # learned word-embedding size
    GLOVE_SIZE = 64    # glove embedding size
    B, T = 2, 8

    key = jax.random.PRNGKey(0)
    kp, kt, kg, ka = jax.random.split(key, 4)

    params = init_params(kp, NO_WORDS, LSTM_SIZE, EMB_SIZE, GLOVE_SIZE)
    tokens = jax.random.randint(kt, (B, T), 0, NO_WORDS, dtype=jnp.int32)
    glove_emb = jax.random.normal(kg, (B, T, GLOVE_SIZE), jnp.float32)
    answer = jax.random.randint(ka, (B, 1), 0, NO_WORDS, dtype=jnp.int32)

    loss, ind = net_forward(params, tokens, glove_emb, answer)
    jax.block_until_ready((loss, ind))
    print("KERNEL_OK")
</pallas_src>

<mosaic_0001>
module attributes {stable_mosaic.version = 11 : i64} {
  func.func @fused_net_kernel(%arg0: memref<64x128xf32, #tpu.memory_space<vmem>>, %arg1: memref<128x512xf32, #tpu.memory_space<vmem>>, %arg2: memref<1x512xf32, #tpu.memory_space<vmem>>, %arg3: memref<128x512xf32, #tpu.memory_space<vmem>>, %arg4: memref<128x128xf32, #tpu.memory_space<vmem>>, %arg5: memref<1x128xf32, #tpu.memory_space<vmem>>, %arg6: memref<128x1xf32, #tpu.memory_space<vmem>>, %arg7: memref<128x256xf32, #tpu.memory_space<vmem>>, %arg8: memref<1x256xf32, #tpu.memory_space<vmem>>, %arg9: memref<8x1xi32, #tpu.memory_space<vmem>>, %arg10: memref<1x1xf32, #tpu.memory_space<vmem>>, %arg11: memref<8x1xi32, #tpu.memory_space<vmem>>, %arg12: memref<64x512xf32, #tpu.memory_space<vmem>>) attributes {dimension_semantics = [], scalar_prefetch = 0 : i64, scratch_operands = 1 : i64, tpu.core_type = #tpu.core_type<tc>} {
    %c0 = arith.constant 0 : index
    %c0_0 = arith.constant 0 : index
    %0 = vector.load %arg0[%c0, %c0_0] : memref<64x128xf32, #tpu.memory_space<vmem>>, vector<64x128xf32>
    %c0_1 = arith.constant 0 : index
    %c0_2 = arith.constant 0 : index
    %1 = vector.load %arg1[%c0_1, %c0_2] : memref<128x512xf32, #tpu.memory_space<vmem>>, vector<128x512xf32>
    %cst = arith.constant dense<0.000000e+00> : vector<64x512xf32>
    %2 = tpu.matmul %0, %1, %cst {dimension_numbers = #tpu.dot_dimension_numbers<[1], [0], [0], [1], [0, 0, 1, 1], [], []>} : vector<64x128xf32>, vector<128x512xf32>, vector<64x512xf32> -> vector<64x512xf32>
    %c0_3 = arith.constant 0 : index
    %c0_4 = arith.constant 0 : index
    %3 = vector.load %arg2[%c0_3, %c0_4] : memref<1x512xf32, #tpu.memory_space<vmem>>, vector<1x512xf32>
    %4 = vector.broadcast %3 : vector<1x512xf32> to vector<64x512xf32>
    %5 = arith.addf %2, %4 : vector<64x512xf32>
    %c0_5 = arith.constant 0 : index
    %c0_6 = arith.constant 0 : index
    %6 = vector.load %arg12[%c0_5, %c0_6] : memref<64x512xf32, #tpu.memory_space<vmem>>, vector<64x512xf32>
    tpu.vector_store %arg12[%c0_5, %c0_6], %5 {strides = array<i32>} : memref<64x512xf32, #tpu.memory_space<vmem>>, vector<64x512xf32>,
    %c0_7 = arith.constant 0 : index
    %c0_8 = arith.constant 0 : index
    %7 = vector.load %arg5[%c0_7, %c0_8] : memref<1x128xf32, #tpu.memory_space<vmem>>, vector<1x128xf32>
    %8 = vector.shape_cast %7 : vector<1x128xf32> to vector<1x128xf32>
    %9 = vector.broadcast %8 : vector<1x128xf32> to vector<8x128xf32>
    %cst_9 = arith.constant 0.000000e+00 : f32
    %10 = vector.broadcast %cst_9 : f32 to vector<8x128xf32>
    %cst_10 = arith.constant 0.000000e+00 : f32
    %11 = vector.broadcast %cst_10 : f32 to vector<8x128xf32>
    %c0_11 = arith.constant 0 : index
    %c0_12 = arith.constant 0 : index
    %12 = vector.load %arg12[%c0_11, %c0_12] : memref<64x512xf32, #tpu.memory_space<vmem>>, vector<8x512xf32>
    %c0_13 = arith.constant 0 : index
    %c0_14 = arith.constant 0 : index
    %13 = vector.load %arg3[%c0_13, %c0_14] : memref<128x512xf32, #tpu.memory_space<vmem>>, vector<128x512xf32>
    %cst_15 = arith.constant dense<0.000000e+00> : vector<8x512xf32>
    %14 = tpu.matmul %10, %13, %cst_15 {dimension_numbers = #tpu.dot_dimension_numbers<[1], [0], [0], [1], [0, 0, 1, 1], [], []>} : vector<8x128xf32>, vector<128x512xf32>, vector<8x512xf32> -> vector<8x512xf32>
    %15 = arith.addf %12, %14 : vector<8x512xf32>
    %16 = vector.extract_strided_slice %15 {offsets = [0, 0], sizes = [8, 128], strides = [1, 1]} : vector<8x512xf32> to vector<8x128xf32>
    %17 = arith.negf %16 : vector<8x128xf32>
    %18 = math.exp %17 : vector<8x128xf32>
    %cst_16 = arith.constant 1.000000e+00 : f32
    %19 = vector.broadcast %cst_16 : f32 to vector<8x128xf32>
    %20 = arith.addf %19, %18 : vector<8x128xf32>
    %21 = arith.divf %19, %20 : vector<8x128xf32>
    %22 = vector.extract_strided_slice %15 {offsets = [0, 128], sizes = [8, 128], strides = [1, 1]} : vector<8x512xf32> to vector<8x128xf32>
    %23 = arith.negf %22 : vector<8x128xf32>
    %24 = math.exp %23 : vector<8x128xf32>
    %cst_17 = arith.constant 1.000000e+00 : f32
    %25 = vector.broadcast %cst_17 : f32 to vector<8x128xf32>
    %26 = arith.addf %25, %24 : vector<8x128xf32>
    %27 = arith.divf %25, %26 : vector<8x128xf32>
    %28 = vector.extract_strided_slice %15 {offsets = [0, 256], sizes = [8, 128], strides = [1, 1]} : vector<8x512xf32> to vector<8x128xf32>
    %29 = math.tanh %28 : vector<8x128xf32>
    %30 = vector.extract_strided_slice %15 {offsets = [0, 384], sizes = [8, 128], strides = [1, 1]} : vector<8x512xf32> to vector<8x128xf32>
    %31 = arith.negf %30 : vector<8x128xf32>
    %32 = math.exp %31 : vector<8x128xf32>
    %cst_18 = arith.constant 1.000000e+00 : f32
    %33 = vector.broadcast %cst_18 : f32 to vector<8x128xf32>
    %34 = arith.addf %33, %32 : vector<8x128xf32>
    %35 = arith.divf %33, %34 : vector<8x128xf32>
    %36 = arith.mulf %27, %11 : vector<8x128xf32>
    %37 = arith.mulf %21, %29 : vector<8x128xf32>
    %38 = arith.addf %36, %37 : vector<8x128xf32>
    %39 = math.tanh %38 : vector<8x128xf32>
    %40 = arith.mulf %35, %39 : vector<8x128xf32>
    %c0_19 = arith.constant 0 : index
    %c0_20 = arith.constant 0 : index
    %41 = vector.load %arg4[%c0_19, %c0_20] : memref<128x128xf32, #tpu.memory_space<vmem>>, vector<128x128xf32>
    %cst_21 = arith.constant dense<0.000000e+00> : vector<8x128xf32>
    %42 = tpu.matmul %40, %41, %cst_21 {dimension_numbers = #tpu.dot_dimension_numbers<[1], [0], [0], [1], [0, 0, 1, 1], [], []>} : vector<8x128xf32>, vector<128x128xf32>, vector<8x128xf32> -> vector<8x128xf32>
    %43 = arith.addf %42, %9 : vector<8x128xf32>
    %44 = math.tanh %43 : vector<8x128xf32>
    %c0_22 = arith.constant 0 : index
    %c0_23 = arith.constant 0 : index
    %45 = vector.load %arg6[%c0_22, %c0_23] : memref<128x1xf32, #tpu.memory_space<vmem>>, vector<128x1xf32>
    %cst_24 = arith.constant dense<0.000000e+00> : vector<8x1xf32>
    %46 = tpu.matmul %44, %45, %cst_24 {dimension_numbers = #tpu.dot_dimension_numbers<[1], [0], [0], [1], [0, 0, 1, 1], [], []>} : vector<8x128xf32>, vector<128x1xf32>, vector<8x1xf32> -> vector<8x1xf32>
    %c8 = arith.constant 8 : index
    %c0_25 = arith.constant 0 : index
    %47 = vector.load %arg12[%c8, %c0_25] : memref<64x512xf32, #tpu.memory_space<vmem>>, vector<8x512xf32>
    %c0_26 = arith.constant 0 : index
    %c0_27 = arith.constant 0 : index
    %48 = vector.load %arg3[%c0_26, %c0_27] : memref<128x512xf32, #tpu.memory_space<vmem>>, vector<128x512xf32>
    %cst_28 = arith.constant dense<0.000000e+00> : vector<8x512xf32>
    %49 = tpu.matmul %40, %48, %cst_28 {dimension_numbers = #tpu.dot_dimension_numbers<[1], [0], [0], [1], [0, 0, 1, 1], [], []>} : vector<8x128xf32>, vector<128x512xf32>, vector<8x512xf32> -> vector<8x512xf32>
    %50 = arith.addf %47, %49 : vector<8x512xf32>
    %51 = vector.extract_strided_slice %50 {offsets = [0, 0], sizes = [8, 128], strides = [1, 1]} : vector<8x512xf32> to vector<8x128xf32>
    %52 = arith.negf %51 : vector<8x128xf32>
    %53 = math.exp %52 : vector<8x128xf32>
    %cst_29 = arith.constant 1.000000e+00 : f32
    %54 = vector.broadcast %cst_29 : f32 to vector<8x128xf32>
    %55 = arith.addf %54, %53 : vector<8x128xf32>
    %56 = arith.divf %54, %55 : vector<8x128xf32>
    %57 = vector.extract_strided_slice %50 {offsets = [0, 128], sizes = [8, 128], strides = [1, 1]} : vector<8x512xf32> to vector<8x128xf32>
    %58 = arith.negf %57 : vector<8x128xf32>
    %59 = math.exp %58 : vector<8x128xf32>
    %cst_30 = arith.constant 1.000000e+00 : f32
    %60 = vector.broadcast %cst_30 : f32 to vector<8x128xf32>
    %61 = arith.addf %60, %59 : vector<8x128xf32>
    %62 = arith.divf %60, %61 : vector<8x128xf32>
    %63 = vector.extract_strided_slice %50 {offsets = [0, 256], sizes = [8, 128], strides = [1, 1]} : vector<8x512xf32> to vector<8x128xf32>
    %64 = math.tanh %63 : vector<8x128xf32>
    %65 = vector.extract_strided_slice %50 {offsets = [0, 384], sizes = [8, 128], strides = [1, 1]} : vector<8x512xf32> to vector<8x128xf32>
    %66 = arith.negf %65 : vector<8x128xf32>
    %67 = math.exp %66 : vector<8x128xf32>
    %cst_31 = arith.constant 1.000000e+00 : f32
    %68 = vector.broadcast %cst_31 : f32 to vector<8x128xf32>
    %69 = arith.addf %68, %67 : vector<8x128xf32>
    %70 = arith.divf %68, %69 : vector<8x128xf32>
    %71 = arith.mulf %62, %38 : vector<8x128xf32>
    %72 = arith.mulf %56, %64 : vector<8x128xf32>
    %73 = arith.addf %71, %72 : vector<8x128xf32>
    %74 = math.tanh %73 : vector<8x128xf32>
    %75 = arith.mulf %70, %74 : vector<8x128xf32>
    %c0_32 = arith.constant 0 : index
    %c0_33 = arith.constant 0 : index
    %76 = vector.load %arg4[%c0_32, %c0_33] : memref<128x128xf32, #tpu.memory_space<vmem>>, vector<128x128xf32>
    %cst_34 = arith.constant dense<0.000000e+00> : vector<8x128xf32>
    %77 = tpu.matmul %75, %76, %cst_34 {dimension_numbers = #tpu.dot_dimension_numbers<[1], [0], [0], [1], [0, 0, 1, 1], [], []>} : vector<8x128xf32>, vector<128x128xf32>, vector<8x128xf32> -> vector<8x128xf32>
    %78 = arith.addf %77, %9 : vector<8x128xf32>
    %79 = math.tanh %78 : vector<8x128xf32>
    %c0_35 = arith.constant 0 : index
    %c0_36 = arith.constant 0 : index
    %80 = vector.load %arg6[%c0_35, %c0_36] : memref<128x1xf32, #tpu.memory_space<vmem>>, vector<128x1xf32>
    %cst_37 = arith.constant dense<0.000000e+00> : vector<8x1xf32>
    %81 = tpu.matmul %79, %80, %cst_37 {dimension_numbers = #tpu.dot_dimension_numbers<[1], [0], [0], [1], [0, 0, 1, 1], [], []>} : vector<8x128xf32>, vector<128x1xf32>, vector<8x1xf32> -> vector<8x1xf32>
    %c16 = arith.constant 16 : index
    %c0_38 = arith.constant 0 : index
    %82 = vector.load %arg12[%c16, %c0_38] : memref<64x512xf32, #tpu.memory_space<vmem>>, vector<8x512xf32>
    %c0_39 = arith.constant 0 : index
    %c0_40 = arith.constant 0 : index
    %83 = vector.load %arg3[%c0_39, %c0_40] : memref<128x512xf32, #tpu.memory_space<vmem>>, vector<128x512xf32>
    %cst_41 = arith.constant dense<0.000000e+00> : vector<8x512xf32>
    %84 = tpu.matmul %75, %83, %cst_41 {dimension_numbers = #tpu.dot_dimension_numbers<[1], [0], [0], [1], [0, 0, 1, 1], [], []>} : vector<8x128xf32>, vector<128x512xf32>, vector<8x512xf32> -> vector<8x512xf32>
    %85 = arith.addf %82, %84 : vector<8x512xf32>
    %86 = vector.extract_strided_slice %85 {offsets = [0, 0], sizes = [8, 128], strides = [1, 1]} : vector<8x512xf32> to vector<8x128xf32>
    %87 = arith.negf %86 : vector<8x128xf32>
    %88 = math.exp %87 : vector<8x128xf32>
    %cst_42 = arith.constant 1.000000e+00 : f32
    %89 = vector.broadcast %cst_42 : f32 to vector<8x128xf32>
    %90 = arith.addf %89, %88 : vector<8x128xf32>
    %91 = arith.divf %89, %90 : vector<8x128xf32>
    %92 = vector.extract_strided_slice %85 {offsets = [0, 128], sizes = [8, 128], strides = [1, 1]} : vector<8x512xf32> to vector<8x128xf32>
    %93 = arith.negf %92 : vector<8x128xf32>
    %94 = math.exp %93 : vector<8x128xf32>
    %cst_43 = arith.constant 1.000000e+00 : f32
    %95 = vector.broadcast %cst_43 : f32 to vector<8x128xf32>
    %96 = arith.addf %95, %94 : vector<8x128xf32>
    %97 = arith.divf %95, %96 : vector<8x128xf32>
    %98 = vector.extract_strided_slice %85 {offsets = [0, 256], sizes = [8, 128], strides = [1, 1]} : vector<8x512xf32> to vector<8x128xf32>
    %99 = math.tanh %98 : vector<8x128xf32>
    %100 = vector.extract_strided_slice %85 {offsets = [0, 384], sizes = [8, 128], strides = [1, 1]} : vector<8x512xf32> to vector<8x128xf32>
    %101 = arith.negf %100 : vector<8x128xf32>
    %102 = math.exp %101 : vector<8x128xf32>
    %cst_44 = arith.constant 1.000000e+00 : f32
    %103 = vector.broadcast %cst_44 : f32 to vector<8x128xf32>
    %104 = arith.addf %103, %102 : vector<8x128xf32>
    %105 = arith.divf %103, %104 : vector<8x128xf32>
    %106 = arith.mulf %97, %73 : vector<8x128xf32>
    %107 = arith.mulf %91, %99 : vector<8x128xf32>
    %108 = arith.addf %106, %107 : vector<8x128xf32>
    %109 = math.tanh %108 : vector<8x128xf32>
    %110 = arith.mulf %105, %109 : vector<8x128xf32>
    %c0_45 = arith.constant 0 : index
    %c0_46 = arith.constant 0 : index
    %111 = vector.load %arg4[%c0_45, %c0_46] : memref<128x128xf32, #tpu.memory_space<vmem>>, vector<128x128xf32>
    %cst_47 = arith.constant dense<0.000000e+00> : vector<8x128xf32>
    %112 = tpu.matmul %110, %111, %cst_47 {dimension_numbers = #tpu.dot_dimension_numbers<[1], [0], [0], [1], [0, 0, 1, 1], [], []>} : vector<8x128xf32>, vector<128x128xf32>, vector<8x128xf32> -> vector<8x128xf32>
    %113 = arith.addf %112, %9 : vector<8x128xf32>
    %114 = math.tanh %113 : vector<8x128xf32>
    %c0_48 = arith.constant 0 : index
    %c0_49 = arith.constant 0 : index
    %115 = vector.load %arg6[%c0_48, %c0_49] : memref<128x1xf32, #tpu.memory_space<vmem>>, vector<128x1xf32>
    %cst_50 = arith.constant dense<0.000000e+00> : vector<8x1xf32>
    %116 = tpu.matmul %114, %115, %cst_50 {dimension_numbers = #tpu.dot_dimension_numbers<[1], [0], [0], [1], [0, 0, 1, 1], [], []>} : vector<8x128xf32>, vector<128x1xf32>, vector<8x1xf32> -> vector<8x1xf32>
    %c24 = arith.constant 24 : index
    %c0_51 = arith.constant 0 : index
    %117 = vector.load %arg12[%c24, %c0_51] : memref<64x512xf32, #tpu.memory_space<vmem>>, vector<8x512xf32>
    %c0_52 = arith.constant 0 : index
    %c0_53 = arith.constant 0 : index
    %118 = vector.load %arg3[%c0_52, %c0_53] : memref<128x512xf32, #tpu.memory_space<vmem>>, vector<128x512xf32>
    %cst_54 = arith.constant dense<0.000000e+00> : vector<8x512xf32>
    %119 = tpu.matmul %110, %118, %cst_54 {dimension_numbers = #tpu.dot_dimension_numbers<[1], [0], [0], [1], [0, 0, 1, 1], [], []>} : vector<8x128xf32>, vector<128x512xf32>, vector<8x512xf32> -> vector<8x512xf32>
    %120 = arith.addf %117, %119 : vector<8x512xf32>
    %121 = vector.extract_strided_slice %120 {offsets = [0, 0], sizes = [8, 128], strides = [1, 1]} : vector<8x512xf32> to vector<8x128xf32>
    %122 = arith.negf %121 : vector<8x128xf32>
    %123 = math.exp %122 : vector<8x128xf32>
    %cst_55 = arith.constant 1.000000e+00 : f32
    %124 = vector.broadcast %cst_55 : f32 to vector<8x128xf32>
    %125 = arith.addf %124, %123 : vector<8x128xf32>
    %126 = arith.divf %124, %125 : vector<8x128xf32>
    %127 = vector.extract_strided_slice %120 {offsets = [0, 128], sizes = [8, 128], strides = [1, 1]} : vector<8x512xf32> to vector<8x128xf32>
    %128 = arith.negf %127 : vector<8x128xf32>
    %129 = math.exp %128 : vector<8x128xf32>
    %cst_56 = arith.constant 1.000000e+00 : f32
    %130 = vector.broadcast %cst_56 : f32 to vector<8x128xf32>
    %131 = arith.addf %130, %129 : vector<8x128xf32>
    %132 = arith.divf %130, %131 : vector<8x128xf32>
    %133 = vector.extract_strided_slice %120 {offsets = [0, 256], sizes = [8, 128], strides = [1, 1]} : vector<8x512xf32> to vector<8x128xf32>
    %134 = math.tanh %133 : vector<8x128xf32>
    %135 = vector.extract_strided_slice %120 {offsets = [0, 384], sizes = [8, 128], strides = [1, 1]} : vector<8x512xf32> to vector<8x128xf32>
    %136 = arith.negf %135 : vector<8x128xf32>
    %137 = math.exp %136 : vector<8x128xf32>
    %cst_57 = arith.constant 1.000000e+00 : f32
    %138 = vector.broadcast %cst_57 : f32 to vector<8x128xf32>
    %139 = arith.addf %138, %137 : vector<8x128xf32>
    %140 = arith.divf %138, %139 : vector<8x128xf32>
    %141 = arith.mulf %132, %108 : vector<8x128xf32>
    %142 = arith.mulf %126, %134 : vector<8x128xf32>
    %143 = arith.addf %141, %142 : vector<8x128xf32>
    %144 = math.tanh %143 : vector<8x128xf32>
    %145 = arith.mulf %140, %144 : vector<8x128xf32>
    %c0_58 = arith.constant 0 : index
    %c0_59 = arith.constant 0 : index
    %146 = vector.load %arg4[%c0_58, %c0_59] : memref<128x128xf32, #tpu.memory_space<vmem>>, vector<128x128xf32>
    %cst_60 = arith.constant dense<0.000000e+00> : vector<8x128xf32>
    %147 = tpu.matmul %145, %146, %cst_60 {dimension_numbers = #tpu.dot_dimension_numbers<[1], [0], [0], [1], [0, 0, 1, 1], [], []>} : vector<8x128xf32>, vector<128x128xf32>, vector<8x128xf32> -> vector<8x128xf32>
    %148 = arith.addf %147, %9 : vector<8x128xf32>
    %149 = math.tanh %148 : vector<8x128xf32>
    %c0_61 = arith.constant 0 : index
    %c0_62 = arith.constant 0 : index
    %150 = vector.load %arg6[%c0_61, %c0_62] : memref<128x1xf32, #tpu.memory_space<vmem>>, vector<128x1xf32>
    %cst_63 = arith.constant dense<0.000000e+00> : vector<8x1xf32>
    %151 = tpu.matmul %149, %150, %cst_63 {dimension_numbers = #tpu.dot_dimension_numbers<[1], [0], [0], [1], [0, 0, 1, 1], [], []>} : vector<8x128xf32>, vector<128x1xf32>, vector<8x1xf32> -> vector<8x1xf32>
    %c32 = arith.constant 32 : index
    %c0_64 = arith.constant 0 : index
    %152 = vector.load %arg12[%c32, %c0_64] : memref<64x512xf32, #tpu.memory_space<vmem>>, vector<8x512xf32>
    %c0_65 = arith.constant 0 : index
    %c0_66 = arith.constant 0 : index
    %153 = vector.load %arg3[%c0_65, %c0_66] : memref<128x512xf32, #tpu.memory_space<vmem>>, vector<128x512xf32>
    %cst_67 = arith.constant dense<0.000000e+00> : vector<8x512xf32>
    %154 = tpu.matmul %145, %153, %cst_67 {dimension_numbers = #tpu.dot_dimension_numbers<[1], [0], [0], [1], [0, 0, 1, 1], [], []>} : vector<8x128xf32>, vector<128x512xf32>, vector<8x512xf32> -> vector<8x512xf32>
    %155 = arith.addf %152, %154 : vector<8x512xf32>
    %156 = vector.extract_strided_slice %155 {offsets = [0, 0], sizes = [8, 128], strides = [1, 1]} : vector<8x512xf32> to vector<8x128xf32>
    %157 = arith.negf %156 : vector<8x128xf32>
    %158 = math.exp %157 : vector<8x128xf32>
    %cst_68 = arith.constant 1.000000e+00 : f32
    %159 = vector.broadcast %cst_68 : f32 to vector<8x128xf32>
    %160 = arith.addf %159, %158 : vector<8x128xf32>
    %161 = arith.divf %159, %160 : vector<8x128xf32>
    %162 = vector.extract_strided_slice %155 {offsets = [0, 128], sizes = [8, 128], strides = [1, 1]} : vector<8x512xf32> to vector<8x128xf32>
    %163 = arith.negf %162 : vector<8x128xf32>
    %164 = math.exp %163 : vector<8x128xf32>
    %cst_69 = arith.constant 1.000000e+00 : f32
    %165 = vector.broadcast %cst_69 : f32 to vector<8x128xf32>
    %166 = arith.addf %165, %164 : vector<8x128xf32>
    %167 = arith.divf %165, %166 : vector<8x128xf32>
    %168 = vector.extract_strided_slice %155 {offsets = [0, 256], sizes = [8, 128], strides = [1, 1]} : vector<8x512xf32> to vector<8x128xf32>
    %169 = math.tanh %168 : vector<8x128xf32>
    %170 = vector.extract_strided_slice %155 {offsets = [0, 384], sizes = [8, 128], strides = [1, 1]} : vector<8x512xf32> to vector<8x128xf32>
    %171 = arith.negf %170 : vector<8x128xf32>
    %172 = math.exp %171 : vector<8x128xf32>
    %cst_70 = arith.constant 1.000000e+00 : f32
    %173 = vector.broadcast %cst_70 : f32 to vector<8x128xf32>
    %174 = arith.addf %173, %172 : vector<8x128xf32>
    %175 = arith.divf %173, %174 : vector<8x128xf32>
    %176 = arith.mulf %167, %143 : vector<8x128xf32>
    %177 = arith.mulf %161, %169 : vector<8x128xf32>
    %178 = arith.addf %176, %177 : vector<8x128xf32>
    %179 = math.tanh %178 : vector<8x128xf32>
    %180 = arith.mulf %175, %179 : vector<8x128xf32>
    %c0_71 = arith.constant 0 : index
    %c0_72 = arith.constant 0 : index
    %181 = vector.load %arg4[%c0_71, %c0_72] : memref<128x128xf32, #tpu.memory_space<vmem>>, vector<128x128xf32>
    %cst_73 = arith.constant dense<0.000000e+00> : vector<8x128xf32>
    %182 = tpu.matmul %180, %181, %cst_73 {dimension_numbers = #tpu.dot_dimension_numbers<[1], [0], [0], [1], [0, 0, 1, 1], [], []>} : vector<8x128xf32>, vector<128x128xf32>, vector<8x128xf32> -> vector<8x128xf32>
    %183 = arith.addf %182, %9 : vector<8x128xf32>
    %184 = math.tanh %183 : vector<8x128xf32>
    %c0_74 = arith.constant 0 : index
    %c0_75 = arith.constant 0 : index
    %185 = vector.load %arg6[%c0_74, %c0_75] : memref<128x1xf32, #tpu.memory_space<vmem>>, vector<128x1xf32>
    %cst_76 = arith.constant dense<0.000000e+00> : vector<8x1xf32>
    %186 = tpu.matmul %184, %185, %cst_76 {dimension_numbers = #tpu.dot_dimension_numbers<[1], [0], [0], [1], [0, 0, 1, 1], [], []>} : vector<8x128xf32>, vector<128x1xf32>, vector<8x1xf32> -> vector<8x1xf32>
    %c40 = arith.constant 40 : index
    %c0_77 = arith.constant 0 : index
    %187 = vector.load %arg12[%c40, %c0_77] : memref<64x512xf32, #tpu.memory_space<vmem>>, vector<8x512xf32>
    %c0_78 = arith.constant 0 : index
    %c0_79 = arith.constant 0 : index
    %188 = vector.load %arg3[%c0_78, %c0_79] : memref<128x512xf32, #tpu.memory_space<vmem>>, vector<128x512xf32>
    %cst_80 = arith.constant dense<0.000000e+00> : vector<8x512xf32>
    %189 = tpu.matmul %180, %188, %cst_80 {dimension_numbers = #tpu.dot_dimension_numbers<[1], [0], [0], [1], [0, 0, 1, 1], [], []>} : vector<8x128xf32>, vector<128x512xf32>, vector<8x512xf32> -> vector<8x512xf32>
    %190 = arith.addf %187, %189 : vector<8x512xf32>
    %191 = vector.extract_strided_slice %190 {offsets = [0, 0], sizes = [8, 128], strides = [1, 1]} : vector<8x512xf32> to vector<8x128xf32>
    %192 = arith.negf %191 : vector<8x128xf32>
    %193 = math.exp %192 : vector<8x128xf32>
    %cst_81 = arith.constant 1.000000e+00 : f32
    %194 = vector.broadcast %cst_81 : f32 to vector<8x128xf32>
    %195 = arith.addf %194, %193 : vector<8x128xf32>
    %196 = arith.divf %194, %195 : vector<8x128xf32>
    %197 = vector.extract_strided_slice %190 {offsets = [0, 128], sizes = [8, 128], strides = [1, 1]} : vector<8x512xf32> to vector<8x128xf32>
    %198 = arith.negf %197 : vector<8x128xf32>
    %199 = math.exp %198 : vector<8x128xf32>
    %cst_82 = arith.constant 1.000000e+00 : f32
    %200 = vector.broadcast %cst_82 : f32 to vector<8x128xf32>
    %201 = arith.addf %200, %199 : vector<8x128xf32>
    %202 = arith.divf %200, %201 : vector<8x128xf32>
    %203 = vector.extract_strided_slice %190 {offsets = [0, 256], sizes = [8, 128], strides = [1, 1]} : vector<8x512xf32> to vector<8x128xf32>
    %204 = math.tanh %203 : vector<8x128xf32>
    %205 = vector.extract_strided_slice %190 {offsets = [0, 384], sizes = [8, 128], strides = [1, 1]} : vector<8x512xf32> to vector<8x128xf32>
    %206 = arith.negf %205 : vector<8x128xf32>
    %207 = math.exp %206 : vector<8x128xf32>
    %cst_83 = arith.constant 1.000000e+00 : f32
    %208 = vector.broadcast %cst_83 : f32 to vector<8x128xf32>
    %209 = arith.addf %208, %207 : vector<8x128xf32>
    %210 = arith.divf %208, %209 : vector<8x128xf32>
    %211 = arith.mulf %202, %178 : vector<8x128xf32>
    %212 = arith.mulf %196, %204 : vector<8x128xf32>
    %213 = arith.addf %211, %212 : vector<8x128xf32>
    %214 = math.tanh %213 : vector<8x128xf32>
    %215 = arith.mulf %210, %214 : vector<8x128xf32>
    %c0_84 = arith.constant 0 : index
    %c0_85 = arith.constant 0 : index
    %216 = vector.load %arg4[%c0_84, %c0_85] : memref<128x128xf32, #tpu.memory_space<vmem>>, vector<128x128xf32>
    %cst_86 = arith.constant dense<0.000000e+00> : vector<8x128xf32>
    %217 = tpu.matmul %215, %216, %cst_86 {dimension_numbers = #tpu.dot_dimension_numbers<[1], [0], [0], [1], [0, 0, 1, 1], [], []>} : vector<8x128xf32>, vector<128x128xf32>, vector<8x128xf32> -> vector<8x128xf32>
    %218 = arith.addf %217, %9 : vector<8x128xf32>
    %219 = math.tanh %218 : vector<8x128xf32>
    %c0_87 = arith.constant 0 : index
    %c0_88 = arith.constant 0 : index
    %220 = vector.load %arg6[%c0_87, %c0_88] : memref<128x1xf32, #tpu.memory_space<vmem>>, vector<128x1xf32>
    %cst_89 = arith.constant dense<0.000000e+00> : vector<8x1xf32>
    %221 = tpu.matmul %219, %220, %cst_89 {dimension_numbers = #tpu.dot_dimension_numbers<[1], [0], [0], [1], [0, 0, 1, 1], [], []>} : vector<8x128xf32>, vector<128x1xf32>, vector<8x1xf32> -> vector<8x1xf32>
    %c48 = arith.constant 48 : index
    %c0_90 = arith.constant 0 : index
    %222 = vector.load %arg12[%c48, %c0_90] : memref<64x512xf32, #tpu.memory_space<vmem>>, vector<8x512xf32>
    %c0_91 = arith.constant 0 : index
    %c0_92 = arith.constant 0 : index
    %223 = vector.load %arg3[%c0_91, %c0_92] : memref<128x512xf32, #tpu.memory_space<vmem>>, vector<128x512xf32>
    %cst_93 = arith.constant dense<0.000000e+00> : vector<8x512xf32>
    %224 = tpu.matmul %215, %223, %cst_93 {dimension_numbers = #tpu.dot_dimension_numbers<[1], [0], [0], [1], [0, 0, 1, 1], [], []>} : vector<8x128xf32>, vector<128x512xf32>, vector<8x512xf32> -> vector<8x512xf32>
    %225 = arith.addf %222, %224 : vector<8x512xf32>
    %226 = vector.extract_strided_slice %225 {offsets = [0, 0], sizes = [8, 128], strides = [1, 1]} : vector<8x512xf32> to vector<8x128xf32>
    %227 = arith.negf %226 : vector<8x128xf32>
    %228 = math.exp %227 : vector<8x128xf32>
    %cst_94 = arith.constant 1.000000e+00 : f32
    %229 = vector.broadcast %cst_94 : f32 to vector<8x128xf32>
    %230 = arith.addf %229, %228 : vector<8x128xf32>
    %231 = arith.divf %229, %230 : vector<8x128xf32>
    %232 = vector.extract_strided_slice %225 {offsets = [0, 128], sizes = [8, 128], strides = [1, 1]} : vector<8x512xf32> to vector<8x128xf32>
    %233 = arith.negf %232 : vector<8x128xf32>
    %234 = math.exp %233 : vector<8x128xf32>
    %cst_95 = arith.constant 1.000000e+00 : f32
    %235 = vector.broadcast %cst_95 : f32 to vector<8x128xf32>
    %236 = arith.addf %235, %234 : vector<8x128xf32>
    %237 = arith.divf %235, %236 : vector<8x128xf32>
    %238 = vector.extract_strided_slice %225 {offsets = [0, 256], sizes = [8, 128], strides = [1, 1]} : vector<8x512xf32> to vector<8x128xf32>
    %239 = math.tanh %238 : vector<8x128xf32>
    %240 = vector.extract_strided_slice %225 {offsets = [0, 384], sizes = [8, 128], strides = [1, 1]} : vector<8x512xf32> to vector<8x128xf32>
    %241 = arith.negf %240 : vector<8x128xf32>
    %242 = math.exp %241 : vector<8x128xf32>
    %cst_96 = arith.constant 1.000000e+00 : f32
    %243 = vector.broadcast %cst_96 : f32 to vector<8x128xf32>
    %244 = arith.addf %243, %242 : vector<8x128xf32>
    %245 = arith.divf %243, %244 : vector<8x128xf32>
    %246 = arith.mulf %237, %213 : vector<8x128xf32>
    %247 = arith.mulf %231, %239 : vector<8x128xf32>
    %248 = arith.addf %246, %247 : vector<8x128xf32>
    %249 = math.tanh %248 : vector<8x128xf32>
    %250 = arith.mulf %245, %249 : vector<8x128xf32>
    %c0_97 = arith.constant 0 : index
    %c0_98 = arith.constant 0 : index
    %251 = vector.load %arg4[%c0_97, %c0_98] : memref<128x128xf32, #tpu.memory_space<vmem>>, vector<128x128xf32>
    %cst_99 = arith.constant dense<0.000000e+00> : vector<8x128xf32>
    %252 = tpu.matmul %250, %251, %cst_99 {dimension_numbers = #tpu.dot_dimension_numbers<[1], [0], [0], [1], [0, 0, 1, 1], [], []>} : vector<8x128xf32>, vector<128x128xf32>, vector<8x128xf32> -> vector<8x128xf32>
    %253 = arith.addf %252, %9 : vector<8x128xf32>
    %254 = math.tanh %253 : vector<8x128xf32>
    %c0_100 = arith.constant 0 : index
    %c0_101 = arith.constant 0 : index
    %255 = vector.load %arg6[%c0_100, %c0_101] : memref<128x1xf32, #tpu.memory_space<vmem>>, vector<128x1xf32>
    %cst_102 = arith.constant dense<0.000000e+00> : vector<8x1xf32>
    %256 = tpu.matmul %254, %255, %cst_102 {dimension_numbers = #tpu.dot_dimension_numbers<[1], [0], [0], [1], [0, 0, 1, 1], [], []>} : vector<8x128xf32>, vector<128x1xf32>, vector<8x1xf32> -> vector<8x1xf32>
    %c56 = arith.constant 56 : index
    %c0_103 = arith.constant 0 : index
    %257 = vector.load %arg12[%c56, %c0_103] : memref<64x512xf32, #tpu.memory_space<vmem>>, vector<8x512xf32>
    %c0_104 = arith.constant 0 : index
    %c0_105 = arith.constant 0 : index
    %258 = vector.load %arg3[%c0_104, %c0_105] : memref<128x512xf32, #tpu.memory_space<vmem>>, vector<128x512xf32>
    %cst_106 = arith.constant dense<0.000000e+00> : vector<8x512xf32>
    %259 = tpu.matmul %250, %258, %cst_106 {dimension_numbers = #tpu.dot_dimension_numbers<[1], [0], [0], [1], [0, 0, 1, 1], [], []>} : vector<8x128xf32>, vector<128x512xf32>, vector<8x512xf32> -> vector<8x512xf32>
    %260 = arith.addf %257, %259 : vector<8x512xf32>
    %261 = vector.extract_strided_slice %260 {offsets = [0, 0], sizes = [8, 128], strides = [1, 1]} : vector<8x512xf32> to vector<8x128xf32>
    %262 = arith.negf %261 : vector<8x128xf32>
    %263 = math.exp %262 : vector<8x128xf32>
    %cst_107 = arith.constant 1.000000e+00 : f32
    %264 = vector.broadcast %cst_107 : f32 to vector<8x128xf32>
    %265 = arith.addf %264, %263 : vector<8x128xf32>
    %266 = arith.divf %264, %265 : vector<8x128xf32>
    %267 = vector.extract_strided_slice %260 {offsets = [0, 128], sizes = [8, 128], strides = [1, 1]} : vector<8x512xf32> to vector<8x128xf32>
    %268 = arith.negf %267 : vector<8x128xf32>
    %269 = math.exp %268 : vector<8x128xf32>
    %cst_108 = arith.constant 1.000000e+00 : f32
    %270 = vector.broadcast %cst_108 : f32 to vector<8x128xf32>
    %271 = arith.addf %270, %269 : vector<8x128xf32>
    %272 = arith.divf %270, %271 : vector<8x128xf32>
    %273 = vector.extract_strided_slice %260 {offsets = [0, 256], sizes = [8, 128], strides = [1, 1]} : vector<8x512xf32> to vector<8x128xf32>
    %274 = math.tanh %273 : vector<8x128xf32>
    %275 = vector.extract_strided_slice %260 {offsets = [0, 384], sizes = [8, 128], strides = [1, 1]} : vector<8x512xf32> to vector<8x128xf32>
    %276 = arith.negf %275 : vector<8x128xf32>
    %277 = math.exp %276 : vector<8x128xf32>
    %cst_109 = arith.constant 1.000000e+00 : f32
    %278 = vector.broadcast %cst_109 : f32 to vector<8x128xf32>
    %279 = arith.addf %278, %277 : vector<8x128xf32>
    %280 = arith.divf %278, %279 : vector<8x128xf32>
    %281 = arith.mulf %272, %248 : vector<8x128xf32>
    %282 = arith.mulf %266, %274 : vector<8x128xf32>
    %283 = arith.addf %281, %282 : vector<8x128xf32>
    %284 = math.tanh %283 : vector<8x128xf32>
    %285 = arith.mulf %280, %284 : vector<8x128xf32>
    %c0_110 = arith.constant 0 : index
    %c0_111 = arith.constant 0 : index
    %286 = vector.load %arg4[%c0_110, %c0_111] : memref<128x128xf32, #tpu.memory_space<vmem>>, vector<128x128xf32>
    %cst_112 = arith.constant dense<0.000000e+00> : vector<8x128xf32>
    %287 = tpu.matmul %285, %286, %cst_112 {dimension_numbers = #tpu.dot_dimension_numbers<[1], [0], [0], [1], [0, 0, 1, 1], [], []>} : vector<8x128xf32>, vector<128x128xf32>, vector<8x128xf32> -> vector<8x128xf32>
    %288 = arith.addf %287, %9 : vector<8x128xf32>
    %289 = math.tanh %288 : vector<8x128xf32>
    %c0_113 = arith.constant 0 : index
    %c0_114 = arith.constant 0 : index
    %290 = vector.load %arg6[%c0_113, %c0_114] : memref<128x1xf32, #tpu.memory_space<vmem>>, vector<128x1xf32>
    %cst_115 = arith.constant dense<0.000000e+00> : vector<8x1xf32>
    %291 = tpu.matmul %289, %290, %cst_115 {dimension_numbers = #tpu.dot_dimension_numbers<[1], [0], [0], [1], [0, 0, 1, 1], [], []>} : vector<8x128xf32>, vector<128x1xf32>, vector<8x1xf32> -> vector<8x1xf32>
    %292 = arith.maximumf %46, %81 : vector<8x1xf32>
    %293 = arith.maximumf %292, %116 : vector<8x1xf32>
    %294 = arith.maximumf %293, %151 : vector<8x1xf32>
    %295 = arith.maximumf %294, %186 : vector<8x1xf32>
    %296 = arith.maximumf %295, %221 : vector<8x1xf32>
    %297 = arith.maximumf %296, %256 : vector<8x1xf32>
    %298 = arith.maximumf %297, %291 : vector<8x1xf32>
    %cst_116 = arith.constant 0.000000e+00 : f32
    %299 = vector.broadcast %cst_116 : f32 to vector<8x1xf32>
    %cst_117 = arith.constant 0.000000e+00 : f32
    %300 = vector.broadcast %cst_117 : f32 to vector<8x128xf32>
    %301 = arith.subf %46, %298 : vector<8x1xf32>
    %302 = math.exp %301 : vector<8x1xf32>
    %303 = arith.addf %299, %302 : vector<8x1xf32>
    %304 = vector.broadcast %302 : vector<8x1xf32> to vector<8x128xf32>
    %305 = arith.mulf %304, %40 : vector<8x128xf32>
    %306 = arith.addf %300, %305 : vector<8x128xf32>
    %307 = arith.subf %81, %298 : vector<8x1xf32>
    %308 = math.exp %307 : vector<8x1xf32>
    %309 = arith.addf %303, %308 : vector<8x1xf32>
    %310 = vector.broadcast %308 : vector<8x1xf32> to vector<8x128xf32>
    %311 = arith.mulf %310, %75 : vector<8x128xf32>
    %312 = arith.addf %306, %311 : vector<8x128xf32>
    %313 = arith.subf %116, %298 : vector<8x1xf32>
    %314 = math.exp %313 : vector<8x1xf32>
    %315 = arith.addf %309, %314 : vector<8x1xf32>
    %316 = vector.broadcast %314 : vector<8x1xf32> to vector<8x128xf32>
    %317 = arith.mulf %316, %110 : vector<8x128xf32>
    %318 = arith.addf %312, %317 : vector<8x128xf32>
    %319 = arith.subf %151, %298 : vector<8x1xf32>
    %320 = math.exp %319 : vector<8x1xf32>
    %321 = arith.addf %315, %320 : vector<8x1xf32>
    %322 = vector.broadcast %320 : vector<8x1xf32> to vector<8x128xf32>
    %323 = arith.mulf %322, %145 : vector<8x128xf32>
    %324 = arith.addf %318, %323 : vector<8x128xf32>
    %325 = arith.subf %186, %298 : vector<8x1xf32>
    %326 = math.exp %325 : vector<8x1xf32>
    %327 = arith.addf %321, %326 : vector<8x1xf32>
    %328 = vector.broadcast %326 : vector<8x1xf32> to vector<8x128xf32>
    %329 = arith.mulf %328, %180 : vector<8x128xf32>
    %330 = arith.addf %324, %329 : vector<8x128xf32>
    %331 = arith.subf %221, %298 : vector<8x1xf32>
    %332 = math.exp %331 : vector<8x1xf32>
    %333 = arith.addf %327, %332 : vector<8x1xf32>
    %334 = vector.broadcast %332 : vector<8x1xf32> to vector<8x128xf32>
    %335 = arith.mulf %334, %215 : vector<8x128xf32>
    %336 = arith.addf %330, %335 : vector<8x128xf32>
    %337 = arith.subf %256, %298 : vector<8x1xf32>
    %338 = math.exp %337 : vector<8x1xf32>
    %339 = arith.addf %333, %338 : vector<8x1xf32>
    %340 = vector.broadcast %338 : vector<8x1xf32> to vector<8x128xf32>
    %341 = arith.mulf %340, %250 : vector<8x128xf32>
    %342 = arith.addf %336, %341 : vector<8x128xf32>
    %343 = arith.subf %291, %298 : vector<8x1xf32>
    %344 = math.exp %343 : vector<8x1xf32>
    %345 = arith.addf %339, %344 : vector<8x1xf32>
    %346 = vector.broadcast %344 : vector<8x1xf32> to vector<8x128xf32>
    %347 = arith.mulf %346, %285 : vector<8x128xf32>
    %348 = arith.addf %342, %347 : vector<8x128xf32>
    %349 = tpu.reciprocal %345 {approx = true} : vector<8x1xf32> -> vector<8x1xf32>
    %350 = vector.broadcast %349 : vector<8x1xf32> to vector<8x128xf32>
    %351 = arith.mulf %348, %350 : vector<8x128xf32>
    %c0_118 = arith.constant 0 : index
    %c0_119 = arith.constant 0 : index
    %352 = vector.load %arg7[%c0_118, %c0_119] : memref<128x256xf32, #tpu.memory_space<vmem>>, vector<128x256xf32>
    %cst_120 = arith.constant dense<0.000000e+00> : vector<8x256xf32>
    %353 = tpu.matmul %351, %352, %cst_120 {dimension_numbers = #tpu.dot_dimension_numbers<[1], [0], [0], [1], [0, 0, 1, 1], [], []>} : vector<8x128xf32>, vector<128x256xf32>, vector<8x256xf32> -> vector<8x256xf32>
    %c0_121 = arith.constant 0 : index
    %c0_122 = arith.constant 0 : index
    %354 = vector.load %arg8[%c0_121, %c0_122] : memref<1x256xf32, #tpu.memory_space<vmem>>, vector<1x256xf32>
    %355 = vector.broadcast %354 : vector<1x256xf32> to vector<8x256xf32>
    %356 = arith.addf %353, %355 : vector<8x256xf32>
    %cst_123 = arith.constant dense<0xFF800000> : vector<8xf32>
    %357 = vector.multi_reduction <maximumf>, %356, %cst_123 [1] : vector<8x256xf32> to vector<8xf32>
    %358 = vector.shape_cast %357 : vector<8xf32> to vector<8x1xf32>
    %359 = tpu.iota {dimensions = array<i32: 1>} : vector<8x256xi32>
    %360 = arith.sitofp %359 : vector<8x256xi32> to vector<8x256xf32>
    %361 = vector.broadcast %358 : vector<8x1xf32> to vector<8x256xf32>
    %362 = arith.cmpf oeq, %356, %361 : vector<8x256xf32>
    %cst_124 = arith.constant 2.560000e+02 : f32
    %363 = vector.broadcast %cst_124 : f32 to vector<8x256xf32>
    %364 = arith.select %362, %360, %363 : vector<8x256xi1>, vector<8x256xf32>
    %cst_125 = arith.constant dense<0x7F800000> : vector<8xf32>
    %365 = vector.multi_reduction <minimumf>, %364, %cst_125 [1] : vector<8x256xf32> to vector<8xf32>
    %366 = vector.shape_cast %365 : vector<8xf32> to vector<8x1xf32>
    %367 = arith.fptosi %366 : vector<8x1xf32> to vector<8x1xi32>
    %c0_126 = arith.constant 0 : index
    %c0_127 = arith.constant 0 : index
    %368 = vector.load %arg11[%c0_126, %c0_127] : memref<8x1xi32, #tpu.memory_space<vmem>>, vector<8x1xi32>
    tpu.vector_store %arg11[%c0_126, %c0_127], %367 {strides = array<i32>} : memref<8x1xi32, #tpu.memory_space<vmem>>, vector<8x1xi32>,
    %369 = vector.broadcast %358 : vector<8x1xf32> to vector<8x256xf32>
    %370 = arith.subf %356, %369 : vector<8x256xf32>
    %371 = math.exp %370 : vector<8x256xf32>
    %cst_128 = arith.constant dense<0.000000e+00> : vector<8xf32>
    %372 = vector.multi_reduction <add>, %371, %cst_128 [1] : vector<8x256xf32> to vector<8xf32>
    %373 = vector.shape_cast %372 : vector<8xf32> to vector<8x1xf32>
    %374 = math.log %373 : vector<8x1xf32>
    %375 = arith.addf %358, %374 : vector<8x1xf32>
    %c0_129 = arith.constant 0 : index
    %c0_130 = arith.constant 0 : index
    %376 = vector.load %arg9[%c0_129, %c0_130] : memref<8x1xi32, #tpu.memory_space<vmem>>, vector<8x1xi32>
    %377 = vector.broadcast %376 : vector<8x1xi32> to vector<8x256xi32>
    %378 = arith.cmpi eq, %359, %377 : vector<8x256xi32>
    %cst_131 = arith.constant 0.000000e+00 : f32
    %379 = vector.broadcast %cst_131 : f32 to vector<8x256xf32>
    %380 = arith.select %378, %356, %379 : vector<8x256xi1>, vector<8x256xf32>
    %cst_132 = arith.constant dense<0.000000e+00> : vector<8xf32>
    %381 = vector.multi_reduction <add>, %380, %cst_132 [1] : vector<8x256xf32> to vector<8xf32>
    %382 = vector.shape_cast %381 : vector<8xf32> to vector<8x1xf32>
    %383 = arith.subf %375, %382 : vector<8x1xf32>
    %384 = tpu.iota {dimensions = array<i32: 0>} : vector<8x1xi32>
    %c2_i32 = arith.constant 2 : i32
    %385 = vector.broadcast %c2_i32 : i32 to vector<8x1xi32>
    %386 = arith.cmpi slt, %384, %385 : vector<8x1xi32>
    %387 = arith.extui %386 : vector<8x1xi1> to vector<8x1xi32>
    %388 = arith.sitofp %387 : vector<8x1xi32> to vector<8x1xf32>
    %389 = arith.mulf %383, %388 : vector<8x1xf32>
    %cst_133 = arith.constant dense<0.000000e+00> : vector<1xf32>
    %390 = vector.multi_reduction <add>, %389, %cst_133 [0] : vector<8x1xf32> to vector<1xf32>
    %391 = vector.shape_cast %390 : vector<1xf32> to vector<1x1xf32>
    %cst_134 = arith.constant 2.000000e+00 : f32
    %392 = vector.broadcast %cst_134 : f32 to vector<1x1xf32>
    %393 = arith.divf %391, %392 : vector<1x1xf32>
    %c0_135 = arith.constant 0 : index
    %c0_136 = arith.constant 0 : index
    %394 = vector.load %arg10[%c0_135, %c0_136] : memref<1x1xf32, #tpu.memory_space<vmem>>, vector<1x1xf32>
    tpu.vector_store %arg10[%c0_135, %c0_136], %393 {strides = array<i32>} : memref<1x1xf32, #tpu.memory_space<vmem>>, vector<1x1xf32>,
    return
  }
}

</mosaic_0001>

<bundles_post_ra>
// kernel: net_forward.1
= control target key start
LH: loop header
LB: loop body
LE: loop exit
PB: predicated region body
PF: predicated region fallthrough
CT: control target
= control target key end

     0   :  { %v6996_v7 = vmov 0.0   ;;  %s6979_s0 = inlined_call_operand.vmem [shape: f32[64,128], index: 0, kind: input, shape index: {}]   ;;  %s6980_s1 = inlined_call_operand.vmem [shape: f32[128,512], index: 1, kind: input, shape index: {}]   ;;  %s6981_s2 = inlined_call_operand.vmem [shape: f32[1,512], index: 2, kind: input, shape index: {}]   ;;  %s6982_s3 = inlined_call_operand.vmem [shape: f32[128,512], index: 3, kind: input, shape index: {}]   ;;  %s6983_s4 = inlined_call_operand.vmem [shape: f32[128,128], index: 4, kind: input, shape index: {}]   ;;  %s6984_s5 = inlined_call_operand.vmem [shape: f32[1,128], index: 5, kind: input, shape index: {}]   ;;  %s6985_s6 = inlined_call_operand.vmem [shape: f32[128,1], index: 6, kind: input, shape index: {}]   ;;  %s6986_s7 = inlined_call_operand.vmem [shape: f32[128,256], index: 7, kind: input, shape index: {}]   ;;  %s6987_s8 = inlined_call_operand.vmem [shape: f32[1,256], index: 8, kind: input, shape index: {}]   ;;  %s6988_s9 = inlined_call_operand.vmem [shape: s32[8,1], index: 9, kind: input, shape index: {}]   ;;  %s6989_s10 = inlined_call_operand.hbm [shape: f32[1,1], index: 10, kind: output, shape index: {0}]   ;;  %s6990_s11 = inlined_call_operand.vmem [shape: s32[8,1], index: 11, kind: output, shape index: {1}]  }
   0x1   :  { %v47_v0 = vld [vmem:[%s6980_s1 + $0x8] sm:$0xff]  ;;  %v49_v2 = vld [vmem:[%s6980_s1 + $0x18] sm:$0xff]  ;;  %v46_v5 = vld [vmem:[%s6980_s1] sm:$0xff]  ;;  %196 = vmatprep.mubr.f32.mxu0 %v6996_v7  ;;  %309 = vmatprep.mubr.f32.mxu1 %v6996_v7 }
   0x2   :  { %v51_v1 = vld [vmem:[%s6980_s1 + $0x28] sm:$0xff]  ;;  %v53_v4 = vld [vmem:[%s6980_s1 + $0x38] sm:$0xff]  ;;  %v50_v6 = vld [vmem:[%s6980_s1 + $0x20] sm:$0xff] }
   0x3   :  { %v4164_v3 = vpack.c.bf16 %v51_v1, %v47_v0  ;;  %v4196_v8 = vpack.c.bf16 %v53_v4, %v49_v2  ;;  %v4166_v9 = vpack.c.bf16 %v50_v6, %v46_v5  ;;  %v48_v10 = vld [vmem:[%s6980_s1 + $0x10] sm:$0xff]  ;;  %v55_v12 = vld [vmem:[%s6980_s1 + $0x48] sm:$0xff]  ;;  %v57_v15 = vld [vmem:[%s6980_s1 + $0x58] sm:$0xff] }
   0x4   :  { %v52_v11 = vld [vmem:[%s6980_s1 + $0x30] sm:$0xff]  ;;  %v59_v14 = vld [vmem:[%s6980_s1 + $0x68] sm:$0xff]  ;;  %v61_v16 = vld [vmem:[%s6980_s1 + $0x78] sm:$0xff] }
   0x5   :  { %4165 = vmatprep.subr.bf16.mxu0 %v4164_v3  ;;  %v4198_v13 = vpack.c.bf16 %v52_v11, %v48_v10  ;;  %4197 = vmatprep.subr.bf16.mxu1 %v4196_v8  ;;  %v4168_v17 = vpack.c.bf16 %v59_v14, %v55_v12  ;;  %v4200_v18 = vpack.c.bf16 %v61_v16, %v57_v15  ;;  %v54_v19 = vld [vmem:[%s6980_s1 + $0x40] sm:$0xff]  ;;  %v56_v21 = vld [vmem:[%s6980_s1 + $0x50] sm:$0xff]  ;;  %v63_v24 = vld [vmem:[%s6980_s1 + $0x88] sm:$0xff] }
   0x6   :  { %4167 = vmatpush1.bf16.msra.mxu0 %v4166_v9  ;;  %v58_v20 = vld [vmem:[%s6980_s1 + $0x60] sm:$0xff]  ;;  %v60_v23 = vld [vmem:[%s6980_s1 + $0x70] sm:$0xff]  ;;  %v67_v25 = vld [vmem:[%s6980_s1 + $0xa8] sm:$0xff] }
   0x7   :  { %4199 = vmatpush1.bf16.msra.mxu1 %v4198_v13  ;;  %v4170_v22 = vpack.c.bf16 %v58_v20, %v54_v19  ;;  %4169 = vmatprep.subr.bf16.mxu0 %v4168_v17  ;;  %v4202_v26 = vpack.c.bf16 %v60_v23, %v56_v21  ;;  %v4172_v27 = vpack.c.bf16 %v67_v25, %v63_v24  ;;  %v65_v28 = vld [vmem:[%s6980_s1 + $0x98] sm:$0xff]  ;;  %v62_v30 = vld [vmem:[%s6980_s1 + $0x80] sm:$0xff]  ;;  %v64_v33 = vld [vmem:[%s6980_s1 + $0x90] sm:$0xff] }
   0x8   :  { %4201 = vmatprep.subr.bf16.mxu1 %v4200_v18  ;;  %v69_v29 = vld [vmem:[%s6980_s1 + $0xb8] sm:$0xff]  ;;  %v66_v32 = vld [vmem:[%s6980_s1 + $0xa0] sm:$0xff]  ;;  %v68_v34 = vld [vmem:[%s6980_s1 + $0xb0] sm:$0xff] }
   0x9   :  { %v4204_v31 = vpack.c.bf16 %v69_v29, %v65_v28  ;;  %v4174_v35 = vpack.c.bf16 %v66_v32, %v62_v30  ;;  %v71_v36 = vld [vmem:[%s6980_s1 + $0xc8] sm:$0xff]  ;;  %v73_v38 = vld [vmem:[%s6980_s1 + $0xd8] sm:$0xff]  ;;  %v4206_v39 = vpack.c.bf16 %v68_v34, %v64_v33  ;;  %v70_v42 = vld [vmem:[%s6980_s1 + $0xc0] sm:$0xff] }
   0xa   :  { %4171 = vmatpush1.bf16.msra.mxu0 %v4170_v22  ;;  %v75_v37 = vld [vmem:[%s6980_s1 + $0xe8] sm:$0xff]  ;;  %v77_v41 = vld [vmem:[%s6980_s1 + $0xf8] sm:$0xff]  ;;  %v74_v43 = vld [vmem:[%s6980_s1 + $0xe0] sm:$0xff] }
   0xb   :  { %4203 = vmatpush1.bf16.msra.mxu1 %v4202_v26  ;;  %4173 = vmatprep.subr.bf16.mxu0 %v4172_v27  ;;  %v4176_v40 = vpack.c.bf16 %v75_v37, %v71_v36  ;;  %v4208_v44 = vpack.c.bf16 %v77_v41, %v73_v38  ;;  %v72_v45 = vld [vmem:[%s6980_s1 + $0xd0] sm:$0xff]  ;;  %v79_v47 = vld [vmem:[%s6980_s1 + $0x108] sm:$0xff]  ;;  %v81_v49 = vld [vmem:[%s6980_s1 + $0x118] sm:$0xff]  ;;  %v4178_v51 = vpack.c.bf16 %v74_v43, %v70_v42 }
   0xc   :  { %4205 = vmatprep.subr.bf16.mxu1 %v4204_v31  ;;  %v76_v46 = vld [vmem:[%s6980_s1 + $0xf0] sm:$0xff]  ;;  %v83_v48 = vld [vmem:[%s6980_s1 + $0x128] sm:$0xff]  ;;  %v85_v50 = vld [vmem:[%s6980_s1 + $0x138] sm:$0xff] }
   0xd   :  { %v4210_v52 = vpack.c.bf16 %v76_v46, %v72_v45  ;;  %v4180_v53 = vpack.c.bf16 %v83_v48, %v79_v47  ;;  %v78_v54 = vld [vmem:[%s6980_s1 + $0x100] sm:$0xff]  ;;  %v80_v56 = vld [vmem:[%s6980_s1 + $0x110] sm:$0xff]  ;;  %v4212_v57 = vpack.c.bf16 %v85_v50, %v81_v49  ;;  %v87_v59 = vld [vmem:[%s6980_s1 + $0x148] sm:$0xff] }
   0xe   :  { %4175 = vmatpush1.bf16.msra.mxu0 %v4174_v35  ;;  %v82_v55 = vld [vmem:[%s6980_s1 + $0x120] sm:$0xff]  ;;  %v84_v58 = vld [vmem:[%s6980_s1 + $0x130] sm:$0xff]  ;;  %v91_v60 = vld [vmem:[%s6980_s1 + $0x168] sm:$0xff] }
   0xf   :  { %4207 = vmatpush1.bf16.msra.mxu1 %v4206_v39  ;;  %4177 = vmatprep.subr.bf16.mxu0 %v4176_v40  ;;  %v89_v61 = vld [vmem:[%s6980_s1 + $0x158] sm:$0xff]  ;;  %v4182_v63 = vpack.c.bf16 %v82_v55, %v78_v54  ;;  %v4214_v0 = vpack.c.bf16 %v84_v58, %v80_v56  ;;  %v4184_v1 = vpack.c.bf16 %v91_v60, %v87_v59  ;;  %v86_v2 = vld [vmem:[%s6980_s1 + $0x140] sm:$0xff]  ;;  %v88_v4 = vld [vmem:[%s6980_s1 + $0x150] sm:$0xff] }
  0x10   :  { %4209 = vmatprep.subr.bf16.mxu1 %v4208_v44  ;;  %v93_v62 = vld [vmem:[%s6980_s1 + $0x178] sm:$0xff]  ;;  %v90_v3 = vld [vmem:[%s6980_s1 + $0x160] sm:$0xff]  ;;  %v92_v6 = vld [vmem:[%s6980_s1 + $0x170] sm:$0xff] }
  0x11   :  { %v4216_v5 = vpack.c.bf16 %v93_v62, %v89_v61  ;;  %v95_v8 = vld [vmem:[%s6980_s1 + $0x188] sm:$0xff]  ;;  %v97_v10 = vld [vmem:[%s6980_s1 + $0x198] sm:$0xff]  ;;  %v4186_v12 = vpack.c.bf16 %v90_v3, %v86_v2  ;;  %v4218_v13 = vpack.c.bf16 %v92_v6, %v88_v4  ;;  %v94_v15 = vld [vmem:[%s6980_s1 + $0x180] sm:$0xff] }
  0x12   :  { %4179 = vmatpush1.bf16.msra.mxu0 %v4178_v51  ;;  %v99_v9 = vld [vmem:[%s6980_s1 + $0x1a8] sm:$0xff]  ;;  %v101_v11 = vld [vmem:[%s6980_s1 + $0x1b8] sm:$0xff]  ;;  %v98_v16 = vld [vmem:[%s6980_s1 + $0x1a0] sm:$0xff] }
  0x13   :  { %4211 = vmatpush1.bf16.msra.mxu1 %v4210_v52  ;;  %4181 = vmatprep.subr.bf16.mxu0 %v4180_v53  ;;  %v4188_v14 = vpack.c.bf16 %v99_v9, %v95_v8  ;;  %v96_v17 = vld [vmem:[%s6980_s1 + $0x190] sm:$0xff]  ;;  %v4220_v18 = vpack.c.bf16 %v101_v11, %v97_v10  ;;  %v103_v20 = vld [vmem:[%s6980_s1 + $0x1c8] sm:$0xff]  ;;  %v105_v22 = vld [vmem:[%s6980_s1 + $0x1d8] sm:$0xff]  ;;  %v4190_v24 = vpack.c.bf16 %v98_v16, %v94_v15 }
  0x14   :  { %4213 = vmatprep.subr.bf16.mxu1 %v4212_v57  ;;  %v100_v19 = vld [vmem:[%s6980_s1 + $0x1b0] sm:$0xff]  ;;  %v107_v21 = vld [vmem:[%s6980_s1 + $0x1e8] sm:$0xff]  ;;  %v109_v23 = vld [vmem:[%s6980_s1 + $0x1f8] sm:$0xff] }
  0x15   :  { %v4222_v25 = vpack.c.bf16 %v100_v19, %v96_v17  ;;  %v4192_v26 = vpack.c.bf16 %v107_v21, %v103_v20  ;;  %v102_v27 = vld [vmem:[%s6980_s1 + $0x1c0] sm:$0xff]  ;;  %v104_v29 = vld [vmem:[%s6980_s1 + $0x1d0] sm:$0xff]  ;;  %v4224_v30 = vpack.c.bf16 %v109_v23, %v105_v22  ;;  %v402_v32 = vld [vmem:[%s6982_s3 + $0x8] sm:$0xff] }
  0x16   :  { %4183 = vmatpush1.bf16.msra.mxu0 %v4182_v63  ;;  %v106_v28 = vld [vmem:[%s6980_s1 + $0x1e0] sm:$0xff]  ;;  %v108_v31 = vld [vmem:[%s6980_s1 + $0x1f0] sm:$0xff]  ;;  %v406_v33 = vld [vmem:[%s6982_s3 + $0x28] sm:$0xff] }
  0x17   :  { %4215 = vmatpush1.bf16.msra.mxu1 %v4214_v0  ;;  %4185 = vmatprep.subr.bf16.mxu0 %v4184_v1  ;;  %v404_v34 = vld [vmem:[%s6982_s3 + $0x18] sm:$0xff]  ;;  %v4194_v36 = vpack.c.bf16 %v106_v28, %v102_v27  ;;  %v4226_v37 = vpack.c.bf16 %v108_v31, %v104_v29  ;;  %v5693_v38 = vpack.c.bf16 %v406_v33, %v402_v32  ;;  %v401_v39 = vld [vmem:[%s6982_s3] sm:$0xff]  ;;  %v403_v42 = vld [vmem:[%s6982_s3 + $0x10] sm:$0xff] }
  0x18   :  { %4217 = vmatprep.subr.bf16.mxu1 %v4216_v5  ;;  %v408_v35 = vld [vmem:[%s6982_s3 + $0x38] sm:$0xff]  ;;  %v405_v40 = vld [vmem:[%s6982_s3 + $0x20] sm:$0xff]  ;;  %v407_v43 = vld [vmem:[%s6982_s3 + $0x30] sm:$0xff] }
  0x19   :  { %v5701_v41 = vpack.c.bf16 %v408_v35, %v404_v34  ;;  %v410_v44 = vld [vmem:[%s6982_s3 + $0x48] sm:$0xff]  ;;  %v38_v46 = vld [vmem:[%s6979_s0] sm:$0xff]  ;;  %v5718_v47 = vpack.c.bf16 %v405_v40, %v401_v39  ;;  %v412_v48 = vld [vmem:[%s6982_s3 + $0x58] sm:$0xff]  ;;  %v5727_v50 = vpack.c.bf16 %v407_v43, %v403_v42 }
  0x1a   :  { %4187 = vmatpush1.bf16.msra.mxu0 %v4186_v12  ;;  %v414_v45 = vld [vmem:[%s6982_s3 + $0x68] sm:$0xff]  ;;  %v416_v49 = vld [vmem:[%s6982_s3 + $0x78] sm:$0xff]  ;;  %v409_v51 = vld [vmem:[%s6982_s3 + $0x40] sm:$0xff] }
  0x1b   :  { %4219 = vmatpush1.bf16.msra.mxu1 %v4218_v13  ;;  %4189 = vmatprep.subr.bf16.mxu0 %v4188_v14  ;;  %7033 = vst [vmem:[#allocation6_spill] sm:$0xff] %v5701_v41  ;;  %v413_v52 = vld [vmem:[%s6982_s3 + $0x60] sm:$0xff]  ;;  %v5736_v53 = vpack.c.bf16 %v414_v45, %v410_v44  ;;  %v411_v54 = vld [vmem:[%s6982_s3 + $0x50] sm:$0xff]  ;;  %v5744_v56 = vpack.c.bf16 %v416_v49, %v412_v48  ;;  %v418_v57 = vld [vmem:[%s6982_s3 + $0x88] sm:$0xff] }
  0x1c   :  { %4221 = vmatprep.subr.bf16.mxu1 %v4220_v18  ;;  %v415_v55 = vld [vmem:[%s6982_s3 + $0x70] sm:$0xff]  ;;  %v422_v58 = vld [vmem:[%s6982_s3 + $0xa8] sm:$0xff]  ;;  %v5756_v60 = vpack.c.bf16 %v413_v52, %v409_v51  ;;  %v420_v61 = vld [vmem:[%s6982_s3 + $0x98] sm:$0xff] }
  0x1d   :  { %v39_v59 = vld [vmem:[%s6979_s0 + $0x8] sm:$0xff]  ;;  %v424_v62 = vld [vmem:[%s6982_s3 + $0xb8] sm:$0xff]  ;;  %v5766_v63 = vpack.c.bf16 %v415_v55, %v411_v54  ;;  %v417_v0 = vld [vmem:[%s6982_s3 + $0x80] sm:$0xff]  ;;  %v5776_v2 = vpack.c.bf16 %v422_v58, %v418_v57 }
  0x1e   :  { %4191 = vmatpush1.bf16.msra.mxu0 %v4190_v24  ;;  %v421_v1 = vld [vmem:[%s6982_s3 + $0xa0] sm:$0xff]  ;;  %v419_v3 = vld [vmem:[%s6982_s3 + $0x90] sm:$0xff]  ;;  %v5785_v5 = vpack.c.bf16 %v424_v62, %v420_v61  ;;  %v426_v6 = vld [vmem:[%s6982_s3 + $0xc8] sm:$0xff] }
  0x1f   :  { %4223 = vmatpush1.bf16.msra.mxu1 %v4222_v25  ;;  %4193 = vmatprep.subr.bf16.mxu0 %v4192_v26  ;;  %v423_v4 = vld [vmem:[%s6982_s3 + $0xb0] sm:$0xff]  ;;  %v430_v8 = vld [vmem:[%s6982_s3 + $0xe8] sm:$0xff]  ;;  %v5797_v10 = vpack.c.bf16 %v421_v1, %v417_v0  ;;  %v428_v11 = vld [vmem:[%s6982_s3 + $0xd8] sm:$0xff] }
  0x20   :  { %4225 = vmatprep.subr.bf16.mxu1 %v4224_v30  ;;  %v40_v9 = vld [vmem:[%s6979_s0 + $0x10] sm:$0xff]  ;;  %v432_v12 = vld [vmem:[%s6982_s3 + $0xf8] sm:$0xff]  ;;  %v5807_v13 = vpack.c.bf16 %v423_v4, %v419_v3  ;;  %v425_v14 = vld [vmem:[%s6982_s3 + $0xc0] sm:$0xff]  ;;  %v5817_v16 = vpack.c.bf16 %v430_v8, %v426_v6 }
  0x21   :  { %v429_v15 = vld [vmem:[%s6982_s3 + $0xe0] sm:$0xff]  ;;  %v427_v17 = vld [vmem:[%s6982_s3 + $0xd0] sm:$0xff]  ;;  %v5826_v19 = vpack.c.bf16 %v432_v12, %v428_v11  ;;  %v434_v20 = vld [vmem:[%s6982_s3 + $0x108] sm:$0xff] }
  0x22   :  { %4195 = vmatpush1.bf16.msra.mxu0 %v4194_v36  ;;  %v431_v18 = vld [vmem:[%s6982_s3 + $0xf0] sm:$0xff]  ;;  %v438_v21 = vld [vmem:[%s6982_s3 + $0x128] sm:$0xff]  ;;  %v41_v22 = vld [vmem:[%s6979_s0 + $0x18] sm:$0xff]  ;;  %v5838_v23 = vpack.c.bf16 %v429_v15, %v425_v14 }
  0x23   :  { %4227 = vmatpush1.bf16.msra.mxu1 %v4226_v37  ;;  %4229 = vmatprep.subr.bf16.mxu0 %v5693_v38  ;;  %v436_v24 = vld [vmem:[%s6982_s3 + $0x118] sm:$0xff]  ;;  %v5848_v26 = vpack.c.bf16 %v431_v18, %v427_v17  ;;  %v433_v27 = vld [vmem:[%s6982_s3 + $0x100] sm:$0xff] }
  0x24   :  { %4261 = vmatprep.subr.bf16.mxu1 %v5701_v41  ;;  %v440_v25 = vld [vmem:[%s6982_s3 + $0x138] sm:$0xff]  ;;  %v437_v28 = vld [vmem:[%s6982_s3 + $0x120] sm:$0xff] }
  0x25   :  { %197 = vmatmul.mubr.f32.vlgmr.msra.gmra.mrb[0].mxu0 %v38_v46 }
  0x26   :  { %310 = vmatmul.mubr.f32.vlgmr.msra.gmra.mrb[0].mxu1 %v38_v46  ;;  %4231 = vmatpush1.bf16.msra.mxu0 %v5718_v47 }
  0x27   :  { %4263 = vmatpush1.bf16.msra.mxu1 %v5727_v50  ;;  %202 = vmatprep.mubr.f32.mxu0 %v6996_v7 }
  0x28   :  { %315 = vmatprep.mubr.f32.mxu1 %v6996_v7  ;;  %4233 = vmatprep.subr.bf16.mxu0 %v5736_v53 }
  0x29   :  { %203 = vmatmul.mubr.f32.gmra.mrb[2].mxu0 %v39_v59  ;;  %4265 = vmatprep.subr.bf16.mxu1 %v5744_v56 }
  0x2a   :  { %316 = vmatmul.mubr.f32.gmra.mrb[2].mxu1 %v39_v59  ;;  %4235 = vmatpush1.bf16.msra.mxu0 %v5756_v60 }
  0x2b   :  { %4267 = vmatpush1.bf16.msra.mxu1 %v5766_v63  ;;  %208 = vmatprep.mubr.f32.mxu0 %v6996_v7 }
  0x2c   :  { %321 = vmatprep.mubr.f32.mxu1 %v6996_v7  ;;  %4237 = vmatprep.subr.bf16.mxu0 %v5776_v2 }
  0x2d   :  { %209 = vmatmul.mubr.f32.gmra.mrb[4].mxu0 %v40_v9  ;;  %4269 = vmatprep.subr.bf16.mxu1 %v5785_v5 }
  0x2e   :  { %322 = vmatmul.mubr.f32.gmra.mrb[4].mxu1 %v40_v9  ;;  %4239 = vmatpush1.bf16.msra.mxu0 %v5797_v10 }
  0x2f   :  { %4271 = vmatpush1.bf16.msra.mxu1 %v5807_v13  ;;  %214 = vmatprep.mubr.f32.mxu0 %v6996_v7 }
  0x30   :  { %17 = vsyncpa [#allocation4], 0  ;;  %327 = vmatprep.mubr.f32.mxu1 %v6996_v7  ;;  %4241 = vmatprep.subr.bf16.mxu0 %v5817_v16  ;;  %v5858_v29 = vpack.c.bf16 %v438_v21, %v434_v20  ;;  %v435_v30 = vld [vmem:[%s6982_s3 + $0x110] sm:$0xff]  ;;  %v5867_v32 = vpack.c.bf16 %v440_v25, %v436_v24  ;;  %v442_v33 = vld [vmem:[%s6982_s3 + $0x148] sm:$0xff]  ;;  %v5879_v36 = vpack.c.bf16 %v437_v28, %v433_v27  ;;  %vm5424_vm0 = vmmov 0   ;;  %s5426_s26 = smov [#allocation3]  }
  0x31   :  { %v439_v31 = vld [vmem:[%s6982_s3 + $0x130] sm:$0xff]  ;;  %215 = vmatmul.mubr.f32.gmra.mrb[6].mxu0 %v41_v22  ;;  %4273 = vmatprep.subr.bf16.mxu1 %v5826_v19  ;;  %v446_v34 = vld [vmem:[%s6982_s3 + $0x168] sm:$0xff]  ;;  %v42_v35 = vld [vmem:[%s6979_s0 + $0x20] sm:$0xff]  ;;  %vm3246_vm5 = vcmask 7168   ;;  %s3294_s27 = sshll.u32 %s5426_s26, 4  ;;  %vm3286_vm7 = vcmask 0   ;;  %s3295_s27 = int_to_ptr.vmem [resolvable:$true] %s3294_s27 }
  0x32   :  { %328 = vmatmul.mubr.f32.gmra.mrb[6].mxu1 %v41_v22  ;;  %4243 = vmatpush1.bf16.msra.mxu0 %v5838_v23  ;;  %v444_v37 = vld [vmem:[%s6982_s3 + $0x158] sm:$0xff]  ;;  %v5889_v40 = vpack.c.bf16 %v439_v31, %v435_v30  ;;  %v441_v42 = vld [vmem:[%s6982_s3 + $0x140] sm:$0xff]  ;;  %v5899_v44 = vpack.c.bf16 %v446_v34, %v442_v33  ;;  %v443_v45 = vld [vmem:[%s6982_s3 + $0x150] sm:$0xff]  ;;  %v6994_v33 = vmov 0.0|0.0   ;;  %p5403_p1 = scmp.lt.s32.totalorder %s3295_s27, %s3295_s27 }
  0x33   :  { %v448_v39 = vld [vmem:[%s6982_s3 + $0x178] sm:$0xff]  ;;  %4275 = vmatpush1.bf16.msra.mxu1 %v5848_v26  ;;  %220 = vmatprep.mubr.f32.mxu0 %v6996_v7  ;;  %v445_v43 = vld [vmem:[%s6982_s3 + $0x160] sm:$0xff]  ;;  %v447_v46 = vld [vmem:[%s6982_s3 + $0x170] sm:$0xff] }
  0x34   :  { %333 = vmatprep.mubr.f32.mxu1 %v6996_v7  ;;  %4245 = vmatprep.subr.bf16.mxu0 %v5858_v29  ;;  %v5908_v48 = vpack.c.bf16 %v448_v39, %v444_v37  ;;  %v450_v49 = vld [vmem:[%s6982_s3 + $0x188] sm:$0xff]  ;;  %v5920_v54 = vpack.c.bf16 %v445_v43, %v441_v42  ;;  %v452_v55 = vld [vmem:[%s6982_s3 + $0x198] sm:$0xff]  ;;  %v5930_v58 = vpack.c.bf16 %v447_v46, %v443_v45  ;;  %v449_v59 = vld [vmem:[%s6982_s3 + $0x180] sm:$0xff] }
  0x35   :  { %221 = vmatmul.mubr.f32.gmra.mrb[8].mxu0 %v42_v35  ;;  %4277 = vmatprep.subr.bf16.mxu1 %v5867_v32  ;;  %v454_v51 = vld [vmem:[%s6982_s3 + $0x1a8] sm:$0xff]  ;;  %v456_v57 = vld [vmem:[%s6982_s3 + $0x1b8] sm:$0xff]  ;;  %v453_v61 = vld [vmem:[%s6982_s3 + $0x1a0] sm:$0xff] }
  0x36   :  { %334 = vmatmul.mubr.f32.gmra.mrb[8].mxu1 %v42_v35  ;;  %4247 = vmatpush1.bf16.msra.mxu0 %v5879_v36  ;;  %v43_v52 = vld [vmem:[%s6979_s0 + $0x28] sm:$0xff]  ;;  %v5940_v62 = vpack.c.bf16 %v454_v51, %v450_v49  ;;  %v451_v0 = vld [vmem:[%s6982_s3 + $0x190] sm:$0xff]  ;;  %v5949_v3 = vpack.c.bf16 %v456_v57, %v452_v55  ;;  %v5961_v9 = vpack.c.bf16 %v453_v61, %v449_v59  ;;  %v460_v11 = vld [vmem:[%s6982_s3 + $0x1d8] sm:$0xff] }
  0x37   :  { %4279 = vmatpush1.bf16.msra.mxu1 %v5889_v40  ;;  %226 = vmatprep.mubr.f32.mxu0 %v6996_v7  ;;  %v455_v1 = vld [vmem:[%s6982_s3 + $0x1b0] sm:$0xff]  ;;  %v458_v4 = vld [vmem:[%s6982_s3 + $0x1c8] sm:$0xff]  ;;  %v464_v12 = vld [vmem:[%s6982_s3 + $0x1f8] sm:$0xff] }
  0x38   :  { %339 = vmatprep.mubr.f32.mxu1 %v6996_v7  ;;  %4249 = vmatprep.subr.bf16.mxu0 %v5899_v44  ;;  %v462_v6 = vld [vmem:[%s6982_s3 + $0x1e8] sm:$0xff]  ;;  %v44_v8 = vld [vmem:[%s6979_s0 + $0x30] sm:$0xff]  ;;  %v5971_v14 = vpack.c.bf16 %v455_v1, %v451_v0  ;;  %v457_v15 = vld [vmem:[%s6982_s3 + $0x1c0] sm:$0xff]  ;;  %v5990_v22 = vpack.c.bf16 %v464_v12, %v460_v11 }
  0x39   :  { %227 = vmatmul.mubr.f32.gmra.mrb[10].mxu0 %v43_v52  ;;  %4281 = vmatprep.subr.bf16.mxu1 %v5908_v48  ;;  %v461_v17 = vld [vmem:[%s6982_s3 + $0x1e0] sm:$0xff]  ;;  %v5981_v18 = vpack.c.bf16 %v462_v6, %v458_v4  ;;  %v459_v20 = vld [vmem:[%s6982_s3 + $0x1d0] sm:$0xff]  ;;  %v45_v24 = vld [vmem:[%s6979_s0 + $0x38] sm:$0xff] }
  0x3a   :  { %340 = vmatmul.mubr.f32.gmra.mrb[10].mxu1 %v43_v52  ;;  %4251 = vmatpush1.bf16.msra.mxu0 %v5920_v54  ;;  %v463_v21 = vld [vmem:[%s6982_s3 + $0x1f0] sm:$0xff]  ;;  %v5996_v25 = vpack.c.bf16 %v461_v17, %v457_v15  ;;  %v635_v28 = vld [vmem:[%s6983_s4] sm:$0xff]  ;;  %v636_v30 = vld [vmem:[%s6983_s4 + $0x8] sm:$0xff] }
  0x3b   :  { %4283 = vmatpush1.bf16.msra.mxu1 %v5930_v58  ;;  %232 = vmatprep.mubr.f32.mxu0 %v6996_v7  ;;  %v6000_v27 = vpack.c.bf16 %v463_v21, %v459_v20  ;;  %v6017_v31 = vpack.c.bf16 %v636_v30, %v635_v28  ;;  %v637_v34 = vld [vmem:[%s6983_s4 + $0x10] sm:$0xff]  ;;  %v638_v35 = vld [vmem:[%s6983_s4 + $0x18] sm:$0xff]  ;;  %v639_v39 = vld [vmem:[%s6983_s4 + $0x20] sm:$0xff] }
  0x3c   :  { %345 = vmatprep.mubr.f32.mxu1 %v6996_v7  ;;  %4253 = vmatprep.subr.bf16.mxu0 %v5940_v62  ;;  %v6029_v37 = vpack.c.bf16 %v638_v35, %v637_v34  ;;  %v640_v42 = vld [vmem:[%s6983_s4 + $0x28] sm:$0xff]  ;;  %v641_v45 = vld [vmem:[%s6983_s4 + $0x30] sm:$0xff]  ;;  %v642_v46 = vld [vmem:[%s6983_s4 + $0x38] sm:$0xff] }
  0x3d   :  { %233 = vmatmul.mubr.f32.gmra.mrb[12].mxu0 %v44_v8  ;;  %4285 = vmatprep.subr.bf16.mxu1 %v5949_v3  ;;  %7034 = vst [vmem:[#allocation7_spill] sm:$0xff] %v6000_v27  ;;  %v6039_v43 = vpack.c.bf16 %v640_v42, %v639_v39  ;;  %v6049_v49 = vpack.c.bf16 %v642_v46, %v641_v45  ;;  %v643_v51 = vld [vmem:[%s6983_s4 + $0x40] sm:$0xff]  ;;  %v644_v52 = vld [vmem:[%s6983_s4 + $0x48] sm:$0xff]  ;;  %v645_v57 = vld [vmem:[%s6983_s4 + $0x50] sm:$0xff] }
  0x3e   :  { %346 = vmatmul.mubr.f32.gmra.mrb[12].mxu1 %v44_v8  ;;  %4255 = vmatpush1.bf16.msra.mxu0 %v5961_v9  ;;  %v6059_v55 = vpack.c.bf16 %v644_v52, %v643_v51  ;;  %v646_v59 = vld [vmem:[%s6983_s4 + $0x58] sm:$0xff]  ;;  %v647_v0 = vld [vmem:[%s6983_s4 + $0x60] sm:$0xff]  ;;  %v648_v1 = vld [vmem:[%s6983_s4 + $0x68] sm:$0xff]  ;;  %v6993_v52 = vlaneseq }
  0x3f   :  { %4287 = vmatpush1.bf16.msra.mxu1 %v5971_v14  ;;  %238 = vmatprep.mubr.f32.mxu0 %v6996_v7  ;;  %v6069_v61 = vpack.c.bf16 %v646_v59, %v645_v57  ;;  %v6082_v4 = vpack.c.bf16 %v648_v1, %v647_v0  ;;  %v649_v6 = vld [vmem:[%s6983_s4 + $0x70] sm:$0xff]  ;;  %v650_v8 = vld [vmem:[%s6983_s4 + $0x78] sm:$0xff]  ;;  %v722_v12 = vld [vmem:[%s6985_s6] sm:$0xff]  ;;  %s5402_s4 = scalar_lea.vmem %s3295_s27, 32 }
  0x40   :  { %351 = vmatprep.mubr.f32.mxu1 %v6996_v7  ;;  %4257 = vmatprep.subr.bf16.mxu0 %v5981_v18  ;;  %v6092_v11 = vpack.c.bf16 %v650_v8, %v649_v6  ;;  %v723_v15 = vld [vmem:[%s6985_s6 + $0x8] sm:$0xff]  ;;  %v724_v17 = vld [vmem:[%s6985_s6 + $0x10] sm:$0xff]  ;;  %v725_v21 = vld [vmem:[%s6985_s6 + $0x18] sm:$0xff]  ;;  %v6148_v57 = vshrl.u32 %v6993_v52, 7 }
  0x41   :  { %239 = vmatmul.mubr.f32.gmra.mrb[14].mxu0 %v45_v24  ;;  %4289 = vmatprep.subr.bf16.mxu1 %v5990_v22  ;;  %v6106_v20 = vpack.c.bf16 %v723_v15, %v722_v12  ;;  %v726_v28 = vld [vmem:[%s6985_s6 + $0x20] sm:$0xff]  ;;  %v727_v30 = vld [vmem:[%s6985_s6 + $0x28] sm:$0xff]  ;;  %v728_v35 = vld [vmem:[%s6985_s6 + $0x30] sm:$0xff] }
  0x42   :  { %352 = vmatmul.mubr.f32.gmra.mrb[14].mxu1 %v45_v24  ;;  %4259 = vmatpush1.bf16.msra.mxu0 %v5996_v25  ;;  %v6112_v24 = vpack.c.bf16 %v725_v21, %v724_v17  ;;  %v6122_v34 = vpack.c.bf16 %v727_v30, %v726_v28  ;;  %v729_v39 = vld [vmem:[%s6985_s6 + $0x38] sm:$0xff]  ;;  %v730_v45 = vld [vmem:[%s6985_s6 + $0x40] sm:$0xff]  ;;  %v731_v46 = vld [vmem:[%s6985_s6 + $0x48] sm:$0xff]  ;;  %7040 = vst [vmem:[#allocation13_spill] sm:$0xff] %v6148_v57  ;;  %v6991_v59 = vsub.s32 0, %v6148_v57  ;;  %v6992_v1 = vsub.s32 1, %v6148_v57 }
  0x43   :  { %4291 = vmatpush1.bf16.msra.mxu1 %v6000_v27  ;;  %529 = vmatprep.mubr.f32.mxu0 %v6996_v7  ;;  %7035 = vst [vmem:[#allocation8_spill] sm:$0xff] %v6106_v20  ;;  %v6132_v42 = vpack.c.bf16 %v729_v39, %v728_v35  ;;  %v6142_v51 = vpack.c.bf16 %v731_v46, %v730_v45  ;;  %v110_v0 = vld [vmem:[%s6981_s2] sm:$0xf]  ;;  %v126_v15 = vsub.s32 3, %v6148_v57 }
  0x44   :  { %600 = vmatprep.mubr.f32.mxu1 %v6996_v7  ;;  %4292 = vmatprep.subr.bf16.mxu0 %v6994_v33  ;;  %7036 = vst [vmem:[#allocation9_spill] sm:$0xff] %v6112_v24  ;;  %7037 = vst [vmem:[#allocation10_spill] sm:$0xff] %v6122_v34  ;;  %v6157_v6 = vrot.slane %v110_v0, %v6991_v59  ;;  %v6161_v8 = vrot.slane %v110_v0, %v6992_v1  ;;  %v122_v59 = vsub.s32 2, %v6148_v57 }
  0x45   :  { %530 = vmatmul.mubr.f32.vlgmr.msra.gmra.mrb[0].mxu0 %v6996_v7  ;;  %4316 = vmatprep.subr.bf16.mxu1 %v6994_v33  ;;  %7038 = vst [vmem:[#allocation11_spill] sm:$0xff] %v6132_v42  ;;  %7039 = vst [vmem:[#allocation12_spill] sm:$0xff] %v6142_v51  ;;  %v6166_v46 = vrot.slane %v110_v0, %v126_v15 }
  0x46   :  { %601 = vmatmul.mubr.f32.vlgmr.msra.gmra.mrb[0].mxu1 %v6996_v7  ;;  %4294 = vmatpush3.bf16.msra.mxu0 %v6017_v31  ;;  %7041 = vst [vmem:[#allocation14_spill] sm:$0xff] %v6157_v6  ;;  %v6170_v52 = vrot.slane %v110_v0, %v122_v59 }
  0x47   :  { %4295 = vmatprep.subr.bf16.mxu0 %v6994_v33  ;;  %3636 = vmatprep.mubr.msk.f32.mxu0 %vm5424_vm0, %v6996_v7 }
  0x48   :  { %3671 = vmatprep.mubr.msk.f32.mxu1 %vm5424_vm0, %v6996_v7  ;;  %4318 = vmatpush3.bf16.msra.mxu1 %v6106_v20 }
  0x49   :  { %4319 = vmatprep.subr.bf16.mxu1 %v6994_v33 }
  0x4a   :  { %4297 = vmatpush3.bf16.msra.mxu0 %v6029_v37 }
  0x4b   :  { %4298 = vmatprep.subr.bf16.mxu0 %v6994_v33 }
  0x4c   :  { %4321 = vmatpush3.bf16.msra.mxu1 %v6112_v24 }
  0x4d   :  { %4322 = vmatprep.subr.bf16.mxu1 %v6994_v33 }
  0x4e   :  { %4300 = vmatpush3.bf16.msra.mxu0 %v6039_v43 }
  0x4f   :  { %4301 = vmatprep.subr.bf16.mxu0 %v6994_v33 }
  0x50   :  { %4324 = vmatpush3.bf16.msra.mxu1 %v6122_v34 }
  0x51   :  { %4325 = vmatprep.subr.bf16.mxu1 %v6994_v33 }
  0x52   :  { %4303 = vmatpush3.bf16.msra.mxu0 %v6049_v49 }
  0x53   :  { %4304 = vmatprep.subr.bf16.mxu0 %v6994_v33 }
  0x54   :  { %4327 = vmatpush3.bf16.msra.mxu1 %v6132_v42 }
  0x55   :  { %4328 = vmatprep.subr.bf16.mxu1 %v6994_v33 }
  0x56   :  { %4306 = vmatpush3.bf16.msra.mxu0 %v6059_v55 }
  0x57   :  { %4307 = vmatprep.subr.bf16.mxu0 %v6994_v33 }
  0x58   :  { %4330 = vmatpush3.bf16.msra.mxu1 %v6142_v51 }
  0x59   :  { %4331 = vmatprep.subr.bf16.mxu1 %v6994_v33 }
  0x5a   :  { %4309 = vmatpush3.bf16.msra.mxu0 %v6069_v61 }
  0x5b   :  { %4310 = vmatprep.subr.bf16.mxu0 %v6994_v33 }
  0x5e   :  { %4312 = vmatpush3.bf16.msra.mxu0 %v6082_v4 }
  0x5f   :  { %4313 = vmatprep.subr.bf16.mxu0 %v6994_v33 }
  0x62   :  { %4315 = vmatpush3.bf16.msra.mxu0 %v6092_v11 }
  0x63   :  { %4341 = vmatprep.subr.bf16.mxu0 %v5693_v38 }
 0x118   :  { %v531_v12 = vpop.f32.mrb[0].mxu0 }
 0x119   :  { %v5156_v17 = vadd.f32 %v531_v12, %v6157_v6  ;;  %v602_v21 = vpop.f32.mrb[0].mxu1  ;;  %v533_v28 = vpop.f32.mrb[1].mxu0 }
 0x11a   :  { %v5157_v30 = vadd.f32 %v533_v28, %v6161_v8  ;;  %v604_v35 = vpop.f32.mrb[1].mxu1  ;;  %v5172_v12 = vadd.f32 %v602_v21, %v6170_v52 }
 0x11b   :  { %v3307_v39 = vmul.f32 -1.442695, %v5156_v17  ;;  %v5173_v1 = vadd.f32 %v604_v35, %v6166_v46 }
 0x11c   :  { %v3308_v45 = vmul.f32 -1.442695, %v5157_v30 }
 0x11d   :  { %5229 = vpow2.f32 %v3307_v39  ;;  %v3309_v33 = vmul.f32 -1.442695, %v5173_v1 }
 0x11e   :  { %5231 = vpow2.f32 %v3308_v45 }
 0x11f   :  { %5233 = vpow2.f32 %v3309_v33  ;;  %v7043_v33 = vmov 0.0  }
 0x120   :  { %5235 = vtanh.f32 %v5172_v12  ;;  %v734_v12 = vld [vmem:[%s6985_s6 + $0x60] sm:$0xff] }
 0x127   :  { %v5230_v7 = vpop.eup %5229 }
 0x128   :  { %v5232_v6 = vpop.eup %5231  ;;  %v614_v51 = vadd.f32 1.0, %v5230_v7 }
 0x129   :  { %v620_v17 = vadd.f32 1.0, %v5232_v6  ;;  %v5234_v15 = vpop.eup %5233  ;;  %v733_v6 = vld [vmem:[%s6985_s6 + $0x58] sm:$0xff] }
 0x12a   :  { %5237 = vrcp.f32 %v614_v51  ;;  %v5236_v28 = vpop.eup %5235  ;;  %v627_v57 = vadd.f32 1.0, %v5234_v15  ;;  %v7044_v51 = vmov 0.0|0.0  }
 0x12b   :  { %5239 = vrcp.f32 %v620_v17  ;;  %v735_v17 = vld [vmem:[%s6985_s6 + $0x68] sm:$0xff] }
 0x12c   :  { %5241 = vrcp.f32 %v627_v57  ;;  %v732_v57 = vld [vmem:[%s6985_s6 + $0x50] sm:$0xff]  ;;  %v6231_v15 = vpack.c.bf16 %v735_v17, %v734_v12 }
 0x12d   :  { %v6221_v21 = vpack.c.bf16 %v733_v6, %v732_v57  ;;  %v7048_v17 = vld [vmem:[#allocation12_spill] sm:$0xff] }
 0x12e   :  { %7046 = vst [vmem:[#allocation17_spill] sm:$0xff] %v6231_v15 }
 0x12f   :  { %7045 = vst [vmem:[#allocation16_spill] sm:$0xff] %v6221_v21  ;;  %4333 = vmatpush3.bf16.msra.mxu1 %v6221_v21 }
 0x130   :  { %4334 = vmatprep.subr.bf16.mxu1 %v7044_v51 }
 0x133   :  { %4336 = vmatpush3.bf16.msra.mxu1 %v6231_v15 }
 0x134   :  { %v5238_v30 = vpop.eup %5237  ;;  %4337 = vmatprep.subr.bf16.mxu1 %v7044_v51 }
 0x135   :  { %v5240_v39 = vpop.eup %5239  ;;  %v631_v45 = vmul.f32 %v5238_v30, %v5236_v28  ;;  %v736_v28 = vld [vmem:[%s6985_s6 + $0x70] sm:$0xff]  ;;  %v737_v30 = vld [vmem:[%s6985_s6 + $0x78] sm:$0xff] }
 0x136   :  { %v630_v35 = vmul.f32 0.0, %v5240_v39  ;;  %v5242_v0 = vpop.eup %5241  ;;  %v6240_v39 = vpack.c.bf16 %v737_v30, %v736_v28 }
 0x138   :  { %v6173_v59 = vadd.f32 %v631_v45, %v630_v35  ;;  %7047 = vst [vmem:[#allocation18_spill] sm:$0xff] %v6240_v39  ;;  %4339 = vmatpush3.bf16.msra.mxu1 %v6240_v39  ;;  %v6248_v45 = vld [vmem:[%s6984_s5] ss:$0 sm:$0xff] }
 0x139   :  { %4373 = vmatprep.subr.bf16.mxu1 %v5701_v41 }
 0x13a   :  { %5243 = vtanh.f32 %v6173_v59 }
 0x144   :  { %v5244_v1 = vpop.eup %5243 }
 0x145   :  { %v6176_v7 = vmul.f32 %v5244_v1, %v5242_v0 }
 0x147   :  { %7042 = vst [vmem:[#allocation15_spill] sm:$0xff] %v6176_v7  ;;  %3637 = vmatmul.mubr.f32.vlgmr.msra.gmra.mrb[16].mxu0 %v6176_v7 }
 0x148   :  { %4343 = vmatpush1.bf16.msra.mxu0 %v5718_v47  ;;  %876 = vmatprep.mubr.f32.mxu0 %v7043_v33 }
 0x149   :  { %4345 = vmatprep.subr.bf16.mxu0 %v5736_v53 }
 0x14c   :  { %4347 = vmatpush1.bf16.msra.mxu0 %v5756_v60 }
 0x14d   :  { %4349 = vmatprep.subr.bf16.mxu0 %v5776_v2 }
 0x150   :  { %4351 = vmatpush1.bf16.msra.mxu0 %v5797_v10 }
 0x151   :  { %4353 = vmatprep.subr.bf16.mxu0 %v5817_v16 }
 0x154   :  { %4355 = vmatpush1.bf16.msra.mxu0 %v5838_v23 }
 0x155   :  { %4357 = vmatprep.subr.bf16.mxu0 %v5858_v29 }
 0x158   :  { %4359 = vmatpush1.bf16.msra.mxu0 %v5879_v36 }
 0x159   :  { %4361 = vmatprep.subr.bf16.mxu0 %v5899_v44 }
 0x15c   :  { %4363 = vmatpush1.bf16.msra.mxu0 %v5920_v54 }
 0x15d   :  { %4365 = vmatprep.subr.bf16.mxu0 %v5940_v62 }
 0x160   :  { %4367 = vmatpush1.bf16.msra.mxu0 %v5961_v9 }
 0x161   :  { %4369 = vmatprep.subr.bf16.mxu0 %v5981_v18 }
 0x164   :  { %4371 = vmatpush1.bf16.msra.mxu0 %v5996_v25 }
 0x165   :  { %4404 = vmatprep.subr.bf16.mxu0 %v7044_v51 }
 0x167   :  { %877 = vmatmul.mubr.f32.vlgmr.msra.gmra.mrb[2].mxu0 %v6176_v7 }
 0x168   :  { %4406 = vmatpush3.bf16.msra.mxu0 %v6017_v31  ;;  %3706 = vmatprep.mubr.msk.f32.mxu0 %vm5424_vm0, %v7043_v33 }
 0x169   :  { %4407 = vmatprep.subr.bf16.mxu0 %v7044_v51 }
 0x16c   :  { %4409 = vmatpush3.bf16.msra.mxu0 %v6029_v37 }
 0x16d   :  { %4410 = vmatprep.subr.bf16.mxu0 %v7044_v51 }
 0x170   :  { %4412 = vmatpush3.bf16.msra.mxu0 %v6039_v43 }
 0x171   :  { %4413 = vmatprep.subr.bf16.mxu0 %v7044_v51 }
 0x174   :  { %4415 = vmatpush3.bf16.msra.mxu0 %v6049_v49 }
 0x175   :  { %4416 = vmatprep.subr.bf16.mxu0 %v7044_v51 }
 0x178   :  { %4418 = vmatpush3.bf16.msra.mxu0 %v6059_v55 }
 0x179   :  { %4419 = vmatprep.subr.bf16.mxu0 %v7044_v51 }
 0x17c   :  { %4421 = vmatpush3.bf16.msra.mxu0 %v6069_v61 }
 0x17d   :  { %4422 = vmatprep.subr.bf16.mxu0 %v7044_v51 }
 0x180   :  { %4424 = vmatpush3.bf16.msra.mxu0 %v6082_v4 }
 0x181   :  { %4425 = vmatprep.subr.bf16.mxu0 %v7044_v51 }
 0x184   :  { %4427 = vmatpush3.bf16.msra.mxu0 %v6092_v11 }
 0x185   :  { %4453 = vmatprep.subr.bf16.mxu0 %v5693_v38 }
 0x21a   :  { %v717_v35 = vpop.f32.mrb[16].mxu0 }
 0x21b   :  { %v718_v0 = vadd.f32 %v6248_v45, %v717_v35  ;;  %v3638_v1 = vpop.f32.mrb[17].mxu0 }
 0x21d   :  { %5245 = vtanh.f32 %v718_v0  ;;  %v7050_v0 = vld [vmem:[#allocation14_spill] sm:$0xff] }
 0x227   :  { %v5246_v57 = vpop.eup %5245 }
 0x228   :  { %3672 = vmatmul.mubr.f32.vlgmr.msra.gmra.mrb[16].mxu1 %v5246_v57 }
 0x229   :  { %4375 = vmatpush1.bf16.msra.mxu1 %v5727_v50  ;;  %947 = vmatprep.mubr.f32.mxu1 %v7043_v33 }
 0x22a   :  { %4377 = vmatprep.subr.bf16.mxu1 %v5744_v56 }
 0x22d   :  { %4379 = vmatpush1.bf16.msra.mxu1 %v5766_v63 }
 0x22e   :  { %4381 = vmatprep.subr.bf16.mxu1 %v5785_v5 }
 0x231   :  { %4383 = vmatpush1.bf16.msra.mxu1 %v5807_v13 }
 0x232   :  { %4385 = vmatprep.subr.bf16.mxu1 %v5826_v19 }
 0x235   :  { %4387 = vmatpush1.bf16.msra.mxu1 %v5848_v26 }
 0x236   :  { %4389 = vmatprep.subr.bf16.mxu1 %v5867_v32 }
 0x239   :  { %4391 = vmatpush1.bf16.msra.mxu1 %v5889_v40 }
 0x23a   :  { %v878_v6 = vpop.f32.mrb[2].mxu0  ;;  %4393 = vmatprep.subr.bf16.mxu1 %v5908_v48 }
 0x23b   :  { %v880_v12 = vpop.f32.mrb[3].mxu0  ;;  %v5158_v1 = vadd.f32 %v878_v6, %v7050_v0 }
 0x23c   :  { %v5159_v35 = vadd.f32 %v880_v12, %v6161_v8 }
 0x23d   :  { %4395 = vmatpush1.bf16.msra.mxu1 %v5930_v58 }
 0x23e   :  { %4397 = vmatprep.subr.bf16.mxu1 %v5949_v3  ;;  %v3311_v57 = vmul.f32 -1.442695, %v5159_v35 }
 0x240   :  { %5247 = vpow2.f32 %v3311_v57 }
 0x241   :  { %4399 = vmatpush1.bf16.msra.mxu1 %v5971_v14 }
 0x242   :  { %4401 = vmatprep.subr.bf16.mxu1 %v5990_v22 }
 0x245   :  { %4403 = vmatpush1.bf16.msra.mxu1 %v6000_v27 }
 0x246   :  { %4428 = vmatprep.subr.bf16.mxu1 %v7044_v51 }
 0x248   :  { %948 = vmatmul.mubr.f32.vlgmr.msra.gmra.mrb[2].mxu1 %v6176_v7  ;;  %v3310_v7 = vmul.f32 -1.442695, %v5158_v1 }
 0x249   :  { %4430 = vmatpush3.bf16.msra.mxu1 %v6106_v20  ;;  %3741 = vmatprep.mubr.msk.f32.mxu1 %vm5424_vm0, %v7043_v33 }
 0x24a   :  { %4431 = vmatprep.subr.bf16.mxu1 %v7044_v51  ;;  %5249 = vpow2.f32 %v3310_v7 }
 0x24d   :  { %4433 = vmatpush3.bf16.msra.mxu1 %v6112_v24 }
 0x24e   :  { %4434 = vmatprep.subr.bf16.mxu1 %v7044_v51 }
 0x251   :  { %4436 = vmatpush3.bf16.msra.mxu1 %v6122_v34 }
 0x252   :  { %4437 = vmatprep.subr.bf16.mxu1 %v7044_v51 }
 0x255   :  { %4439 = vmatpush3.bf16.msra.mxu1 %v6132_v42 }
 0x256   :  { %4440 = vmatprep.subr.bf16.mxu1 %v7044_v51 }
 0x259   :  { %4442 = vmatpush3.bf16.msra.mxu1 %v7048_v17 }
 0x25a   :  { %4443 = vmatprep.subr.bf16.mxu1 %v7044_v51 }
 0x25d   :  { %4445 = vmatpush3.bf16.msra.mxu1 %v6221_v21  ;;  %v5248_v21 = vpop.eup %5247 }
 0x25e   :  { %4446 = vmatprep.subr.bf16.mxu1 %v7044_v51  ;;  %v5250_v17 = vpop.eup %5249 }
 0x25f   :  { %v961_v42 = vadd.f32 1.0, %v5250_v17 }
 0x261   :  { %4448 = vmatpush3.bf16.msra.mxu1 %v6231_v15  ;;  %v967_v15 = vadd.f32 1.0, %v5248_v21 }
 0x262   :  { %4449 = vmatprep.subr.bf16.mxu1 %v7044_v51 }
 0x263   :  { %5251 = vrcp.f32 %v967_v15 }
 0x264   :  { %5253 = vrcp.f32 %v961_v42 }
 0x265   :  { %4451 = vmatpush3.bf16.msra.mxu1 %v6240_v39 }
 0x266   :  { %4485 = vmatprep.subr.bf16.mxu1 %v5701_v41 }
 0x26d   :  { %v5252_v6 = vpop.eup %5251 }
 0x26e   :  { %v5254_v35 = vpop.eup %5253  ;;  %v977_v7 = vmul.f32 %v5252_v6, %v6173_v59  ;;  %v7052_v6 = vld [vmem:[#allocation10_spill] sm:$0xff] }
 0x2fb   :  { %v6287_v28 = vpop.f32.mrb[16].mxu1 }
 0x2fc   :  { %7049 = vst [vmem:[#allocation19_spill] sm:$0xff] %v6287_v28  ;;  %v3673_v30 = vpop.f32.mrb[17].mxu1 }
 0x31b   :  { %v949_v34 = vpop.f32.mrb[2].mxu1 }
 0x31c   :  { %v5174_v39 = vadd.f32 %v949_v34, %v6170_v52  ;;  %v951_v41 = vpop.f32.mrb[3].mxu1 }
 0x31d   :  { %v5175_v30 = vadd.f32 %v951_v41, %v6166_v46 }
 0x31e   :  { %5255 = vtanh.f32 %v5174_v39 }
 0x31f   :  { %v3312_v12 = vmul.f32 -1.442695, %v5175_v30 }
 0x321   :  { %5257 = vpow2.f32 %v3312_v12 }
 0x328   :  { %v5256_v1 = vpop.eup %5255 }
 0x329   :  { %v978_v57 = vmul.f32 %v5256_v1, %v5254_v35  ;;  %v7053_v35 = vld [vmem:[#allocation11_spill] sm:$0xff]  ;;  %v7054_v1 = vld [vmem:[#allocation12_spill] sm:$0xff] }
 0x32b   :  { %v5258_v0 = vpop.eup %5257  ;;  %v6294_v21 = vadd.f32 %v978_v57, %v977_v7  ;;  %v7055_v7 = vld [vmem:[#allocation16_spill] sm:$0xff]  ;;  %v7056_v57 = vld [vmem:[#allocation17_spill] sm:$0xff] }
 0x32c   :  { %v974_v17 = vadd.f32 1.0, %v5258_v0 }
 0x32d   :  { %5259 = vtanh.f32 %v6294_v21 }
 0x32e   :  { %5261 = vrcp.f32 %v974_v17  ;;  %v7057_v17 = vld [vmem:[#allocation18_spill] sm:$0xff] }
 0x337   :  { %v5260_v34 = vpop.eup %5259 }
 0x338   :  { %v5262_v42 = vpop.eup %5261 }
 0x339   :  { %v6297_v15 = vmul.f32 %v5262_v42, %v5260_v34  ;;  %v7058_v34 = vld [vmem:[#allocation6_spill] sm:$0xff] }
 0x33b   :  { %7051 = vst [vmem:[#allocation20_spill] sm:$0xff] %v6297_v15  ;;  %3707 = vmatmul.mubr.f32.vlgmr.msra.gmra.mrb[18].mxu0 %v6297_v15 }
 0x33c   :  { %4455 = vmatpush1.bf16.msra.mxu0 %v5718_v47  ;;  %1191 = vmatprep.mubr.f32.mxu0 %v7043_v33 }
 0x33d   :  { %4457 = vmatprep.subr.bf16.mxu0 %v5736_v53 }
 0x340   :  { %4459 = vmatpush1.bf16.msra.mxu0 %v5756_v60 }
 0x341   :  { %4461 = vmatprep.subr.bf16.mxu0 %v5776_v2 }
 0x344   :  { %4463 = vmatpush1.bf16.msra.mxu0 %v5797_v10 }
 0x345   :  { %4465 = vmatprep.subr.bf16.mxu0 %v5817_v16 }
 0x348   :  { %4467 = vmatpush1.bf16.msra.mxu0 %v5838_v23 }
 0x349   :  { %4469 = vmatprep.subr.bf16.mxu0 %v5858_v29 }
 0x34c   :  { %4471 = vmatpush1.bf16.msra.mxu0 %v5879_v36 }
 0x34d   :  { %4473 = vmatprep.subr.bf16.mxu0 %v5899_v44 }
 0x350   :  { %4475 = vmatpush1.bf16.msra.mxu0 %v5920_v54 }
 0x351   :  { %4477 = vmatprep.subr.bf16.mxu0 %v5940_v62 }
 0x354   :  { %4479 = vmatpush1.bf16.msra.mxu0 %v5961_v9 }
 0x355   :  { %4481 = vmatprep.subr.bf16.mxu0 %v5981_v18 }
 0x358   :  { %4483 = vmatpush1.bf16.msra.mxu0 %v5996_v25 }
 0x359   :  { %4516 = vmatprep.subr.bf16.mxu0 %v7044_v51 }
 0x35b   :  { %1192 = vmatmul.mubr.f32.vlgmr.msra.gmra.mrb[4].mxu0 %v6297_v15 }
 0x35c   :  { %4518 = vmatpush3.bf16.msra.mxu0 %v6017_v31  ;;  %3776 = vmatprep.mubr.msk.f32.mxu0 %vm5424_vm0, %v7043_v33 }
 0x35d   :  { %4519 = vmatprep.subr.bf16.mxu0 %v7044_v51 }
 0x360   :  { %4521 = vmatpush3.bf16.msra.mxu0 %v6029_v37 }
 0x361   :  { %4522 = vmatprep.subr.bf16.mxu0 %v7044_v51 }
 0x364   :  { %4524 = vmatpush3.bf16.msra.mxu0 %v6039_v43 }
 0x365   :  { %4525 = vmatprep.subr.bf16.mxu0 %v7044_v51 }
 0x368   :  { %4527 = vmatpush3.bf16.msra.mxu0 %v6049_v49 }
 0x369   :  { %4528 = vmatprep.subr.bf16.mxu0 %v7044_v51 }
 0x36c   :  { %4530 = vmatpush3.bf16.msra.mxu0 %v6059_v55 }
 0x36d   :  { %4531 = vmatprep.subr.bf16.mxu0 %v7044_v51 }
 0x370   :  { %4533 = vmatpush3.bf16.msra.mxu0 %v6069_v61 }
 0x371   :  { %4534 = vmatprep.subr.bf16.mxu0 %v7044_v51 }
 0x374   :  { %4536 = vmatpush3.bf16.msra.mxu0 %v6082_v4 }
 0x375   :  { %4537 = vmatprep.subr.bf16.mxu0 %v7044_v51 }
 0x378   :  { %4539 = vmatpush3.bf16.msra.mxu0 %v6092_v11 }
 0x379   :  { %4565 = vmatprep.subr.bf16.mxu0 %v5693_v38 }
 0x40e   :  { %v1048_v41 = vpop.f32.mrb[18].mxu0 }
 0x40f   :  { %v1049_v59 = vadd.f32 %v6248_v45, %v1048_v41  ;;  %v3708_v39 = vpop.f32.mrb[19].mxu0 }
 0x411   :  { %5263 = vtanh.f32 %v1049_v59 }
 0x41b   :  { %v5264_v0 = vpop.eup %5263 }
 0x41c   :  { %3742 = vmatmul.mubr.f32.vlgmr.msra.gmra.mrb[18].mxu1 %v5264_v0  ;;  %v7060_v0 = vld [vmem:[#allocation14_spill] sm:$0xff] }
 0x41d   :  { %4487 = vmatpush1.bf16.msra.mxu1 %v5727_v50  ;;  %1262 = vmatprep.mubr.f32.mxu1 %v7043_v33 }
 0x41e   :  { %4489 = vmatprep.subr.bf16.mxu1 %v5744_v56 }
 0x421   :  { %4491 = vmatpush1.bf16.msra.mxu1 %v5766_v63 }
 0x422   :  { %4493 = vmatprep.subr.bf16.mxu1 %v5785_v5 }
 0x425   :  { %4495 = vmatpush1.bf16.msra.mxu1 %v5807_v13 }
 0x426   :  { %4497 = vmatprep.subr.bf16.mxu1 %v5826_v19 }
 0x429   :  { %4499 = vmatpush1.bf16.msra.mxu1 %v5848_v26 }
 0x42a   :  { %4501 = vmatprep.subr.bf16.mxu1 %v5867_v32 }
 0x42d   :  { %4503 = vmatpush1.bf16.msra.mxu1 %v5889_v40 }
 0x42e   :  { %v1193_v30 = vpop.f32.mrb[4].mxu0  ;;  %4505 = vmatprep.subr.bf16.mxu1 %v5908_v48 }
 0x42f   :  { %v1195_v12 = vpop.f32.mrb[5].mxu0 }
 0x430   :  { %v5161_v39 = vadd.f32 %v1195_v12, %v6161_v8 }
 0x431   :  { %4507 = vmatpush1.bf16.msra.mxu1 %v5930_v58 }
 0x432   :  { %4509 = vmatprep.subr.bf16.mxu1 %v5949_v3 }
 0x435   :  { %4511 = vmatpush1.bf16.msra.mxu1 %v5971_v14 }
 0x436   :  { %4513 = vmatprep.subr.bf16.mxu1 %v5990_v22 }
 0x439   :  { %4515 = vmatpush1.bf16.msra.mxu1 %v6000_v27 }
 0x43a   :  { %4540 = vmatprep.subr.bf16.mxu1 %v7044_v51 }
 0x43c   :  { %1263 = vmatmul.mubr.f32.vlgmr.msra.gmra.mrb[4].mxu1 %v6297_v15  ;;  %v5160_v15 = vadd.f32 %v1193_v30, %v7060_v0 }
 0x43d   :  { %4542 = vmatpush3.bf16.msra.mxu1 %v6106_v20  ;;  %3811 = vmatprep.mubr.msk.f32.mxu1 %vm5424_vm0, %v7043_v33 }
 0x43e   :  { %4543 = vmatprep.subr.bf16.mxu1 %v7044_v51 }
 0x441   :  { %4545 = vmatpush3.bf16.msra.mxu1 %v6112_v24 }
 0x442   :  { %4546 = vmatprep.subr.bf16.mxu1 %v7044_v51 }
 0x445   :  { %4548 = vmatpush3.bf16.msra.mxu1 %v7052_v6 }
 0x446   :  { %4549 = vmatprep.subr.bf16.mxu1 %v7044_v51 }
 0x449   :  { %4551 = vmatpush3.bf16.msra.mxu1 %v7053_v35 }
 0x44a   :  { %4552 = vmatprep.subr.bf16.mxu1 %v7044_v51 }
 0x44d   :  { %4554 = vmatpush3.bf16.msra.mxu1 %v7054_v1  ;;  %v3313_v1 = vmul.f32 -1.442695, %v5160_v15 }
 0x44e   :  { %4555 = vmatprep.subr.bf16.mxu1 %v7044_v51 }
 0x451   :  { %4557 = vmatpush3.bf16.msra.mxu1 %v7055_v7  ;;  %v3314_v7 = vmul.f32 -1.442695, %v5161_v39 }
 0x452   :  { %4558 = vmatprep.subr.bf16.mxu1 %v7044_v51 }
 0x453   :  { %5265 = vpow2.f32 %v3314_v7 }
 0x454   :  { %5267 = vpow2.f32 %v3313_v1 }
 0x455   :  { %4560 = vmatpush3.bf16.msra.mxu1 %v7056_v57 }
 0x456   :  { %4561 = vmatprep.subr.bf16.mxu1 %v7044_v51 }
 0x459   :  { %4563 = vmatpush3.bf16.msra.mxu1 %v7057_v17 }
 0x45a   :  { %4597 = vmatprep.subr.bf16.mxu1 %v7058_v34 }
 0x45d   :  { %v5266_v57 = vpop.eup %5265 }
 0x45e   :  { %v5268_v35 = vpop.eup %5267  ;;  %v1282_v6 = vadd.f32 1.0, %v5266_v57 }
 0x45f   :  { %v1276_v17 = vadd.f32 1.0, %v5268_v35 }
 0x460   :  { %5269 = vrcp.f32 %v1282_v6 }
 0x461   :  { %5271 = vrcp.f32 %v1276_v17 }
 0x46a   :  { %v5270_v30 = vpop.eup %5269 }
 0x46b   :  { %v5272_v39 = vpop.eup %5271  ;;  %v1292_v1 = vmul.f32 %v5270_v30, %v6294_v21  ;;  %v7062_v30 = vld [vmem:[#allocation8_spill] sm:$0xff] }
 0x4ef   :  { %v6373_v42 = vpop.f32.mrb[18].mxu1 }
 0x4f0   :  { %7059 = vst [vmem:[#allocation21_spill] sm:$0xff] %v6373_v42  ;;  %v3743_v59 = vpop.f32.mrb[19].mxu1 }
 0x50f   :  { %v1264_v24 = vpop.f32.mrb[4].mxu1 }
 0x510   :  { %v5176_v34 = vadd.f32 %v1264_v24, %v6170_v52  ;;  %v1266_v20 = vpop.f32.mrb[5].mxu1 }
 0x511   :  { %v5177_v59 = vadd.f32 %v1266_v20, %v6166_v46 }
 0x512   :  { %5273 = vtanh.f32 %v5176_v34 }
 0x513   :  { %v3315_v12 = vmul.f32 -1.442695, %v5177_v59 }
 0x515   :  { %5275 = vpow2.f32 %v3315_v12 }
 0x51c   :  { %v5274_v15 = vpop.eup %5273 }
 0x51d   :  { %v1293_v7 = vmul.f32 %v5274_v15, %v5272_v39  ;;  %v7063_v39 = vld [vmem:[#allocation9_spill] sm:$0xff]  ;;  %v7064_v15 = vld [vmem:[#allocation10_spill] sm:$0xff] }
 0x51f   :  { %v5276_v41 = vpop.eup %5275  ;;  %v6382_v57 = vadd.f32 %v1293_v7, %v1292_v1  ;;  %v7065_v1 = vld [vmem:[#allocation11_spill] sm:$0xff]  ;;  %v7066_v7 = vld [vmem:[#allocation12_spill] sm:$0xff] }
 0x520   :  { %v1289_v35 = vadd.f32 1.0, %v5276_v41 }
 0x521   :  { %5277 = vtanh.f32 %v6382_v57 }
 0x522   :  { %5279 = vrcp.f32 %v1289_v35  ;;  %v7067_v35 = vld [vmem:[#allocation16_spill] sm:$0xff] }
 0x52b   :  { %v5278_v24 = vpop.eup %5277 }
 0x52c   :  { %v5280_v6 = vpop.eup %5279 }
 0x52d   :  { %v6385_v17 = vmul.f32 %v5280_v6, %v5278_v24  ;;  %v7068_v24 = vld [vmem:[#allocation17_spill] sm:$0xff]  ;;  %v7069_v6 = vld [vmem:[#allocation18_spill] sm:$0xff] }
 0x52f   :  { %7061 = vst [vmem:[#allocation14_spill] sm:$0xff] %v6385_v17  ;;  %3777 = vmatmul.mubr.f32.vlgmr.msra.gmra.mrb[20].mxu0 %v6385_v17 }
 0x530   :  { %4567 = vmatpush1.bf16.msra.mxu0 %v5718_v47  ;;  %1506 = vmatprep.mubr.f32.mxu0 %v7043_v33 }
 0x531   :  { %4569 = vmatprep.subr.bf16.mxu0 %v5736_v53 }
 0x534   :  { %4571 = vmatpush1.bf16.msra.mxu0 %v5756_v60 }
 0x535   :  { %4573 = vmatprep.subr.bf16.mxu0 %v5776_v2 }
 0x538   :  { %4575 = vmatpush1.bf16.msra.mxu0 %v5797_v10 }
 0x539   :  { %4577 = vmatprep.subr.bf16.mxu0 %v5817_v16 }
 0x53c   :  { %4579 = vmatpush1.bf16.msra.mxu0 %v5838_v23 }
 0x53d   :  { %4581 = vmatprep.subr.bf16.mxu0 %v5858_v29 }
 0x540   :  { %4583 = vmatpush1.bf16.msra.mxu0 %v5879_v36 }
 0x541   :  { %4585 = vmatprep.subr.bf16.mxu0 %v5899_v44 }
 0x544   :  { %4587 = vmatpush1.bf16.msra.mxu0 %v5920_v54 }
 0x545   :  { %4589 = vmatprep.subr.bf16.mxu0 %v5940_v62 }
 0x548   :  { %4591 = vmatpush1.bf16.msra.mxu0 %v5961_v9 }
 0x549   :  { %4593 = vmatprep.subr.bf16.mxu0 %v5981_v18 }
 0x54c   :  { %4595 = vmatpush1.bf16.msra.mxu0 %v5996_v25 }
 0x54d   :  { %4628 = vmatprep.subr.bf16.mxu0 %v7044_v51 }
 0x54f   :  { %1507 = vmatmul.mubr.f32.vlgmr.msra.gmra.mrb[6].mxu0 %v6385_v17 }
 0x550   :  { %4630 = vmatpush3.bf16.msra.mxu0 %v6017_v31  ;;  %3846 = vmatprep.mubr.msk.f32.mxu0 %vm5424_vm0, %v7043_v33 }
 0x551   :  { %4631 = vmatprep.subr.bf16.mxu0 %v7044_v51 }
 0x554   :  { %4633 = vmatpush3.bf16.msra.mxu0 %v6029_v37 }
 0x555   :  { %4634 = vmatprep.subr.bf16.mxu0 %v7044_v51 }
 0x558   :  { %4636 = vmatpush3.bf16.msra.mxu0 %v6039_v43 }
 0x559   :  { %4637 = vmatprep.subr.bf16.mxu0 %v7044_v51 }
 0x55c   :  { %4639 = vmatpush3.bf16.msra.mxu0 %v6049_v49 }
 0x55d   :  { %4640 = vmatprep.subr.bf16.mxu0 %v7044_v51 }
 0x560   :  { %4642 = vmatpush3.bf16.msra.mxu0 %v6059_v55 }
 0x561   :  { %4643 = vmatprep.subr.bf16.mxu0 %v7044_v51 }
 0x564   :  { %4645 = vmatpush3.bf16.msra.mxu0 %v6069_v61 }
 0x565   :  { %4646 = vmatprep.subr.bf16.mxu0 %v7044_v51 }
 0x568   :  { %4648 = vmatpush3.bf16.msra.mxu0 %v6082_v4 }
 0x569   :  { %4649 = vmatprep.subr.bf16.mxu0 %v7044_v51 }
 0x56c   :  { %4651 = vmatpush3.bf16.msra.mxu0 %v6092_v11 }
 0x56d   :  { %4677 = vmatprep.subr.bf16.mxu0 %v5693_v38 }
 0x602   :  { %v1363_v20 = vpop.f32.mrb[20].mxu0 }
 0x603   :  { %v1364_v21 = vadd.f32 %v6248_v45, %v1363_v20  ;;  %v3778_v34 = vpop.f32.mrb[21].mxu0  ;;  %v7070_v20 = vld [vmem:[#allocation6_spill] sm:$0xff] }
 0x604   :  { %v7072_v34 = vmax.f32 %v6287_v28, %v6373_v42 }
 0x605   :  { %5281 = vtanh.f32 %v1364_v21 }
 0x60f   :  { %v5282_v41 = vpop.eup %5281 }
 0x610   :  { %3812 = vmatmul.mubr.f32.vlgmr.msra.gmra.mrb[20].mxu1 %v5282_v41 }
 0x611   :  { %4599 = vmatpush1.bf16.msra.mxu1 %v5727_v50  ;;  %1577 = vmatprep.mubr.f32.mxu1 %v7043_v33 }
 0x612   :  { %4601 = vmatprep.subr.bf16.mxu1 %v5744_v56 }
 0x615   :  { %4603 = vmatpush1.bf16.msra.mxu1 %v5766_v63 }
 0x616   :  { %4605 = vmatprep.subr.bf16.mxu1 %v5785_v5 }
 0x619   :  { %4607 = vmatpush1.bf16.msra.mxu1 %v5807_v13 }
 0x61a   :  { %4609 = vmatprep.subr.bf16.mxu1 %v5826_v19 }
 0x61d   :  { %4611 = vmatpush1.bf16.msra.mxu1 %v5848_v26 }
 0x61e   :  { %4613 = vmatprep.subr.bf16.mxu1 %v5867_v32 }
 0x621   :  { %4615 = vmatpush1.bf16.msra.mxu1 %v5889_v40 }
 0x622   :  { %v1508_v59 = vpop.f32.mrb[6].mxu0  ;;  %4617 = vmatprep.subr.bf16.mxu1 %v5908_v48 }
 0x623   :  { %v1510_v12 = vpop.f32.mrb[7].mxu0 }
 0x625   :  { %4619 = vmatpush1.bf16.msra.mxu1 %v5930_v58 }
 0x626   :  { %4621 = vmatprep.subr.bf16.mxu1 %v5949_v3 }
 0x629   :  { %4623 = vmatpush1.bf16.msra.mxu1 %v5971_v14 }
 0x62a   :  { %4625 = vmatprep.subr.bf16.mxu1 %v5990_v22 }
 0x62d   :  { %4627 = vmatpush1.bf16.msra.mxu1 %v6000_v27 }
 0x62e   :  { %4652 = vmatprep.subr.bf16.mxu1 %v7044_v51 }
 0x630   :  { %1578 = vmatmul.mubr.f32.vlgmr.msra.gmra.mrb[6].mxu1 %v6385_v17 }
 0x631   :  { %4654 = vmatpush3.bf16.msra.mxu1 %v7062_v30  ;;  %3881 = vmatprep.mubr.msk.f32.mxu1 %vm5424_vm0, %v7043_v33 }
 0x632   :  { %4655 = vmatprep.subr.bf16.mxu1 %v7044_v51 }
 0x635   :  { %4657 = vmatpush3.bf16.msra.mxu1 %v7063_v39 }
 0x636   :  { %4658 = vmatprep.subr.bf16.mxu1 %v7044_v51 }
 0x639   :  { %4660 = vmatpush3.bf16.msra.mxu1 %v7064_v15 }
 0x63a   :  { %4661 = vmatprep.subr.bf16.mxu1 %v7044_v51 }
 0x63d   :  { %4663 = vmatpush3.bf16.msra.mxu1 %v7065_v1 }
 0x63e   :  { %4664 = vmatprep.subr.bf16.mxu1 %v7044_v51 }
 0x641   :  { %4666 = vmatpush3.bf16.msra.mxu1 %v7066_v7  ;;  %v5162_v7 = vadd.f32 %v1508_v59, %v7060_v0 }
 0x642   :  { %4667 = vmatprep.subr.bf16.mxu1 %v7044_v51 }
 0x643   :  { %v3316_v1 = vmul.f32 -1.442695, %v5162_v7 }
 0x645   :  { %4669 = vmatpush3.bf16.msra.mxu1 %v7067_v35  ;;  %v5163_v35 = vadd.f32 %v1510_v12, %v6161_v8 }
 0x646   :  { %4670 = vmatprep.subr.bf16.mxu1 %v7044_v51 }
 0x649   :  { %4672 = vmatpush3.bf16.msra.mxu1 %v7068_v24  ;;  %v3317_v24 = vmul.f32 -1.442695, %v5163_v35 }
 0x64a   :  { %4673 = vmatprep.subr.bf16.mxu1 %v7044_v51 }
 0x64b   :  { %5283 = vpow2.f32 %v3317_v24 }
 0x64c   :  { %5285 = vpow2.f32 %v3316_v1 }
 0x64d   :  { %4675 = vmatpush3.bf16.msra.mxu1 %v7069_v6 }
 0x64e   :  { %4709 = vmatprep.subr.bf16.mxu1 %v7070_v20 }
 0x655   :  { %v5284_v6 = vpop.eup %5283 }
 0x656   :  { %v5286_v15 = vpop.eup %5285  ;;  %v1597_v20 = vadd.f32 1.0, %v5284_v6 }
 0x657   :  { %v1591_v39 = vadd.f32 1.0, %v5286_v15 }
 0x658   :  { %5287 = vrcp.f32 %v1597_v20 }
 0x659   :  { %5289 = vrcp.f32 %v1591_v39 }
 0x662   :  { %v5288_v59 = vpop.eup %5287 }
 0x663   :  { %v5290_v35 = vpop.eup %5289  ;;  %v1607_v1 = vmul.f32 %v5288_v59, %v6382_v57 }
 0x6e3   :  { %v6461_v21 = vpop.f32.mrb[20].mxu1 }
 0x6e4   :  { %7071 = vst [vmem:[#allocation22_spill] sm:$0xff] %v6461_v21  ;;  %v6467_v41 = vmax.f32 %v7072_v34, %v6461_v21  ;;  %v3813_v17 = vpop.f32.mrb[21].mxu1 }
 0x703   :  { %v1579_v30 = vpop.f32.mrb[6].mxu1 }
 0x704   :  { %v5178_v27 = vadd.f32 %v1579_v30, %v6170_v52  ;;  %v1581_v42 = vpop.f32.mrb[7].mxu1 }
 0x705   :  { %v5179_v17 = vadd.f32 %v1581_v42, %v6166_v46 }
 0x706   :  { %5291 = vtanh.f32 %v5178_v27 }
 0x707   :  { %v3318_v12 = vmul.f32 -1.442695, %v5179_v17 }
 0x709   :  { %5293 = vpow2.f32 %v3318_v12 }
 0x710   :  { %v5292_v7 = vpop.eup %5291 }
 0x711   :  { %v1608_v24 = vmul.f32 %v5292_v7, %v5290_v35  ;;  %v7074_v35 = vld [vmem:[#allocation7_spill] sm:$0xff]  ;;  %v7075_v7 = vld [vmem:[#allocation8_spill] sm:$0xff] }
 0x713   :  { %v5294_v34 = vpop.eup %5293  ;;  %v6474_v6 = vadd.f32 %v1608_v24, %v1607_v1  ;;  %v7076_v1 = vld [vmem:[#allocation9_spill] sm:$0xff]  ;;  %v7077_v24 = vld [vmem:[#allocation10_spill] sm:$0xff] }
 0x714   :  { %v1604_v15 = vadd.f32 1.0, %v5294_v34  ;;  %v7078_v34 = vld [vmem:[#allocation11_spill] sm:$0xff] }
 0x715   :  { %5295 = vtanh.f32 %v6474_v6 }
 0x716   :  { %5297 = vrcp.f32 %v1604_v15  ;;  %v7079_v15 = vld [vmem:[#allocation12_spill] sm:$0xff] }
 0x71f   :  { %v5296_v30 = vpop.eup %5295 }
 0x720   :  { %v5298_v39 = vpop.eup %5297 }
 0x721   :  { %v6477_v20 = vmul.f32 %v5298_v39, %v5296_v30  ;;  %v7080_v30 = vld [vmem:[#allocation16_spill] sm:$0xff]  ;;  %v7081_v39 = vld [vmem:[#allocation17_spill] sm:$0xff] }
 0x723   :  { %7073 = vst [vmem:[#allocation23_spill] sm:$0xff] %v6477_v20  ;;  %3847 = vmatmul.mubr.f32.vlgmr.msra.gmra.mrb[22].mxu0 %v6477_v20 }
 0x724   :  { %4679 = vmatpush1.bf16.msra.mxu0 %v5718_v47  ;;  %1821 = vmatprep.mubr.f32.mxu0 %v7043_v33 }
 0x725   :  { %4681 = vmatprep.subr.bf16.mxu0 %v5736_v53 }
 0x728   :  { %4683 = vmatpush1.bf16.msra.mxu0 %v5756_v60 }
 0x729   :  { %4685 = vmatprep.subr.bf16.mxu0 %v5776_v2 }
 0x72c   :  { %4687 = vmatpush1.bf16.msra.mxu0 %v5797_v10 }
 0x72d   :  { %4689 = vmatprep.subr.bf16.mxu0 %v5817_v16 }
 0x730   :  { %4691 = vmatpush1.bf16.msra.mxu0 %v5838_v23 }
 0x731   :  { %4693 = vmatprep.subr.bf16.mxu0 %v5858_v29 }
 0x734   :  { %4695 = vmatpush1.bf16.msra.mxu0 %v5879_v36 }
 0x735   :  { %4697 = vmatprep.subr.bf16.mxu0 %v5899_v44 }
 0x738   :  { %4699 = vmatpush1.bf16.msra.mxu0 %v5920_v54 }
 0x739   :  { %4701 = vmatprep.subr.bf16.mxu0 %v5940_v62 }
 0x73c   :  { %4703 = vmatpush1.bf16.msra.mxu0 %v5961_v9 }
 0x73d   :  { %4705 = vmatprep.subr.bf16.mxu0 %v5981_v18 }
 0x740   :  { %4707 = vmatpush1.bf16.msra.mxu0 %v5996_v25 }
 0x741   :  { %4740 = vmatprep.subr.bf16.mxu0 %v7044_v51 }
 0x743   :  { %1822 = vmatmul.mubr.f32.vlgmr.msra.gmra.mrb[8].mxu0 %v6477_v20 }
 0x744   :  { %4742 = vmatpush3.bf16.msra.mxu0 %v6017_v31  ;;  %3916 = vmatprep.mubr.msk.f32.mxu0 %vm5424_vm0, %v7043_v33 }
 0x745   :  { %4743 = vmatprep.subr.bf16.mxu0 %v7044_v51 }
 0x748   :  { %4745 = vmatpush3.bf16.msra.mxu0 %v6029_v37 }
 0x749   :  { %4746 = vmatprep.subr.bf16.mxu0 %v7044_v51 }
 0x74c   :  { %4748 = vmatpush3.bf16.msra.mxu0 %v6039_v43 }
 0x74d   :  { %4749 = vmatprep.subr.bf16.mxu0 %v7044_v51 }
 0x750   :  { %4751 = vmatpush3.bf16.msra.mxu0 %v6049_v49 }
 0x751   :  { %4752 = vmatprep.subr.bf16.mxu0 %v7044_v51 }
 0x754   :  { %4754 = vmatpush3.bf16.msra.mxu0 %v6059_v55 }
 0x755   :  { %4755 = vmatprep.subr.bf16.mxu0 %v7044_v51 }
 0x758   :  { %4757 = vmatpush3.bf16.msra.mxu0 %v6069_v61 }
 0x759   :  { %4758 = vmatprep.subr.bf16.mxu0 %v7044_v51 }
 0x75c   :  { %4760 = vmatpush3.bf16.msra.mxu0 %v6082_v4 }
 0x75d   :  { %4761 = vmatprep.subr.bf16.mxu0 %v7044_v51 }
 0x760   :  { %4763 = vmatpush3.bf16.msra.mxu0 %v6092_v11 }
 0x761   :  { %4789 = vmatprep.subr.bf16.mxu0 %v5693_v38 }
 0x7f6   :  { %v1678_v27 = vpop.f32.mrb[22].mxu0 }
 0x7f7   :  { %v1679_v42 = vadd.f32 %v6248_v45, %v1678_v27  ;;  %v3848_v57 = vpop.f32.mrb[23].mxu0  ;;  %v7082_v27 = vld [vmem:[#allocation18_spill] sm:$0xff] }
 0x7f9   :  { %5299 = vtanh.f32 %v1679_v42  ;;  %v7083_v42 = vld [vmem:[#allocation6_spill] sm:$0xff] }
 0x803   :  { %v5300_v17 = vpop.eup %5299 }
 0x804   :  { %3882 = vmatmul.mubr.f32.vlgmr.msra.gmra.mrb[22].mxu1 %v5300_v17 }
 0x805   :  { %4711 = vmatpush1.bf16.msra.mxu1 %v5727_v50  ;;  %1892 = vmatprep.mubr.f32.mxu1 %v7043_v33 }
 0x806   :  { %4713 = vmatprep.subr.bf16.mxu1 %v5744_v56 }
 0x809   :  { %4715 = vmatpush1.bf16.msra.mxu1 %v5766_v63 }
 0x80a   :  { %4717 = vmatprep.subr.bf16.mxu1 %v5785_v5 }
 0x80d   :  { %4719 = vmatpush1.bf16.msra.mxu1 %v5807_v13 }
 0x80e   :  { %4721 = vmatprep.subr.bf16.mxu1 %v5826_v19 }
 0x811   :  { %4723 = vmatpush1.bf16.msra.mxu1 %v5848_v26 }
 0x812   :  { %4725 = vmatprep.subr.bf16.mxu1 %v5867_v32 }
 0x815   :  { %4727 = vmatpush1.bf16.msra.mxu1 %v5889_v40 }
 0x816   :  { %v1823_v12 = vpop.f32.mrb[8].mxu0  ;;  %4729 = vmatprep.subr.bf16.mxu1 %v5908_v48 }
 0x817   :  { %v1825_v59 = vpop.f32.mrb[9].mxu0  ;;  %v5164_v21 = vadd.f32 %v1823_v12, %v7060_v0 }
 0x818   :  { %v5165_v28 = vadd.f32 %v1825_v59, %v6161_v8 }
 0x819   :  { %4731 = vmatpush1.bf16.msra.mxu1 %v5930_v58 }
 0x81a   :  { %4733 = vmatprep.subr.bf16.mxu1 %v5949_v3 }
 0x81d   :  { %4735 = vmatpush1.bf16.msra.mxu1 %v5971_v14 }
 0x81e   :  { %4737 = vmatprep.subr.bf16.mxu1 %v5990_v22 }
 0x821   :  { %4739 = vmatpush1.bf16.msra.mxu1 %v7074_v35 }
 0x822   :  { %4764 = vmatprep.subr.bf16.mxu1 %v7044_v51 }
 0x824   :  { %1893 = vmatmul.mubr.f32.vlgmr.msra.gmra.mrb[8].mxu1 %v6477_v20 }
 0x825   :  { %4766 = vmatpush3.bf16.msra.mxu1 %v7075_v7  ;;  %3951 = vmatprep.mubr.msk.f32.mxu1 %vm5424_vm0, %v7043_v33 }
 0x826   :  { %4767 = vmatprep.subr.bf16.mxu1 %v7044_v51 }
 0x829   :  { %4769 = vmatpush3.bf16.msra.mxu1 %v7076_v1 }
 0x82a   :  { %4770 = vmatprep.subr.bf16.mxu1 %v7044_v51 }
 0x82d   :  { %4772 = vmatpush3.bf16.msra.mxu1 %v7077_v24 }
 0x82e   :  { %4773 = vmatprep.subr.bf16.mxu1 %v7044_v51 }
 0x831   :  { %4775 = vmatpush3.bf16.msra.mxu1 %v7078_v34 }
 0x832   :  { %4776 = vmatprep.subr.bf16.mxu1 %v7044_v51 }
 0x835   :  { %4778 = vmatpush3.bf16.msra.mxu1 %v7079_v15  ;;  %v3319_v15 = vmul.f32 -1.442695, %v5164_v21 }
 0x836   :  { %4779 = vmatprep.subr.bf16.mxu1 %v7044_v51 }
 0x839   :  { %4781 = vmatpush3.bf16.msra.mxu1 %v7080_v30  ;;  %v3320_v30 = vmul.f32 -1.442695, %v5165_v28 }
 0x83a   :  { %4782 = vmatprep.subr.bf16.mxu1 %v7044_v51 }
 0x83b   :  { %5301 = vpow2.f32 %v3320_v30 }
 0x83c   :  { %5303 = vpow2.f32 %v3319_v15 }
 0x83d   :  { %4784 = vmatpush3.bf16.msra.mxu1 %v7081_v39 }
 0x83e   :  { %4785 = vmatprep.subr.bf16.mxu1 %v7044_v51 }
 0x841   :  { %4787 = vmatpush3.bf16.msra.mxu1 %v7082_v27 }
 0x842   :  { %4821 = vmatprep.subr.bf16.mxu1 %v7083_v42 }
 0x845   :  { %v5302_v39 = vpop.eup %5301 }
 0x846   :  { %v5304_v34 = vpop.eup %5303  ;;  %v1912_v24 = vadd.f32 1.0, %v5302_v39 }
 0x847   :  { %v1906_v27 = vadd.f32 1.0, %v5304_v34 }
 0x848   :  { %5305 = vrcp.f32 %v1912_v24 }
 0x849   :  { %5307 = vrcp.f32 %v1906_v27 }
 0x852   :  { %v5306_v12 = vpop.eup %5305 }
 0x853   :  { %v5308_v28 = vpop.eup %5307  ;;  %v1922_v15 = vmul.f32 %v5306_v12, %v6474_v6  ;;  %v7087_v12 = vld [vmem:[#allocation9_spill] sm:$0xff] }
 0x8d7   :  { %v6553_v57 = vpop.f32.mrb[22].mxu1 }
 0x8d8   :  { %7084 = vst [vmem:[#allocation7_spill] sm:$0xff] %v6553_v57  ;;  %v3883_v20 = vpop.f32.mrb[23].mxu1 }
 0x8f7   :  { %v1894_v1 = vpop.f32.mrb[8].mxu1 }
 0x8f8   :  { %v5180_v42 = vadd.f32 %v1894_v1, %v6170_v52  ;;  %v1896_v7 = vpop.f32.mrb[9].mxu1 }
 0x8f9   :  { %v5181_v20 = vadd.f32 %v1896_v7, %v6166_v46 }
 0x8fa   :  { %5309 = vtanh.f32 %v5180_v42 }
 0x8fb   :  { %v3321_v59 = vmul.f32 -1.442695, %v5181_v20 }
 0x8fd   :  { %5311 = vpow2.f32 %v3321_v59  ;;  %v7086_v59 = vld [vmem:[#allocation8_spill] sm:$0xff] }
 0x904   :  { %v5310_v21 = vpop.eup %5309 }
 0x905   :  { %v1923_v30 = vmul.f32 %v5310_v21, %v5308_v28  ;;  %v7088_v28 = vld [vmem:[#allocation10_spill] sm:$0xff]  ;;  %v7089_v21 = vld [vmem:[#allocation11_spill] sm:$0xff] }
 0x907   :  { %v5312_v17 = vpop.eup %5311  ;;  %v6562_v39 = vadd.f32 %v1923_v30, %v1922_v15  ;;  %v7090_v15 = vld [vmem:[#allocation12_spill] sm:$0xff] }
 0x908   :  { %v1919_v34 = vadd.f32 1.0, %v5312_v17  ;;  %v7091_v30 = vld [vmem:[#allocation16_spill] sm:$0xff] }
 0x909   :  { %5313 = vtanh.f32 %v6562_v39 }
 0x90a   :  { %5315 = vrcp.f32 %v1919_v34  ;;  %v7092_v34 = vld [vmem:[#allocation17_spill] sm:$0xff] }
 0x913   :  { %v5314_v1 = vpop.eup %5313 }
 0x914   :  { %v5316_v24 = vpop.eup %5315 }
 0x915   :  { %v6565_v27 = vmul.f32 %v5316_v24, %v5314_v1  ;;  %v7093_v1 = vld [vmem:[#allocation18_spill] sm:$0xff] }
 0x916   :  { %v7094_v24 = vld [vmem:[#allocation6_spill] sm:$0xff] }
 0x917   :  { %7085 = vst [vmem:[#allocation24_spill] sm:$0xff] %v6565_v27  ;;  %3917 = vmatmul.mubr.f32.vlgmr.msra.gmra.mrb[24].mxu0 %v6565_v27 }
 0x918   :  { %4791 = vmatpush1.bf16.msra.mxu0 %v5718_v47  ;;  %2136 = vmatprep.mubr.f32.mxu0 %v7043_v33 }
 0x919   :  { %4793 = vmatprep.subr.bf16.mxu0 %v5736_v53 }
 0x91c   :  { %4795 = vmatpush1.bf16.msra.mxu0 %v5756_v60 }
 0x91d   :  { %4797 = vmatprep.subr.bf16.mxu0 %v5776_v2 }
 0x920   :  { %4799 = vmatpush1.bf16.msra.mxu0 %v5797_v10 }
 0x921   :  { %4801 = vmatprep.subr.bf16.mxu0 %v5817_v16 }
 0x924   :  { %4803 = vmatpush1.bf16.msra.mxu0 %v5838_v23 }
 0x925   :  { %4805 = vmatprep.subr.bf16.mxu0 %v5858_v29 }
 0x928   :  { %4807 = vmatpush1.bf16.msra.mxu0 %v5879_v36 }
 0x929   :  { %4809 = vmatprep.subr.bf16.mxu0 %v5899_v44 }
 0x92c   :  { %4811 = vmatpush1.bf16.msra.mxu0 %v5920_v54 }
 0x92d   :  { %4813 = vmatprep.subr.bf16.mxu0 %v5940_v62 }
 0x930   :  { %4815 = vmatpush1.bf16.msra.mxu0 %v5961_v9 }
 0x931   :  { %4817 = vmatprep.subr.bf16.mxu0 %v5981_v18 }
 0x934   :  { %4819 = vmatpush1.bf16.msra.mxu0 %v5996_v25 }
 0x935   :  { %4852 = vmatprep.subr.bf16.mxu0 %v7044_v51 }
 0x937   :  { %2137 = vmatmul.mubr.f32.vlgmr.msra.gmra.mrb[10].mxu0 %v6565_v27 }
 0x938   :  { %4854 = vmatpush3.bf16.msra.mxu0 %v6017_v31  ;;  %3986 = vmatprep.mubr.msk.f32.mxu0 %vm5424_vm0, %v7043_v33 }
 0x939   :  { %4855 = vmatprep.subr.bf16.mxu0 %v7044_v51 }
 0x93c   :  { %4857 = vmatpush3.bf16.msra.mxu0 %v6029_v37 }
 0x93d   :  { %4858 = vmatprep.subr.bf16.mxu0 %v7044_v51 }
 0x940   :  { %4860 = vmatpush3.bf16.msra.mxu0 %v6039_v43 }
 0x941   :  { %4861 = vmatprep.subr.bf16.mxu0 %v7044_v51 }
 0x944   :  { %4863 = vmatpush3.bf16.msra.mxu0 %v6049_v49 }
 0x945   :  { %4864 = vmatprep.subr.bf16.mxu0 %v7044_v51 }
 0x948   :  { %4866 = vmatpush3.bf16.msra.mxu0 %v6059_v55 }
 0x949   :  { %4867 = vmatprep.subr.bf16.mxu0 %v7044_v51 }
 0x94c   :  { %4869 = vmatpush3.bf16.msra.mxu0 %v6069_v61 }
 0x94d   :  { %4870 = vmatprep.subr.bf16.mxu0 %v7044_v51 }
 0x950   :  { %4872 = vmatpush3.bf16.msra.mxu0 %v6082_v4 }
 0x951   :  { %4873 = vmatprep.subr.bf16.mxu0 %v7044_v51 }
 0x954   :  { %4875 = vmatpush3.bf16.msra.mxu0 %v6092_v11 }
 0x955   :  { %4901 = vmatprep.subr.bf16.mxu0 %v5693_v38 }
 0x9ea   :  { %v1993_v6 = vpop.f32.mrb[24].mxu0 }
 0x9eb   :  { %v1994_v7 = vadd.f32 %v6248_v45, %v1993_v6  ;;  %v3918_v42 = vpop.f32.mrb[25].mxu0 }
 0x9ed   :  { %5317 = vtanh.f32 %v1994_v7  ;;  %v7096_v7 = vmax.f32 %v6467_v41, %v6553_v57 }
 0x9f7   :  { %v5318_v17 = vpop.eup %5317 }
 0x9f8   :  { %3952 = vmatmul.mubr.f32.vlgmr.msra.gmra.mrb[24].mxu1 %v5318_v17 }
 0x9f9   :  { %4823 = vmatpush1.bf16.msra.mxu1 %v5727_v50  ;;  %2207 = vmatprep.mubr.f32.mxu1 %v7043_v33 }
 0x9fa   :  { %4825 = vmatprep.subr.bf16.mxu1 %v5744_v56 }
 0x9fd   :  { %4827 = vmatpush1.bf16.msra.mxu1 %v5766_v63 }
 0x9fe   :  { %4829 = vmatprep.subr.bf16.mxu1 %v5785_v5 }
 0xa01   :  { %4831 = vmatpush1.bf16.msra.mxu1 %v5807_v13 }
 0xa02   :  { %4833 = vmatprep.subr.bf16.mxu1 %v5826_v19 }
 0xa05   :  { %4835 = vmatpush1.bf16.msra.mxu1 %v5848_v26 }
 0xa06   :  { %4837 = vmatprep.subr.bf16.mxu1 %v5867_v32 }
 0xa09   :  { %4839 = vmatpush1.bf16.msra.mxu1 %v5889_v40 }
 0xa0a   :  { %v2138_v45 = vpop.f32.mrb[10].mxu0  ;;  %4841 = vmatprep.subr.bf16.mxu1 %v5908_v48 }
 0xa0b   :  { %v2140_v20 = vpop.f32.mrb[11].mxu0 }
 0xa0d   :  { %4843 = vmatpush1.bf16.msra.mxu1 %v5930_v58 }
 0xa0e   :  { %4845 = vmatprep.subr.bf16.mxu1 %v5949_v3 }
 0xa11   :  { %4847 = vmatpush1.bf16.msra.mxu1 %v5971_v14 }
 0xa12   :  { %4849 = vmatprep.subr.bf16.mxu1 %v5990_v22 }
 0xa15   :  { %4851 = vmatpush1.bf16.msra.mxu1 %v7074_v35 }
 0xa16   :  { %4876 = vmatprep.subr.bf16.mxu1 %v7044_v51 }
 0xa18   :  { %2208 = vmatmul.mubr.f32.vlgmr.msra.gmra.mrb[10].mxu1 %v6565_v27  ;;  %v5167_v27 = vadd.f32 %v2140_v20, %v6161_v8 }
 0xa19   :  { %4878 = vmatpush3.bf16.msra.mxu1 %v7086_v59  ;;  %4021 = vmatprep.mubr.msk.f32.mxu1 %vm5424_vm0, %v7043_v33 }
 0xa1a   :  { %4879 = vmatprep.subr.bf16.mxu1 %v7044_v51 }
 0xa1d   :  { %4881 = vmatpush3.bf16.msra.mxu1 %v7087_v12 }
 0xa1e   :  { %4882 = vmatprep.subr.bf16.mxu1 %v7044_v51 }
 0xa21   :  { %4884 = vmatpush3.bf16.msra.mxu1 %v7088_v28 }
 0xa22   :  { %4885 = vmatprep.subr.bf16.mxu1 %v7044_v51 }
 0xa25   :  { %4887 = vmatpush3.bf16.msra.mxu1 %v7089_v21 }
 0xa26   :  { %4888 = vmatprep.subr.bf16.mxu1 %v7044_v51 }
 0xa29   :  { %4890 = vmatpush3.bf16.msra.mxu1 %v7090_v15 }
 0xa2a   :  { %4891 = vmatprep.subr.bf16.mxu1 %v7044_v51 }
 0xa2d   :  { %4893 = vmatpush3.bf16.msra.mxu1 %v7091_v30  ;;  %v5166_v30 = vadd.f32 %v2138_v45, %v7060_v0 }
 0xa2e   :  { %4894 = vmatprep.subr.bf16.mxu1 %v7044_v51 }
 0xa2f   :  { %v3322_v15 = vmul.f32 -1.442695, %v5166_v30 }
 0xa31   :  { %4896 = vmatpush3.bf16.msra.mxu1 %v7092_v34  ;;  %v3323_v34 = vmul.f32 -1.442695, %v5167_v27 }
 0xa32   :  { %4897 = vmatprep.subr.bf16.mxu1 %v7044_v51 }
 0xa33   :  { %5319 = vpow2.f32 %v3323_v34 }
 0xa34   :  { %5321 = vpow2.f32 %v3322_v15 }
 0xa35   :  { %4899 = vmatpush3.bf16.msra.mxu1 %v7093_v1 }
 0xa36   :  { %4933 = vmatprep.subr.bf16.mxu1 %v7094_v24 }
 0xa3d   :  { %v5320_v1 = vpop.eup %5319 }
 0xa3e   :  { %v5322_v21 = vpop.eup %5321  ;;  %v2227_v24 = vadd.f32 1.0, %v5320_v1 }
 0xa3f   :  { %v2221_v28 = vadd.f32 1.0, %v5322_v21 }
 0xa40   :  { %5323 = vrcp.f32 %v2227_v24 }
 0xa41   :  { %5325 = vrcp.f32 %v2221_v28 }
 0xa4a   :  { %v5324_v45 = vpop.eup %5323 }
 0xa4b   :  { %v5326_v27 = vpop.eup %5325  ;;  %v2237_v15 = vmul.f32 %v5324_v45, %v6562_v39 }
 0xacb   :  { %v6641_v6 = vpop.f32.mrb[24].mxu1 }
 0xacc   :  { %7095 = vst [vmem:[#allocation25_spill] sm:$0xff] %v6641_v6  ;;  %v6647_v42 = vmax.f32 %v7096_v7, %v6641_v6  ;;  %v3953_v17 = vpop.f32.mrb[25].mxu1 }
 0xaeb   :  { %v2209_v12 = vpop.f32.mrb[10].mxu1 }
 0xaec   :  { %v5182_v59 = vadd.f32 %v2209_v12, %v6170_v52  ;;  %v2211_v41 = vpop.f32.mrb[11].mxu1 }
 0xaed   :  { %v5183_v7 = vadd.f32 %v2211_v41, %v6166_v46 }
 0xaee   :  { %5327 = vtanh.f32 %v5182_v59  ;;  %v6699_v59 = vld [vmem:[%s6984_s5] ss:$0 sm:$0xff] }
 0xaef   :  { %v3324_v20 = vmul.f32 -1.442695, %v5183_v7 }
 0xaf1   :  { %5329 = vpow2.f32 %v3324_v20 }
 0xaf8   :  { %v5328_v30 = vpop.eup %5327 }
 0xaf9   :  { %v2238_v34 = vmul.f32 %v5328_v30, %v5326_v27  ;;  %v7098_v27 = vld [vmem:[#allocation8_spill] sm:$0xff]  ;;  %v7099_v30 = vld [vmem:[#allocation9_spill] sm:$0xff] }
 0xafb   :  { %v5330_v17 = vpop.eup %5329  ;;  %v6654_v1 = vadd.f32 %v2238_v34, %v2237_v15  ;;  %v7100_v15 = vld [vmem:[#allocation10_spill] sm:$0xff]  ;;  %v7101_v34 = vld [vmem:[#allocation11_spill] sm:$0xff] }
 0xafc   :  { %v2234_v21 = vadd.f32 1.0, %v5330_v17  ;;  %v7102_v17 = vld [vmem:[#allocation12_spill] sm:$0xff] }
 0xafd   :  { %5331 = vtanh.f32 %v6654_v1 }
 0xafe   :  { %5333 = vrcp.f32 %v2234_v21  ;;  %v7103_v21 = vld [vmem:[#allocation16_spill] sm:$0xff] }
 0xb07   :  { %v5332_v12 = vpop.eup %5331 }
 0xb08   :  { %v5334_v28 = vpop.eup %5333 }
 0xb09   :  { %v6657_v24 = vmul.f32 %v5334_v28, %v5332_v12  ;;  %v7104_v12 = vld [vmem:[#allocation17_spill] sm:$0xff]  ;;  %v7105_v28 = vld [vmem:[#allocation18_spill] sm:$0xff] }
 0xb0b   :  { %7097 = vst [vmem:[#allocation26_spill] sm:$0xff] %v6657_v24  ;;  %3987 = vmatmul.mubr.f32.vlgmr.msra.gmra.mrb[26].mxu0 %v6657_v24 }
 0xb0c   :  { %4903 = vmatpush1.bf16.msra.mxu0 %v5718_v47  ;;  %2451 = vmatprep.mubr.f32.mxu0 %v7043_v33 }
 0xb0d   :  { %4905 = vmatprep.subr.bf16.mxu0 %v5736_v53 }
 0xb10   :  { %4907 = vmatpush1.bf16.msra.mxu0 %v5756_v60 }
 0xb11   :  { %4909 = vmatprep.subr.bf16.mxu0 %v5776_v2 }
 0xb14   :  { %4911 = vmatpush1.bf16.msra.mxu0 %v5797_v10 }
 0xb15   :  { %4913 = vmatprep.subr.bf16.mxu0 %v5817_v16 }
 0xb18   :  { %4915 = vmatpush1.bf16.msra.mxu0 %v5838_v23 }
 0xb19   :  { %4917 = vmatprep.subr.bf16.mxu0 %v5858_v29 }
 0xb1c   :  { %4919 = vmatpush1.bf16.msra.mxu0 %v5879_v36 }
 0xb1d   :  { %4921 = vmatprep.subr.bf16.mxu0 %v5899_v44 }
 0xb20   :  { %4923 = vmatpush1.bf16.msra.mxu0 %v5920_v54 }
 0xb21   :  { %4925 = vmatprep.subr.bf16.mxu0 %v5940_v62 }
 0xb24   :  { %4927 = vmatpush1.bf16.msra.mxu0 %v5961_v9 }
 0xb25   :  { %4929 = vmatprep.subr.bf16.mxu0 %v5981_v18 }
 0xb28   :  { %4931 = vmatpush1.bf16.msra.mxu0 %v5996_v25 }
 0xb29   :  { %4964 = vmatprep.subr.bf16.mxu0 %v7044_v51 }
 0xb2b   :  { %2452 = vmatmul.mubr.f32.vlgmr.msra.gmra.mrb[12].mxu0 %v6657_v24 }
 0xb2c   :  { %4966 = vmatpush3.bf16.msra.mxu0 %v6017_v31  ;;  %4056 = vmatprep.mubr.msk.f32.mxu0 %vm5424_vm0, %v7043_v33 }
 0xb2d   :  { %4967 = vmatprep.subr.bf16.mxu0 %v7044_v51 }
 0xb30   :  { %4969 = vmatpush3.bf16.msra.mxu0 %v6029_v37 }
 0xb31   :  { %4970 = vmatprep.subr.bf16.mxu0 %v7044_v51 }
 0xb34   :  { %4972 = vmatpush3.bf16.msra.mxu0 %v6039_v43 }
 0xb35   :  { %4973 = vmatprep.subr.bf16.mxu0 %v7044_v51 }
 0xb38   :  { %4975 = vmatpush3.bf16.msra.mxu0 %v6049_v49 }
 0xb39   :  { %4976 = vmatprep.subr.bf16.mxu0 %v7044_v51 }
 0xb3c   :  { %4978 = vmatpush3.bf16.msra.mxu0 %v6059_v55 }
 0xb3d   :  { %4979 = vmatprep.subr.bf16.mxu0 %v7044_v51 }
 0xb40   :  { %4981 = vmatpush3.bf16.msra.mxu0 %v6069_v61 }
 0xb41   :  { %4982 = vmatprep.subr.bf16.mxu0 %v7044_v51 }
 0xb44   :  { %4984 = vmatpush3.bf16.msra.mxu0 %v6082_v4 }
 0xb45   :  { %4985 = vmatprep.subr.bf16.mxu0 %v7044_v51 }
 0xb48   :  { %4987 = vmatpush3.bf16.msra.mxu0 %v6092_v11 }
 0xb49   :  { %5013 = vmatprep.subr.bf16.mxu0 %v5693_v38 }
 0xbde   :  { %v2308_v39 = vpop.f32.mrb[26].mxu0 }
 0xbdf   :  { %v2309_v41 = vadd.f32 %v6699_v59, %v2308_v39  ;;  %v3988_v7 = vpop.f32.mrb[27].mxu0  ;;  %v7106_v39 = vld [vmem:[#allocation6_spill] sm:$0xff] }
 0xbe1   :  { %5335 = vtanh.f32 %v2309_v41 }
 0xbeb   :  { %v5336_v20 = vpop.eup %5335 }
 0xbec   :  { %4022 = vmatmul.mubr.f32.vlgmr.msra.gmra.mrb[26].mxu1 %v5336_v20 }
 0xbed   :  { %4935 = vmatpush1.bf16.msra.mxu1 %v5727_v50  ;;  %2522 = vmatprep.mubr.f32.mxu1 %v7043_v33 }
 0xbee   :  { %4937 = vmatprep.subr.bf16.mxu1 %v5744_v56 }
 0xbf1   :  { %4939 = vmatpush1.bf16.msra.mxu1 %v5766_v63 }
 0xbf2   :  { %4941 = vmatprep.subr.bf16.mxu1 %v5785_v5 }
 0xbf5   :  { %4943 = vmatpush1.bf16.msra.mxu1 %v5807_v13 }
 0xbf6   :  { %4945 = vmatprep.subr.bf16.mxu1 %v5826_v19 }
 0xbf9   :  { %4947 = vmatpush1.bf16.msra.mxu1 %v5848_v26 }
 0xbfa   :  { %4949 = vmatprep.subr.bf16.mxu1 %v5867_v32 }
 0xbfd   :  { %4951 = vmatpush1.bf16.msra.mxu1 %v5889_v40 }
 0xbfe   :  { %v2453_v38 = vpop.f32.mrb[12].mxu0  ;;  %4953 = vmatprep.subr.bf16.mxu1 %v5908_v48 }
 0xbff   :  { %v2455_v45 = vpop.f32.mrb[13].mxu0  ;;  %v5168_v6 = vadd.f32 %v2453_v38, %v7060_v0 }
 0xc01   :  { %4955 = vmatpush1.bf16.msra.mxu1 %v5930_v58 }
 0xc02   :  { %4957 = vmatprep.subr.bf16.mxu1 %v5949_v3 }
 0xc05   :  { %4959 = vmatpush1.bf16.msra.mxu1 %v5971_v14 }
 0xc06   :  { %4961 = vmatprep.subr.bf16.mxu1 %v5990_v22 }
 0xc09   :  { %4963 = vmatpush1.bf16.msra.mxu1 %v7074_v35 }
 0xc0a   :  { %4988 = vmatprep.subr.bf16.mxu1 %v7044_v51 }
 0xc0c   :  { %2523 = vmatmul.mubr.f32.vlgmr.msra.gmra.mrb[12].mxu1 %v6657_v24  ;;  %v5169_v24 = vadd.f32 %v2455_v45, %v6161_v8 }
 0xc0d   :  { %4990 = vmatpush3.bf16.msra.mxu1 %v7098_v27  ;;  %4091 = vmatprep.mubr.msk.f32.mxu1 %vm5424_vm0, %v7043_v33 }
 0xc0e   :  { %4991 = vmatprep.subr.bf16.mxu1 %v7044_v51  ;;  %v3326_v57 = vmul.f32 -1.442695, %v5169_v24 }
 0xc10   :  { %5337 = vpow2.f32 %v3326_v57 }
 0xc11   :  { %4993 = vmatpush3.bf16.msra.mxu1 %v7099_v30 }
 0xc12   :  { %4994 = vmatprep.subr.bf16.mxu1 %v7044_v51 }
 0xc15   :  { %4996 = vmatpush3.bf16.msra.mxu1 %v7100_v15 }
 0xc16   :  { %4997 = vmatprep.subr.bf16.mxu1 %v7044_v51 }
 0xc19   :  { %4999 = vmatpush3.bf16.msra.mxu1 %v7101_v34 }
 0xc1a   :  { %5000 = vmatprep.subr.bf16.mxu1 %v7044_v51 }
 0xc1d   :  { %5002 = vmatpush3.bf16.msra.mxu1 %v7102_v17 }
 0xc1e   :  { %5003 = vmatprep.subr.bf16.mxu1 %v7044_v51 }
 0xc21   :  { %5005 = vmatpush3.bf16.msra.mxu1 %v7103_v21  ;;  %v3325_v21 = vmul.f32 -1.442695, %v5168_v6 }
 0xc22   :  { %5006 = vmatprep.subr.bf16.mxu1 %v7044_v51 }
 0xc23   :  { %5339 = vpow2.f32 %v3325_v21 }
 0xc25   :  { %5008 = vmatpush3.bf16.msra.mxu1 %v7104_v12  ;;  %v5338_v12 = vpop.eup %5337 }
 0xc26   :  { %5009 = vmatprep.subr.bf16.mxu1 %v7044_v51  ;;  %v2542_v34 = vadd.f32 1.0, %v5338_v12 }
 0xc28   :  { %5341 = vrcp.f32 %v2542_v34 }
 0xc29   :  { %5011 = vmatpush3.bf16.msra.mxu1 %v7105_v28 }
 0xc2a   :  { %5045 = vmatprep.subr.bf16.mxu1 %v7106_v39 }
 0xc2d   :  { %v5340_v17 = vpop.eup %5339 }
 0xc2e   :  { %v2536_v28 = vadd.f32 1.0, %v5340_v17 }
 0xc30   :  { %5343 = vrcp.f32 %v2536_v28 }
 0xc32   :  { %v5342_v38 = vpop.eup %5341 }
 0xc33   :  { %v2552_v57 = vmul.f32 %v5342_v38, %v6654_v1  ;;  %v3122_v38 = vld [vmem:[%s6986_s7 + $0x38] sm:$0xff] }
 0xc3a   :  { %v5344_v24 = vpop.eup %5343 }
 0xcbf   :  { %v6738_v41 = vpop.f32.mrb[26].mxu1 }
 0xcc0   :  { %v4023_v20 = vpop.f32.mrb[27].mxu1 }
 0xcdf   :  { %v2524_v15 = vpop.f32.mrb[12].mxu1 }
 0xce0   :  { %v5184_v39 = vadd.f32 %v2524_v15, %v6170_v52  ;;  %v2526_v30 = vpop.f32.mrb[13].mxu1 }
 0xce1   :  { %v5185_v20 = vadd.f32 %v2526_v30, %v6166_v46  ;;  %v3116_v30 = vld [vmem:[%s6986_s7 + $0x8] sm:$0xff] }
 0xce2   :  { %5345 = vtanh.f32 %v5184_v39  ;;  %v3115_v39 = vld [vmem:[%s6986_s7] sm:$0xff] }
 0xce3   :  { %v3327_v45 = vmul.f32 -1.442695, %v5185_v20  ;;  %v3117_v20 = vld [vmem:[%s6986_s7 + $0x10] sm:$0xff] }
 0xce5   :  { %5347 = vpow2.f32 %v3327_v45  ;;  %v3120_v45 = vld [vmem:[%s6986_s7 + $0x28] sm:$0xff] }
 0xcec   :  { %v5346_v6 = vpop.eup %5345 }
 0xced   :  { %v2553_v21 = vmul.f32 %v5346_v6, %v5344_v24  ;;  %v5126_v24 = vpack.c.bf16 %v3117_v20, %v3115_v39  ;;  %v5128_v6 = vpack.c.bf16 %v3122_v38, %v3120_v45  ;;  %v3134_v39 = vld [vmem:[%s6986_s7 + $0x98] sm:$0xff]  ;;  %v3131_v45 = vld [vmem:[%s6986_s7 + $0x80] sm:$0xff]  ;;  %v3133_v38 = vld [vmem:[%s6986_s7 + $0x90] sm:$0xff] }
 0xcef   :  { %v5348_v7 = vpop.eup %5347  ;;  %v6747_v12 = vadd.f32 %v2553_v21, %v2552_v57 }
 0xcf0   :  { %v2549_v17 = vadd.f32 1.0, %v5348_v7  ;;  %v3118_v7 = vld [vmem:[%s6986_s7 + $0x18] sm:$0xff] }
 0xcf1   :  { %5349 = vtanh.f32 %v6747_v12 }
 0xcf2   :  { %5351 = vrcp.f32 %v2549_v17  ;;  %v7115_v17 = vld [vmem:[#allocation7_spill] sm:$0xff] }
 0xcfb   :  { %v5350_v15 = vpop.eup %5349 }
 0xcfc   :  { %v5352_v34 = vpop.eup %5351 }
 0xcfd   :  { %v6750_v28 = vmul.f32 %v5352_v34, %v5350_v15 }
 0xcff   :  { %4057 = vmatmul.mubr.f32.vlgmr.msra.gmra.mrb[28].mxu0 %v6750_v28 }
 0xd00   :  { %5015 = vmatpush1.bf16.msra.mxu0 %v5718_v47  ;;  %2766 = vmatprep.mubr.f32.mxu0 %v7043_v33 }
 0xd01   :  { %5017 = vmatprep.subr.bf16.mxu0 %v5736_v53 }
 0xd04   :  { %5019 = vmatpush1.bf16.msra.mxu0 %v5756_v60 }
 0xd05   :  { %5021 = vmatprep.subr.bf16.mxu0 %v5776_v2 }
 0xd08   :  { %5023 = vmatpush1.bf16.msra.mxu0 %v5797_v10 }
 0xd09   :  { %5025 = vmatprep.subr.bf16.mxu0 %v5817_v16  ;;  %v7111_v16 = vld [vmem:[#allocation16_spill] sm:$0xff] }
 0xd0c   :  { %5027 = vmatpush1.bf16.msra.mxu0 %v5838_v23  ;;  %v7113_v23 = vld [vmem:[#allocation18_spill] sm:$0xff] }
 0xd0d   :  { %5029 = vmatprep.subr.bf16.mxu0 %v5858_v29  ;;  %v7114_v29 = vmax.f32 %v6647_v42, %v6738_v41 }
 0xd10   :  { %5031 = vmatpush1.bf16.msra.mxu0 %v5879_v36 }
 0xd11   :  { %5033 = vmatprep.subr.bf16.mxu0 %v5899_v44 }
 0xd14   :  { %5035 = vmatpush1.bf16.msra.mxu0 %v5920_v54 }
 0xd15   :  { %5037 = vmatprep.subr.bf16.mxu0 %v5940_v62 }
 0xd18   :  { %5039 = vmatpush1.bf16.msra.mxu0 %v5961_v9 }
 0xd19   :  { %5041 = vmatprep.subr.bf16.mxu0 %v5981_v18 }
 0xd1c   :  { %5043 = vmatpush1.bf16.msra.mxu0 %v5996_v25 }
 0xd1d   :  { %5076 = vmatprep.subr.bf16.mxu0 %v7044_v51 }
 0xd1f   :  { %2767 = vmatmul.mubr.f32.vlgmr.msra.gmra.mrb[14].mxu0 %v6750_v28 }
 0xd20   :  { %5078 = vmatpush3.bf16.msra.mxu0 %v6017_v31  ;;  %4126 = vmatprep.mubr.msk.f32.mxu0 %vm5424_vm0, %v7043_v33 }
 0xd21   :  { %5079 = vmatprep.subr.bf16.mxu0 %v7044_v51 }
 0xd24   :  { %5081 = vmatpush3.bf16.msra.mxu0 %v6029_v37 }
 0xd25   :  { %5082 = vmatprep.subr.bf16.mxu0 %v7044_v51 }
 0xd28   :  { %5084 = vmatpush3.bf16.msra.mxu0 %v6039_v43 }
 0xd29   :  { %5085 = vmatprep.subr.bf16.mxu0 %v7044_v51 }
 0xd2c   :  { %5087 = vmatpush3.bf16.msra.mxu0 %v6049_v49 }
 0xd2d   :  { %5088 = vmatprep.subr.bf16.mxu0 %v7044_v51 }
 0xd30   :  { %5090 = vmatpush3.bf16.msra.mxu0 %v6059_v55 }
 0xd31   :  { %5091 = vmatprep.subr.bf16.mxu0 %v7044_v51 }
 0xd34   :  { %5093 = vmatpush3.bf16.msra.mxu0 %v6069_v61 }
 0xd35   :  { %5094 = vmatprep.subr.bf16.mxu0 %v7044_v51 }
 0xd38   :  { %5096 = vmatpush3.bf16.msra.mxu0 %v6082_v4 }
 0xd39   :  { %5097 = vmatprep.subr.bf16.mxu0 %v7044_v51 }
 0xd3c   :  { %5099 = vmatpush3.bf16.msra.mxu0 %v6092_v11 }
 0xdd2   :  { %v2623_v47 = vpop.f32.mrb[28].mxu0 }
 0xdd3   :  { %v2624_v53 = vadd.f32 %v6699_v59, %v2623_v47  ;;  %v4058_v60 = vpop.f32.mrb[29].mxu0  ;;  %v7116_v47 = vld [vmem:[#allocation22_spill] sm:$0xff] }
 0xdd4   :  { %v7117_v60 = vld [vmem:[#allocation19_spill] sm:$0xff] }
 0xdd5   :  { %5353 = vtanh.f32 %v2624_v53 }
 0xddf   :  { %v5354_v2 = vpop.eup %5353 }
 0xde0   :  { %4092 = vmatmul.mubr.f32.vlgmr.msra.gmra.mrb[28].mxu1 %v5354_v2 }
 0xde1   :  { %5047 = vmatpush1.bf16.msra.mxu1 %v5727_v50  ;;  %2837 = vmatprep.mubr.f32.mxu1 %v7043_v33 }
 0xde2   :  { %5049 = vmatprep.subr.bf16.mxu1 %v5744_v56  ;;  %v7107_v56 = vld [vmem:[#allocation9_spill] sm:$0xff] }
 0xde5   :  { %5051 = vmatpush1.bf16.msra.mxu1 %v5766_v63  ;;  %v7108_v63 = vld [vmem:[#allocation10_spill] sm:$0xff] }
 0xde6   :  { %5053 = vmatprep.subr.bf16.mxu1 %v5785_v5  ;;  %v7109_v5 = vld [vmem:[#allocation11_spill] sm:$0xff] }
 0xde9   :  { %5055 = vmatpush1.bf16.msra.mxu1 %v5807_v13  ;;  %v7110_v13 = vld [vmem:[#allocation12_spill] sm:$0xff] }
 0xdea   :  { %5057 = vmatprep.subr.bf16.mxu1 %v5826_v19  ;;  %v7112_v19 = vld [vmem:[#allocation17_spill] sm:$0xff] }
 0xded   :  { %5059 = vmatpush1.bf16.msra.mxu1 %v5848_v26 }
 0xdee   :  { %5061 = vmatprep.subr.bf16.mxu1 %v5867_v32 }
 0xdf1   :  { %5063 = vmatpush1.bf16.msra.mxu1 %v5889_v40 }
 0xdf2   :  { %v2768_v10 = vpop.f32.mrb[14].mxu0  ;;  %5065 = vmatprep.subr.bf16.mxu1 %v5908_v48 }
 0xdf3   :  { %v2770_v50 = vpop.f32.mrb[15].mxu0  ;;  %v5170_v44 = vadd.f32 %v2768_v10, %v7060_v0  ;;  %v7118_v10 = vld [vmem:[#allocation21_spill] sm:$0xff] }
 0xdf4   :  { %v5171_v40 = vadd.f32 %v2770_v50, %v6161_v8 }
 0xdf5   :  { %5067 = vmatpush1.bf16.msra.mxu1 %v5930_v58  ;;  %v3328_v54 = vmul.f32 -1.442695, %v5170_v44 }
 0xdf6   :  { %5069 = vmatprep.subr.bf16.mxu1 %v5949_v3  ;;  %v3329_v48 = vmul.f32 -1.442695, %v5171_v40 }
 0xdf8   :  { %5355 = vpow2.f32 %v3329_v48 }
 0xdf9   :  { %5071 = vmatpush1.bf16.msra.mxu1 %v5971_v14  ;;  %5357 = vpow2.f32 %v3328_v54 }
 0xdfa   :  { %5073 = vmatprep.subr.bf16.mxu1 %v5990_v22 }
 0xdfd   :  { %5075 = vmatpush1.bf16.msra.mxu1 %v7074_v35 }
 0xdfe   :  { %5100 = vmatprep.subr.bf16.mxu1 %v7044_v51 }
 0xe00   :  { %2838 = vmatmul.mubr.f32.vlgmr.msra.gmra.mrb[14].mxu1 %v6750_v28 }
 0xe01   :  { %5102 = vmatpush3.bf16.msra.mxu1 %v7098_v27  ;;  %4161 = vmatprep.mubr.msk.f32.mxu1 %vm5424_vm0, %v7043_v33  ;;  %v5425_v27 = vmov 0  }
 0xe02   :  { %5103 = vmatprep.subr.bf16.mxu1 %v7044_v51  ;;  %v5356_v58 = vpop.eup %5355  ;;  %5228 = vset.pattern.permute.xlu1 %v5425_v27 }
 0xe03   :  { %v5358_v62 = vpop.eup %5357  ;;  %v2857_v3 = vadd.f32 1.0, %v5356_v58  ;;  %5227 = vset.pattern.permute.xlu0 %v5425_v27  ;;  %v3121_v58 = vld [vmem:[%s6986_s7 + $0x30] sm:$0xff] }
 0xe04   :  { %v2851_v9 = vadd.f32 1.0, %v5358_v62  ;;  %v3124_v62 = vld [vmem:[%s6986_s7 + $0x48] sm:$0xff] }
 0xe05   :  { %5105 = vmatpush3.bf16.msra.mxu1 %v7107_v56  ;;  %5359 = vrcp.f32 %v2857_v3 }
 0xe06   :  { %5106 = vmatprep.subr.bf16.mxu1 %v7044_v51  ;;  %5361 = vrcp.f32 %v2851_v9 }
 0xe09   :  { %5108 = vmatpush3.bf16.msra.mxu1 %v7108_v63  ;;  %v7119_v63 = vld [vmem:[#allocation25_spill] sm:$0xff] }
 0xe0a   :  { %5109 = vmatprep.subr.bf16.mxu1 %v7044_v51 }
 0xe0d   :  { %5111 = vmatpush3.bf16.msra.mxu1 %v7109_v5 }
 0xe0e   :  { %5112 = vmatprep.subr.bf16.mxu1 %v7044_v51 }
 0xe0f   :  { %v5360_v37 = vpop.eup %5359 }
 0xe10   :  { %v5362_v43 = vpop.eup %5361  ;;  %v2867_v55 = vmul.f32 %v5360_v37, %v6747_v12 }
 0xe11   :  { %5114 = vmatpush3.bf16.msra.mxu1 %v7110_v13 }
 0xe12   :  { %5115 = vmatprep.subr.bf16.mxu1 %v7044_v51 }
 0xe15   :  { %5117 = vmatpush3.bf16.msra.mxu1 %v7111_v16 }
 0xe16   :  { %5118 = vmatprep.subr.bf16.mxu1 %v7044_v51 }
 0xe19   :  { %5120 = vmatpush3.bf16.msra.mxu1 %v7112_v19 }
 0xe1a   :  { %5121 = vmatprep.subr.bf16.mxu1 %v7044_v51 }
 0xe1d   :  { %5123 = vmatpush3.bf16.msra.mxu1 %v7113_v23 }
 0xeb3   :  { %v6824_v26 = vpop.f32.mrb[28].mxu1 }
 0xeb4   :  { %v3018_v32 = vmax.f32 %v7114_v29, %v6824_v26  ;;  %v4093_v36 = vpop.f32.mrb[29].mxu1 }
 0xed3   :  { %v2839_v14 = vpop.f32.mrb[14].mxu1 }
 0xed4   :  { %v5186_v18 = vadd.f32 %v2839_v14, %v6170_v52  ;;  %v2841_v22 = vpop.f32.mrb[15].mxu1  ;;  %v3126_v14 = vld [vmem:[%s6986_s7 + $0x58] sm:$0xff] }
 0xed5   :  { %v5187_v25 = vadd.f32 %v2841_v22, %v6166_v46  ;;  %v5132_v22 = vpack.c.bf16 %v3126_v14, %v3124_v62 }
 0xed6   :  { %5363 = vtanh.f32 %v5186_v18 }
 0xed7   :  { %v3330_v31 = vmul.f32 -1.442695, %v5187_v25 }
 0xed9   :  { %5365 = vpow2.f32 %v3330_v31 }
 0xee0   :  { %v5364_v49 = vpop.eup %5363 }
 0xee1   :  { %v2868_v61 = vmul.f32 %v5364_v49, %v5362_v43  ;;  %v3123_v43 = vld [vmem:[%s6986_s7 + $0x40] sm:$0xff]  ;;  %v3125_v49 = vld [vmem:[%s6986_s7 + $0x50] sm:$0xff] }
 0xee3   :  { %v5366_v4 = vpop.eup %5365  ;;  %v2869_v11 = vadd.f32 %v2868_v61, %v2867_v55  ;;  %v5134_v61 = vpack.c.bf16 %v3125_v49, %v3123_v43  ;;  %v7125_v49 = vld [vmem:[#allocation26_spill] sm:$0xff] }
 0xee4   :  { %v2864_v8 = vadd.f32 1.0, %v5366_v4 }
 0xee5   :  { %5367 = vtanh.f32 %v2869_v11  ;;  %v3128_v11 = vld [vmem:[%s6986_s7 + $0x68] sm:$0xff] }
 0xee6   :  { %5369 = vrcp.f32 %v2864_v8  ;;  %v3130_v8 = vld [vmem:[%s6986_s7 + $0x78] sm:$0xff] }
 0xeef   :  { %v5368_v51 = vpop.eup %5367 }
 0xef0   :  { %v5370_v52 = vpop.eup %5369 }
 0xef1   :  { %v6835_v0 = vmul.f32 %v5370_v52, %v5368_v51 }
 0xef3   :  { %4127 = vmatmul.mubr.f32.vlgmr.msra.gmra.mrb[30].mxu0 %v6835_v0 }
 0xef4   :  { %3223 = vmatprep.mubr.f32.mxu0 %v7043_v33 }
 0xfc6   :  { %v2938_v46 = vpop.f32.mrb[30].mxu0 }
 0xfc7   :  { %v2939_v35 = vadd.f32 %v6699_v59, %v2938_v46  ;;  %v4128_v42 = vpop.f32.mrb[31].mxu0  ;;  %v5124_v59 = vpack.c.bf16 %v3118_v7, %v3116_v30  ;;  %v5136_v46 = vpack.c.bf16 %v3130_v8, %v3128_v11  ;;  %v3132_v7 = vld [vmem:[%s6986_s7 + $0x88] sm:$0xff] }
 0xfc8   :  { %v3129_v42 = vld [vmem:[%s6986_s7 + $0x70] sm:$0xff]  ;;  %v5140_v20 = vpack.c.bf16 %v3134_v39, %v3132_v7  ;;  %v7127_v7 = vld [vmem:[#allocation13_spill] sm:$0xff] }
 0xfc9   :  { %5371 = vtanh.f32 %v2939_v35  ;;  %5125 = vmatprep.subr.bf16.mxu0 %v5124_v59  ;;  %v3127_v35 = vld [vmem:[%s6986_s7 + $0x60] sm:$0xff]  ;;  %v7128_v39 = vsub.s32 0, %v7127_v7  ;;  %vm3274_vm6 = vcmp.lt.s32.totalorder %v7127_v7, 2 }
 0xfca   :  { %5127 = vmatpush1.bf16.msra.mxu0 %v5126_v24  ;;  %v5138_v27 = vpack.c.bf16 %v3129_v42, %v3127_v35  ;;  %v5142_v24 = vpack.c.bf16 %v3133_v38, %v3131_v45 }
 0xfcb   :  { %5129 = vmatprep.subr.bf16.mxu0 %v5128_v6  ;;  %v3136_v6 = vld [vmem:[%s6986_s7 + $0xa8] sm:$0xff] }
 0xfd3   :  { %v5372_v1 = vpop.eup %5371 }
 0xfd4   :  { %4162 = vmatmul.mubr.f32.vlgmr.msra.gmra.mrb[30].mxu1 %v5372_v1 }
0x10a7   :  { %v3009_v57 = vpop.f32.mrb[30].mxu1 }
0x10a8   :  { %v3019_v21 = vmax.f32 %v3018_v32, %v3009_v57  ;;  %v4163_v12 = vpop.f32.mrb[31].mxu1 }
0x10aa   :  { %v3053_v15 = vsub.f32 %v7115_v17, %v3019_v21  ;;  %v3097_v34 = vsub.f32 %v3009_v57, %v3019_v21  ;;  %v3042_v53 = vsub.f32 %v7116_v47, %v3019_v21  ;;  %v3020_v2 = vsub.f32 %v7117_v60, %v3019_v21  ;;  %v3138_v57 = vld [vmem:[%s6986_s7 + $0xb8] sm:$0xff]  ;;  %v3137_v17 = vld [vmem:[%s6986_s7 + $0xb0] sm:$0xff]  ;;  %v3139_v60 = vld [vmem:[%s6986_s7 + $0xc0] sm:$0xff] }
0x10ab   :  { %v3031_v50 = vsub.f32 %v7118_v10, %v3019_v21  ;;  %v3075_v56 = vsub.f32 %v6738_v41, %v3019_v21  ;;  %v3064_v5 = vsub.f32 %v7119_v63, %v3019_v21  ;;  %v3086_v13 = vsub.f32 %v6824_v26, %v3019_v21  ;;  %v3119_v26 = vld [vmem:[%s6986_s7 + $0x20] sm:$0xff]  ;;  %v3144_v10 = vld [vmem:[%s6986_s7 + $0xe8] sm:$0xff] }
0x10ac   :  { %v3043_v16 = vmul.f32 1.442695, %v3042_v53  ;;  %v3021_v19 = vmul.f32 1.442695, %v3020_v2  ;;  %v3054_v29 = vmul.f32 1.442695, %v3053_v15  ;;  %v5130_v9 = vpack.c.bf16 %v3121_v58, %v3119_v26 }
0x10ad   :  { %v3032_v23 = vmul.f32 1.442695, %v3031_v50  ;;  %v3076_v32 = vmul.f32 1.442695, %v3075_v56  ;;  %v3065_v36 = vmul.f32 1.442695, %v3064_v5  ;;  %v5144_v12 = vpack.c.bf16 %v3138_v57, %v3136_v6 }
0x10ae   :  { %5373 = vpow2.f32 %v3043_v16  ;;  %v3098_v40 = vmul.f32 1.442695, %v3097_v34  ;;  %v3087_v44 = vmul.f32 1.442695, %v3086_v13  ;;  %5131 = vmatpush1.bf16.msra.mxu0 %v5130_v9  ;;  %v3135_v21 = vld [vmem:[%s6986_s7 + $0xa0] sm:$0xff]  ;;  %v3140_v15 = vld [vmem:[%s6986_s7 + $0xc8] sm:$0xff] }
0x10af   :  { %5375 = vpow2.f32 %v3021_v19  ;;  %5133 = vmatprep.subr.bf16.mxu0 %v5132_v22  ;;  %v3142_v34 = vld [vmem:[%s6986_s7 + $0xd8] sm:$0xff]  ;;  %v5146_v47 = vpack.c.bf16 %v3137_v17, %v3135_v21  ;;  %v3141_v2 = vld [vmem:[%s6986_s7 + $0xd0] sm:$0xff]  ;;  %v3143_v5 = vld [vmem:[%s6986_s7 + $0xe0] sm:$0xff] }
0x10b0   :  { %5377 = vpow2.f32 %v3032_v23  ;;  %v5148_v53 = vpack.c.bf16 %v3142_v34, %v3140_v15  ;;  %v3146_v50 = vld [vmem:[%s6986_s7 + $0xf8] sm:$0xff]  ;;  %v5150_v56 = vpack.c.bf16 %v3141_v2, %v3139_v60  ;;  %v3145_v13 = vld [vmem:[%s6986_s7 + $0xf0] sm:$0xff]  ;;  %v3260_v23 = vld [vmem:[%s6988_s9] sm:$0xff] }
0x10b1   :  { %5379 = vpow2.f32 %v3054_v29  ;;  %v5152_v63 = vpack.c.bf16 %v3146_v50, %v3144_v10  ;;  %v5154_v16 = vpack.c.bf16 %v3145_v13, %v3143_v5  ;;  %v7122_v26 = vld [vmem:[#allocation14_spill] sm:$0xff]  ;;  %v7123_v9 = vld [vmem:[#allocation23_spill] sm:$0xff] }
0x10b2   :  { %5381 = vpow2.f32 %v3076_v32  ;;  %5135 = vmatpush1.bf16.msra.mxu0 %v5134_v61 }
0x10b3   :  { %5383 = vpow2.f32 %v3065_v36  ;;  %5137 = vmatprep.subr.bf16.mxu0 %v5136_v46 }
0x10b4   :  { %5385 = vpow2.f32 %v3098_v40  ;;  %v7120_v40 = vld [vmem:[#allocation15_spill] sm:$0xff] }
0x10b5   :  { %5387 = vpow2.f32 %v3087_v44 }
0x10b6   :  { %5139 = vmatpush1.bf16.msra.mxu0 %v5138_v27  ;;  %v7126_v27 = vlaneseq }
0x10b7   :  { %5141 = vmatprep.subr.bf16.mxu0 %v5140_v20  ;;  %v7129_v20 = vsub.s32 1, %v7127_v7 }
0x10b8   :  { %v5374_v48 = vpop.eup %5373 }
0x10b9   :  { %v5376_v41 = vpop.eup %5375  ;;  %3048 = vperm.xlu1 %5228, %v5374_v48  }
0x10ba   :  { %v5378_v54 = vpop.eup %5377  ;;  %3026 = vperm.xlu0 %5227, %v5376_v41   ;;  %5143 = vmatpush1.bf16.msra.mxu0 %v5142_v24 }
0x10bb   :  { %v3034_v3 = vadd.f32 %v5378_v54, %v5376_v41  ;;  %v5380_v18 = vpop.eup %5379  ;;  %5145 = vmatprep.subr.bf16.mxu0 %v5144_v12 }
0x10bc   :  { %v5382_v31 = vpop.eup %5381 }
0x10bd   :  { %v3045_v25 = vadd.f32 %v5374_v48, %v3034_v3  ;;  %3059 = vperm.xlu1 %5228, %v5380_v18   ;;  %v5384_v55 = vpop.eup %5383  ;;  %v7121_v48 = vld [vmem:[#allocation20_spill] sm:$0xff] }
0x10be   :  { %3037 = vperm.xlu0 %5227, %v5378_v54   ;;  %v5386_v51 = vpop.eup %5385  ;;  %5147 = vmatpush1.bf16.msra.mxu0 %v5146_v47 }
0x10bf   :  { %v3056_v37 = vadd.f32 %v5380_v18, %v3045_v25  ;;  %v5388_v1 = vpop.eup %5387  ;;  %5149 = vmatprep.subr.bf16.mxu0 %v5148_v53  ;;  %v7124_v25 = vld [vmem:[#allocation24_spill] sm:$0xff] }
0x10c1   :  { %3081 = vperm.xlu1 %5228, %v5382_v31   ;;  %v3067_v4 = vadd.f32 %v5384_v55, %v3056_v37 }
0x10c2   :  { %3070 = vperm.xlu0 %5227, %v5384_v55   ;;  %5151 = vmatpush1.bf16.msra.mxu0 %v5150_v56 }
0x10c3   :  { %v3078_v52 = vadd.f32 %v5382_v31, %v3067_v4  ;;  %5153 = vmatprep.subr.bf16.mxu0 %v5152_v63 }
0x10c5   :  { %3103 = vperm.xlu1 %5228, %v5386_v51   ;;  %v3089_v30 = vadd.f32 %v5388_v1, %v3078_v52 }
0x10c6   :  { %3092 = vperm.xlu0 %5227, %v5388_v1   ;;  %5155 = vmatpush1.bf16.msra.mxu0 %v5154_v16  ;;  %v3147_v1 = vld [vmem:[%s6987_s8] sm:$0x3] }
0x10c7   :  { %v3100_v59 = vadd.f32 %v5386_v51, %v3089_v30  ;;  %v3234_v30 = vand.u32 127, %v7126_v27 }
0x10c9   :  { %5389 = vrcp.f32 %v3100_v59  ;;  %v3152_v59 = vrot.slane %v3147_v1, %v7128_v39  ;;  %v3235_v45 = vadd.s32 128, %v3234_v30  ;;  %v3236_v10 = vcvt.s32.f32 %v3234_v30 }
0x10cb   :  { %v3237_v50 = vcvt.s32.f32 %v3235_v45 }
0x10d3   :  { %v5390_v19 = vpop.eup %5389 }
0x10d4   :  { %3111 = vperm.xlu0 %5227, %v5390_v19  }
0x10d8   :  { %3262 = vperm.xlu0 %5227, %v3260_v23  }
0x1138   :  { %v3049_v29 = vpop.permute.xlu1 %3048 }
0x1139   :  { %v3027_v32 = vpop.permute.xlu0 %3026  ;;  %v3051_v58 = vmul.f32 %v3049_v29, %v7122_v26 }
0x113a   :  { %v3029_v44 = vmul.f32 %v3027_v32, %v7120_v40 }
0x113c   :  { %v3060_v54 = vpop.permute.xlu1 %3059 }
0x113d   :  { %v3038_v36 = vpop.permute.xlu0 %3037  ;;  %v3062_v14 = vmul.f32 %v3060_v54, %v7123_v9  ;;  %v3331_v54 = vsel %vm3274_vm6, 1.0, %v7043_v33 }
0x113e   :  { %v3040_v41 = vmul.f32 %v3038_v36, %v7121_v48 }
0x1140   :  { %v3041_v62 = vadd.f32 %v3040_v41, %v3029_v44  ;;  %v3082_v37 = vpop.permute.xlu1 %3081 }
0x1141   :  { %v3071_v3 = vpop.permute.xlu0 %3070  ;;  %v3084_v55 = vmul.f32 %v3082_v37, %v7125_v49 }
0x1142   :  { %v3052_v18 = vadd.f32 %v3051_v58, %v3041_v62  ;;  %v3073_v31 = vmul.f32 %v3071_v3, %v7124_v25 }
0x1144   :  { %v3063_v22 = vadd.f32 %v3062_v14, %v3052_v18  ;;  %v3104_v8 = vpop.permute.xlu1 %3103 }
0x1145   :  { %v3093_v61 = vpop.permute.xlu0 %3092  ;;  %v3106_v52 = vmul.f32 %v3104_v8, %v6835_v0 }
0x1146   :  { %v3074_v43 = vadd.f32 %v3073_v31, %v3063_v22  ;;  %v3095_v11 = vmul.f32 %v3093_v61, %v6750_v28  ;;  %v3156_v28 = vrot.slane %v3147_v1, %v7129_v20 }
0x1148   :  { %v3085_v4 = vadd.f32 %v3084_v55, %v3074_v43 }
0x114a   :  { %v3096_v51 = vadd.f32 %v3095_v11, %v3085_v4 }
0x114c   :  { %v3107_v46 = vadd.f32 %v3106_v52, %v3096_v51 }
0x1153   :  { %v3112_v35 = vpop.permute.xlu0 %3111 }
0x1154   :  { %v3114_v42 = vmul.f32 %v3112_v35, %v3107_v46 }
0x1156   :  { %3224 = vmatmul.mubr.f32.vlgmr.msra.gmra.mrb[32].mxu0 %v3114_v42 }
0x1157   :  { %v3263_v24 = vpop.permute.xlu0 %3262 }
0x1158   :  { %vm3264_vm1 = vcmp.eq.s32.totalorder %v3234_v30, %v3263_v24  ;;  %vm3265_vm2 = vcmp.eq.s32.totalorder %v3235_v45, %v3263_v24 }
0x1229   :  { %v3225_v38 = vpop.f32.mrb[32].mxu0 }
0x122a   :  { %v3226_v0 = vadd.f32 %v3225_v38, %v3152_v59  ;;  %v3227_v6 = vpop.f32.mrb[33].mxu0 }
0x122b   :  { %v3228_v57 = vadd.f32 %v3227_v6, %v3156_v28 }
0x122c   :  { %v3266_v12 = vsel %vm3264_vm1, %v3226_v0, 0.0 }
0x122d   :  { %v3230_v21 = vmax.f32 %v3226_v0, %v3228_v57  ;;  %v3267_v17 = vsel %vm3265_vm2, %v3228_v57, 0.0 }
0x122e   :  { %v3268_v15 = vadd.f32 %v3267_v17, %v3266_v12 }
0x122f   :  { %3231 = vmax.xlane.f32.xlu1 %v3230_v21 }
0x1233   :  { %3269 = vadd.xlane.f32.xlu1 %v3268_v15 }
0x12bc   :  { %v3232_v34 = vpop.xlane.xlu1 %3231 }
0x12bd   :  { %v3248_v47 = vsub.f32 %v3226_v0, %v3232_v34  ;;  %v3249_v53 = vsub.f32 %v3228_v57, %v3232_v34  ;;  %vm3238_vm3 = vcmp.eq.f32.partialorder %v3226_v0, %v3232_v34  ;;  %vm3239_vm4 = vcmp.eq.f32.partialorder %v3228_v57, %v3232_v34 }
0x12be   :  { %v3240_v13 = vsel %vm3238_vm3, %v3236_v10, 256.0  ;;  %v3241_v16 = vsel %vm3239_vm4, %v3237_v50, 256.0 }
0x12bf   :  { %v3250_v60 = vmul.f32 1.442695, %v3248_v47  ;;  %v3252_v2 = vmul.f32 1.442695, %v3249_v53  ;;  %v3242_v19 = vmin.f32 %v3240_v13, %v3241_v16 }
0x12c0   :  { %v3270_v41 = vpop.xlane.xlu1 %3269 }
0x12c1   :  { %5391 = vpow2.f32 %v3250_v60 }
0x12c2   :  { %5393 = vpow2.f32 %v3252_v2 }
0x12cb   :  { %v5392_v56 = vpop.eup %5391 }
0x12cc   :  { %v5394_v63 = vpop.eup %5393 }
0x12cd   :  { %v3254_v5 = vadd.f32 %v5394_v63, %v5392_v56 }
0x12cf   :  { %3255 = vadd.xlane.f32.xlu0 %v3254_v5 }
0x12d3   :  { %3243 = vmin.xlane.f32.xlu0 %v3242_v19 }
0x135c   :  { %v3256_v23 = vpop.xlane.xlu0 %3255 }
0x135d   :  { %5395 = vlog2.f32 %v3256_v23 }
0x1360   :  { %v3244_v29 = vpop.xlane.xlu0 %3243 }
0x1361   :  { %v5220_v32 = vtrunc.f32 %v3244_v29 }
0x1363   :  { %v5221_v36 = vcvt.f32.s32 %v5220_v32 }
0x1365   :  { %3247 = vst.msk [vmem:[%s6990_s11] sm:$0xff] %vm3246_vm5, %v5221_v36  ;;  %s5398_s11 = scalar_lea.vmem %s3295_s27, 16 }
0x1366   :  { %p5399_p0 = scmp.ne.s32.totalorder %s3295_s27, %s5398_s11  ;;  %p5404_p2 = scmp.lt.s32.totalorder %s5402_s4, %s5398_s11 }
0x1367   :  { %v5396_v40 = vpop.eup %5395 }
0x1368   :  { %v3258_v44 = vmul.f32 0.6931472, %v5396_v40  ;;  %p5405_p3 = por %p5404_p2, %p5403_p1 }
0x136a   :  { %v3259_v48 = vadd.f32 %v3258_v44, %v3232_v34  ;;  %p5406_p4 = pnand %p5405_p3, %p5399_p0 }
0x136c   :  { %v3271_v26 = vsub.f32 %v3259_v48, %v3270_v41 }
0x136e   :  { %v3277_v58 = vmul.f32 %v3331_v54, %v3271_v26 }
0x1370   :  { %v3278_v62 = vrot.slane %v3277_v58, 4 }
0x1372   :  { %v3279_v3 = vadd.f32 %v3278_v62, %v3277_v58 }
0x1374   :  { %v3280_v9 = vrot.slane %v3279_v3, 2 }
0x1376   :  { %v3281_v14 = vadd.f32 %v3280_v9, %v3279_v3 }
0x1378   :  { %v3282_v18 = vrot.slane %v3281_v14, 1 }
0x137a   :  { %v3283_v22 = vadd.f32 %v3282_v18, %v3281_v14 }
0x137c   :  { %v3285_v25 = vmul.f32 0.5, %v3283_v22 }
0x137e   :  { %3287 = vst.msk [vmem:[#allocation3] sm:$0x1] %vm3286_vm7, %v3285_v25 }
0x137f   :  { %5409 = shalt.err (!%p5406_p4)
}
0x1380   :  { %s5410_s30 = scalar_lea.hbm %s6989_s10, 16 }
0x1381   :  { %p5411_p5 = scmp.ne.s32.totalorder %s6989_s10, %s5410_s30  ;;  %p5414_p6 = scmp.lt.u32.totalorder %s5410_s30, %s6989_s10 }
0x1383   :  { %p5416_p7 = pnand %p5414_p6, %p5411_p5 }
0x1385   :  { %5419 = shalt.err (!%p5416_p7)
}
0x1386   :  { %3297 = dma.vmem_to_hbm [thread:$0]  %s3295_s27, 16, %s6989_s10, [#allocation4]  }
0x1387   :  { %5420 = dma.done.wait [#allocation4], 16  }
0x1388   :  { %5421 = vsyncadd [#allocation4], 4294967280 }
0x1389   :  { %3305 = vsyncpa [#allocation4], 1 }

</bundles_post_ra>
